<compile_context>
chip_gen: v6e
topology: v6e:2x2x1
jax: 0.10.0
libtpu: 0.0.40
codegen_flags: <defaults>
</compile_context>

<pallas_src>
import functools

import numpy as np
import jax
import jax.numpy as jnp
from jax.experimental import pallas as pl
from jax.experimental.pallas import tpu as pltpu

_K = 5  # every LeNet-5 conv kernel is 5x5


# --------------------------- host-side helpers ------------------------------ #

def _conv_weight_mat(w):
    """(OC, IC, KH, KW) -> (OC, KH*KW*IC); column index = (i*KW + j)*IC + c."""
    oc, ic, kh, kw = w.shape
    return jnp.transpose(w, (0, 2, 3, 1)).reshape(oc, kh * kw * ic)


def _block_diag(w_mat, bb):
    """(OC, K) -> (OC*bb, K*bb) block weight: W[o*bb+b, k*bb+b] = w_mat[o, k].

    Lets one matmul apply the shared conv weight to a whole batch block whose
    rows are stacked (channel-major, image-minor) on sublanes, with no cross-
    image mixing."""
    oc, k = w_mat.shape
    eye = jnp.eye(bb, dtype=w_mat.dtype)
    return jnp.einsum("ok,bd->obkd", w_mat, eye).reshape(oc * bb, k * bb)


def _block_bias(b, bb):
    """(OC,) -> (OC*bb, 1) with row o*bb + image = b[o]."""
    return jnp.repeat(b, bb).reshape(-1, 1)


def _pool_matrix(in_stride, in_h, in_w, out_stride, out_len):
    """Constant T so that  act(rows, in_h*in_stride) @ T  == 2x2 avg-pool,
    repacked densely with output row stride `out_stride` (extra cols zero)."""
    oh, ow = in_h // 2, in_w // 2
    t = np.zeros((in_h * in_stride, out_len), np.float32)
    for ph in range(oh):
        for pw in range(ow):
            for r in (0, 1):
                for s in (0, 1):
                    t[(2 * ph + r) * in_stride + 2 * pw + s,
                      ph * out_stride + pw] = 0.25
    return jnp.asarray(t)


# ------------------------------ fused kernel -------------------------------- #

def _lenet5_kernel(x_ref, w1_ref, b1_ref, t1_ref, w2_ref, b2_ref, t2_ref,
                   w3_ref, b3_ref, w4_ref, b4_ref, w5_ref, b5_ref, o_ref,
                   *, bb, s0, q1, s1, q2, c2):
    f32 = jnp.float32

    def patches(act, stride, q):
        # Stack the 25 lane-shifted tap windows on sublanes:
        # result row = tap * R + original_row   (R = rows of `act`).
        return jnp.concatenate(
            [act[:, i * stride + j: i * stride + j + q]
             for i in range(_K) for j in range(_K)], axis=0)

    x = x_ref[...]                                                     # (bb, l0)

    # conv1 + bias + ReLU: single (6bb, 25bb) @ (25bb, q1) MXU matmul.
    y = jnp.dot(w1_ref[...], patches(x, s0, q1),
                preferred_element_type=f32) + b1_ref[...]
    y = jnp.maximum(y, 0.0)                                            # (6bb, q1)
    # 2x2 avg-pool + dense repack (row stride 14): one constant matmul.
    y = jnp.dot(y, t1_ref[...], preferred_element_type=f32)            # (6bb, 200)

    # conv2 + bias + ReLU: single (16bb, 150bb) @ (150bb, q2) matmul.
    y = jnp.dot(w2_ref[...], patches(y, s1, q2),
                preferred_element_type=f32) + b2_ref[...]
    y = jnp.maximum(y, 0.0)                                            # (16bb, q2)
    # 2x2 avg-pool + dense repack (row stride 5).
    y = jnp.dot(y, t2_ref[...], preferred_element_type=f32)            # (16bb, 25)

    # conv3 (5x5 over the whole 5x5x16 map == fully connected) + ReLU.
    # Gather each image's 400 inputs lane-dense: (bb, 16*25), batch on sublanes.
    z = jnp.concatenate([y[c * bb:(c + 1) * bb, :] for c in range(c2)], axis=1)
    f = jnp.dot(z, w3_ref[...], preferred_element_type=f32) + b3_ref[...]
    f = jnp.maximum(f, 0.0)                                            # (bb, 120)

    # fc1, fc2 (torch Linear, no activation in between); classes on lanes.
    f = jnp.dot(f, w4_ref[...], preferred_element_type=f32) + b4_ref[...]   # (bb, 84)
    f = jnp.dot(f, w5_ref[...], preferred_element_type=f32) + b5_ref[...]   # (bb, nc)
    o_ref[...] = f


# ------------------------------- forward ------------------------------------ #

@jax.jit
def lenet5_forward(x, params):
    n, cin, h, w = x.shape
    assert cin == 1 and h == 28 and w == 28, "classic LeNet-5 expects (N,1,28,28)"
    pad = _K // 2

    # Batch blocking: bb images per grid step (bb=8 amortizes step overhead and
    # fills sublanes; for tiny batches one full-batch step).
    bb = 8 if n >= 8 else n
    n_pad = ((n + bb - 1) // bb) * bb

    # Flat-spatial geometry (fixed row strides; out-of-row columns are garbage
    # and are masked by the pooling matrices / never read).
    s0 = w + 2 * pad                          # 32: conv1 input row stride
    c1h = h + 2 * pad - _K + 1                # 28
    c1w = w + 2 * pad - _K + 1                # 28
    q1 = c1h * s0                             # 896: conv1 output flat length
    l0 = ((q1 + (_K - 1) * (s0 + 1) + 127) // 128) * 128   # 1152 (lane-aligned)
    p1h, p1w = c1h // 2, c1w // 2             # 14, 14
    s1 = p1w                                  # pool1 row stride 14
    c2h, c2w = p1h - _K + 1, p1w - _K + 1     # 10, 10
    q2 = c2h * s1                             # 140
    l1 = q2 + (_K - 1) * (s1 + 1)             # 200 (196 valid + tap-slice tail)
    p2h, p2w = c2h // 2, c2w // 2             # 5, 5
    l2 = p2h * p2w                            # 25 (conv3 reads all of it)

    # One-time boundary conversion: pad batch + conv1 padding, flatten spatial.
    xp = jnp.pad(x, ((0, n_pad - n), (0, 0), (pad, pad), (pad, pad)))
    xf = jnp.pad(xp.reshape(n_pad, s0 * s0), ((0, 0), (0, l0 - s0 * s0)))

    # Constants (pool matrices + batch-block weights), built once per call.
    t1 = _pool_matrix(s0, c1h, c1w, p1w, l1)                    # (896, 200)
    t2 = _pool_matrix(s1, c2h, c2w, p2w, l2)                    # (140, 25)
    c2ch = params["w2"].shape[0]                                # 16
    w1B = _block_diag(_conv_weight_mat(params["w1"]), bb)       # (6bb, 25bb)
    b1B = _block_bias(params["b1"], bb)
    w2B = _block_diag(_conv_weight_mat(params["w2"]), bb)       # (16bb, 150bb)
    b2B = _block_bias(params["b2"], bb)
    w3t = jnp.transpose(params["w3"], (1, 2, 3, 0)).reshape(c2ch * l2, -1)  # (400,120)
    b3r = params["b3"].reshape(1, -1)
    w4t = params["w4"].T                                        # (120, 84)
    b4r = params["b4"].reshape(1, -1)
    w5t = params["w5"].T                                        # (84, nc)
    b5r = params["b5"].reshape(1, -1)
    num_classes = w5t.shape[1]

    kernel = functools.partial(_lenet5_kernel, bb=bb, s0=s0, q1=q1,
                               s1=s1, q2=q2, c2=c2ch)

    def _full(a):
        return pl.BlockSpec(a.shape, lambda i: (0, 0))

    consts = (w1B, b1B, t1, w2B, b2B, t2, w3t, b3r, w4t, b4r, w5t, b5r)
    out = pl.pallas_call(
        kernel,
        out_shape=jax.ShapeDtypeStruct((n_pad, num_classes), jnp.float32),
        grid=(n_pad // bb,),
        in_specs=[pl.BlockSpec((bb, l0), lambda i: (i, 0))]
                 + [_full(a) for a in consts],
        out_specs=pl.BlockSpec((bb, num_classes), lambda i: (i, 0)),
        compiler_params=pltpu.CompilerParams(dimension_semantics=("parallel",)),
    )(xf, *consts)
    return out[:n]


# --------------------------- params / reference ----------------------------- #

def init_params(key, in_channels=1, out_classes=10):
    def uinit(k, shape, fan_in):
        bound = 1.0 / (fan_in ** 0.5)
        return jax.random.uniform(k, shape, jnp.float32, -bound, bound)

    ks = jax.random.split(key, 10)
    return {
        "w1": uinit(ks[0], (6, in_channels, 5, 5), in_channels * 25),
        "b1": uinit(ks[1], (6,), in_channels * 25),
        "w2": uinit(ks[2], (16, 6, 5, 5), 6 * 25),
        "b2": uinit(ks[3], (16,), 6 * 25),
        "w3": uinit(ks[4], (120, 16, 5, 5), 16 * 25),
        "b3": uinit(ks[5], (120,), 16 * 25),
        "w4": uinit(ks[6], (84, 120), 120),
        "b4": uinit(ks[7], (84,), 120),
        "w5": uinit(ks[8], (out_classes, 84), 84),
        "b5": uinit(ks[9], (out_classes,), 84),
    }


def ref_forward(x, params):
    def conv(x, w, b, pad):
        y = jax.lax.conv_general_dilated(
            x, w, window_strides=(1, 1), padding=((pad, pad), (pad, pad)),
            dimension_numbers=("NCHW", "OIHW", "NCHW"))
        return y + b[None, :, None, None]

    def pool(x):
        n, c, h, w = x.shape
        return x.reshape(n, c, h // 2, 2, w // 2, 2).mean(axis=(3, 5))

    y = jax.nn.relu(conv(x, params["w1"], params["b1"], 2))
    y = pool(y)
    y = jax.nn.relu(conv(y, params["w2"], params["b2"], 0))
    y = pool(y)
    y = jax.nn.relu(conv(y, params["w3"], params["b3"], 0))
    y = y.reshape(y.shape[0], -1)
    y = y @ params["w4"].T + params["b4"]
    y = y @ params["w5"].T + params["b5"]
    return y


if __name__ == "__main__":
    key = jax.random.PRNGKey(0)
    k_x, k_p = jax.random.split(key)
    params = init_params(k_p, in_channels=1, out_classes=10)

    # LeNet-5 geometry requires 28x28 input so conv3 produces 120*1*1 features.
    # batch=2 covers the single-block path; batch=10 covers batch blocking
    # (bb=8), batch padding and a 2-step "parallel" grid.
    for batch in (2, 10):
        xb = jax.random.normal(jax.random.fold_in(k_x, batch),
                               (batch, 1, 28, 28), dtype=jnp.float32)
        out = jax.block_until_ready(lenet5_forward(xb, params))
        ref = jax.block_until_ready(ref_forward(xb, params))
        assert out.shape == (batch, 10), out.shape
        assert jnp.allclose(out, ref, atol=2e-3, rtol=2e-3), (batch, out, ref)
    print("KERNEL_OK")
</pallas_src>

<mosaic_0001>
module attributes {stable_mosaic.version = 11 : i64} {
  func.func @_lenet5_kernel(%arg0: i32, %arg1: memref<2x1152xf32, #tpu.memory_space<vmem>>, %arg2: memref<12x50xf32, #tpu.memory_space<vmem>>, %arg3: memref<12x1xf32, #tpu.memory_space<vmem>>, %arg4: memref<896x200xf32, #tpu.memory_space<vmem>>, %arg5: memref<32x300xf32, #tpu.memory_space<vmem>>, %arg6: memref<32x1xf32, #tpu.memory_space<vmem>>, %arg7: memref<140x25xf32, #tpu.memory_space<vmem>>, %arg8: memref<400x120xf32, #tpu.memory_space<vmem>>, %arg9: memref<1x120xf32, #tpu.memory_space<vmem>>, %arg10: memref<120x84xf32, #tpu.memory_space<vmem>>, %arg11: memref<1x84xf32, #tpu.memory_space<vmem>>, %arg12: memref<84x10xf32, #tpu.memory_space<vmem>>, %arg13: memref<1x10xf32, #tpu.memory_space<vmem>>, %arg14: memref<2x10xf32, #tpu.memory_space<vmem>>) attributes {dimension_semantics = [#tpu.dimension_semantics<parallel>], iteration_bounds = array<i64: 1>, scalar_prefetch = 0 : i64, scratch_operands = 0 : i64, tpu.core_type = #tpu.core_type<tc>, window_params = [{transform_indices = @transform_0, window_bounds = array<i64: 2, 1152>}, {pipeline_mode = #tpu.pipeline_mode<synchronous>, transform_indices = @transform_1, window_bounds = array<i64: 12, 50>}, {pipeline_mode = #tpu.pipeline_mode<synchronous>, transform_indices = @transform_2, window_bounds = array<i64: 12, 1>}, {pipeline_mode = #tpu.pipeline_mode<synchronous>, transform_indices = @transform_3, window_bounds = array<i64: 896, 200>}, {pipeline_mode = #tpu.pipeline_mode<synchronous>, transform_indices = @transform_4, window_bounds = array<i64: 32, 300>}, {pipeline_mode = #tpu.pipeline_mode<synchronous>, transform_indices = @transform_5, window_bounds = array<i64: 32, 1>}, {pipeline_mode = #tpu.pipeline_mode<synchronous>, transform_indices = @transform_6, window_bounds = array<i64: 140, 25>}, {pipeline_mode = #tpu.pipeline_mode<synchronous>, transform_indices = @transform_7, window_bounds = array<i64: 400, 120>}, {pipeline_mode = #tpu.pipeline_mode<synchronous>, transform_indices = @transform_8, window_bounds = array<i64: 1, 120>}, {pipeline_mode = #tpu.pipeline_mode<synchronous>, transform_indices = @transform_9, window_bounds = array<i64: 120, 84>}, {pipeline_mode = #tpu.pipeline_mode<synchronous>, transform_indices = @transform_10, window_bounds = array<i64: 1, 84>}, {pipeline_mode = #tpu.pipeline_mode<synchronous>, transform_indices = @transform_11, window_bounds = array<i64: 84, 10>}, {pipeline_mode = #tpu.pipeline_mode<synchronous>, transform_indices = @transform_12, window_bounds = array<i64: 1, 10>}, {transform_indices = @transform_13, window_bounds = array<i64: 2, 10>}]} {
    %c0 = arith.constant 0 : index
    %c0_0 = arith.constant 0 : index
    %0 = vector.load %arg1[%c0, %c0_0] : memref<2x1152xf32, #tpu.memory_space<vmem>>, vector<2x1152xf32>
    %c0_1 = arith.constant 0 : index
    %c0_2 = arith.constant 0 : index
    %1 = vector.load %arg2[%c0_1, %c0_2] : memref<12x50xf32, #tpu.memory_space<vmem>>, vector<12x50xf32>
    %2 = vector.extract_strided_slice %0 {offsets = [0, 0], sizes = [2, 896], strides = [1, 1]} : vector<2x1152xf32> to vector<2x896xf32>
    %3 = vector.extract_strided_slice %0 {offsets = [0, 1], sizes = [2, 896], strides = [1, 1]} : vector<2x1152xf32> to vector<2x896xf32>
    %4 = vector.extract_strided_slice %0 {offsets = [0, 2], sizes = [2, 896], strides = [1, 1]} : vector<2x1152xf32> to vector<2x896xf32>
    %5 = vector.extract_strided_slice %0 {offsets = [0, 3], sizes = [2, 896], strides = [1, 1]} : vector<2x1152xf32> to vector<2x896xf32>
    %6 = vector.extract_strided_slice %0 {offsets = [0, 4], sizes = [2, 896], strides = [1, 1]} : vector<2x1152xf32> to vector<2x896xf32>
    %7 = vector.extract_strided_slice %0 {offsets = [0, 32], sizes = [2, 896], strides = [1, 1]} : vector<2x1152xf32> to vector<2x896xf32>
    %8 = vector.extract_strided_slice %0 {offsets = [0, 33], sizes = [2, 896], strides = [1, 1]} : vector<2x1152xf32> to vector<2x896xf32>
    %9 = vector.extract_strided_slice %0 {offsets = [0, 34], sizes = [2, 896], strides = [1, 1]} : vector<2x1152xf32> to vector<2x896xf32>
    %10 = vector.extract_strided_slice %0 {offsets = [0, 35], sizes = [2, 896], strides = [1, 1]} : vector<2x1152xf32> to vector<2x896xf32>
    %11 = vector.extract_strided_slice %0 {offsets = [0, 36], sizes = [2, 896], strides = [1, 1]} : vector<2x1152xf32> to vector<2x896xf32>
    %12 = vector.extract_strided_slice %0 {offsets = [0, 64], sizes = [2, 896], strides = [1, 1]} : vector<2x1152xf32> to vector<2x896xf32>
    %13 = vector.extract_strided_slice %0 {offsets = [0, 65], sizes = [2, 896], strides = [1, 1]} : vector<2x1152xf32> to vector<2x896xf32>
    %14 = vector.extract_strided_slice %0 {offsets = [0, 66], sizes = [2, 896], strides = [1, 1]} : vector<2x1152xf32> to vector<2x896xf32>
    %15 = vector.extract_strided_slice %0 {offsets = [0, 67], sizes = [2, 896], strides = [1, 1]} : vector<2x1152xf32> to vector<2x896xf32>
    %16 = vector.extract_strided_slice %0 {offsets = [0, 68], sizes = [2, 896], strides = [1, 1]} : vector<2x1152xf32> to vector<2x896xf32>
    %17 = vector.extract_strided_slice %0 {offsets = [0, 96], sizes = [2, 896], strides = [1, 1]} : vector<2x1152xf32> to vector<2x896xf32>
    %18 = vector.extract_strided_slice %0 {offsets = [0, 97], sizes = [2, 896], strides = [1, 1]} : vector<2x1152xf32> to vector<2x896xf32>
    %19 = vector.extract_strided_slice %0 {offsets = [0, 98], sizes = [2, 896], strides = [1, 1]} : vector<2x1152xf32> to vector<2x896xf32>
    %20 = vector.extract_strided_slice %0 {offsets = [0, 99], sizes = [2, 896], strides = [1, 1]} : vector<2x1152xf32> to vector<2x896xf32>
    %21 = vector.extract_strided_slice %0 {offsets = [0, 100], sizes = [2, 896], strides = [1, 1]} : vector<2x1152xf32> to vector<2x896xf32>
    %22 = vector.extract_strided_slice %0 {offsets = [0, 128], sizes = [2, 896], strides = [1, 1]} : vector<2x1152xf32> to vector<2x896xf32>
    %23 = vector.extract_strided_slice %0 {offsets = [0, 129], sizes = [2, 896], strides = [1, 1]} : vector<2x1152xf32> to vector<2x896xf32>
    %24 = vector.extract_strided_slice %0 {offsets = [0, 130], sizes = [2, 896], strides = [1, 1]} : vector<2x1152xf32> to vector<2x896xf32>
    %25 = vector.extract_strided_slice %0 {offsets = [0, 131], sizes = [2, 896], strides = [1, 1]} : vector<2x1152xf32> to vector<2x896xf32>
    %26 = vector.extract_strided_slice %0 {offsets = [0, 132], sizes = [2, 896], strides = [1, 1]} : vector<2x1152xf32> to vector<2x896xf32>
    %27 = tpu.concatenate %2, %3, %4, %5, %6, %7, %8, %9, %10, %11, %12, %13, %14, %15, %16, %17 in 0 : vector<2x896xf32>, vector<2x896xf32>, vector<2x896xf32>, vector<2x896xf32>, vector<2x896xf32>, vector<2x896xf32>, vector<2x896xf32>, vector<2x896xf32>, vector<2x896xf32>, vector<2x896xf32>, vector<2x896xf32>, vector<2x896xf32>, vector<2x896xf32>, vector<2x896xf32>, vector<2x896xf32>, vector<2x896xf32> -> vector<32x896xf32>
    %28 = tpu.concatenate %18, %19, %20, %21, %22, %23, %24, %25, %26 in 0 : vector<2x896xf32>, vector<2x896xf32>, vector<2x896xf32>, vector<2x896xf32>, vector<2x896xf32>, vector<2x896xf32>, vector<2x896xf32>, vector<2x896xf32>, vector<2x896xf32> -> vector<18x896xf32>
    %29 = tpu.concatenate %27, %28 in 0 : vector<32x896xf32>, vector<18x896xf32> -> vector<50x896xf32>
    %cst = arith.constant dense<0.000000e+00> : vector<12x896xf32>
    %30 = tpu.matmul %1, %29, %cst {dimension_numbers = #tpu.dot_dimension_numbers<[1], [0], [0], [1], [0, 0, 1, 1], [], []>} : vector<12x50xf32>, vector<50x896xf32>, vector<12x896xf32> -> vector<12x896xf32>
    %c0_3 = arith.constant 0 : index
    %c0_4 = arith.constant 0 : index
    %31 = vector.load %arg3[%c0_3, %c0_4] : memref<12x1xf32, #tpu.memory_space<vmem>>, vector<12x1xf32>
    %32 = vector.broadcast %31 : vector<12x1xf32> to vector<12x896xf32>
    %33 = arith.addf %30, %32 : vector<12x896xf32>
    %cst_5 = arith.constant 0.000000e+00 : f32
    %34 = vector.broadcast %cst_5 : f32 to vector<12x896xf32>
    %35 = arith.maximumf %33, %34 : vector<12x896xf32>
    %c0_6 = arith.constant 0 : index
    %c0_7 = arith.constant 0 : index
    %36 = vector.load %arg4[%c0_6, %c0_7] : memref<896x200xf32, #tpu.memory_space<vmem>>, vector<896x200xf32>
    %cst_8 = arith.constant dense<0.000000e+00> : vector<12x200xf32>
    %37 = tpu.matmul %35, %36, %cst_8 {dimension_numbers = #tpu.dot_dimension_numbers<[1], [0], [0], [1], [0, 0, 1, 1], [], []>} : vector<12x896xf32>, vector<896x200xf32>, vector<12x200xf32> -> vector<12x200xf32>
    %c0_9 = arith.constant 0 : index
    %c0_10 = arith.constant 0 : index
    %38 = vector.load %arg5[%c0_9, %c0_10] : memref<32x300xf32, #tpu.memory_space<vmem>>, vector<32x300xf32>
    %39 = vector.extract_strided_slice %37 {offsets = [0, 0], sizes = [12, 140], strides = [1, 1]} : vector<12x200xf32> to vector<12x140xf32>
    %40 = vector.extract_strided_slice %37 {offsets = [0, 1], sizes = [12, 140], strides = [1, 1]} : vector<12x200xf32> to vector<12x140xf32>
    %41 = vector.extract_strided_slice %37 {offsets = [0, 2], sizes = [12, 140], strides = [1, 1]} : vector<12x200xf32> to vector<12x140xf32>
    %42 = vector.extract_strided_slice %37 {offsets = [0, 3], sizes = [12, 140], strides = [1, 1]} : vector<12x200xf32> to vector<12x140xf32>
    %43 = vector.extract_strided_slice %37 {offsets = [0, 4], sizes = [12, 140], strides = [1, 1]} : vector<12x200xf32> to vector<12x140xf32>
    %44 = vector.extract_strided_slice %37 {offsets = [0, 14], sizes = [12, 140], strides = [1, 1]} : vector<12x200xf32> to vector<12x140xf32>
    %45 = vector.extract_strided_slice %37 {offsets = [0, 15], sizes = [12, 140], strides = [1, 1]} : vector<12x200xf32> to vector<12x140xf32>
    %46 = vector.extract_strided_slice %37 {offsets = [0, 16], sizes = [12, 140], strides = [1, 1]} : vector<12x200xf32> to vector<12x140xf32>
    %47 = vector.extract_strided_slice %37 {offsets = [0, 17], sizes = [12, 140], strides = [1, 1]} : vector<12x200xf32> to vector<12x140xf32>
    %48 = vector.extract_strided_slice %37 {offsets = [0, 18], sizes = [12, 140], strides = [1, 1]} : vector<12x200xf32> to vector<12x140xf32>
    %49 = vector.extract_strided_slice %37 {offsets = [0, 28], sizes = [12, 140], strides = [1, 1]} : vector<12x200xf32> to vector<12x140xf32>
    %50 = vector.extract_strided_slice %37 {offsets = [0, 29], sizes = [12, 140], strides = [1, 1]} : vector<12x200xf32> to vector<12x140xf32>
    %51 = vector.extract_strided_slice %37 {offsets = [0, 30], sizes = [12, 140], strides = [1, 1]} : vector<12x200xf32> to vector<12x140xf32>
    %52 = vector.extract_strided_slice %37 {offsets = [0, 31], sizes = [12, 140], strides = [1, 1]} : vector<12x200xf32> to vector<12x140xf32>
    %53 = vector.extract_strided_slice %37 {offsets = [0, 32], sizes = [12, 140], strides = [1, 1]} : vector<12x200xf32> to vector<12x140xf32>
    %54 = vector.extract_strided_slice %37 {offsets = [0, 42], sizes = [12, 140], strides = [1, 1]} : vector<12x200xf32> to vector<12x140xf32>
    %55 = vector.extract_strided_slice %37 {offsets = [0, 43], sizes = [12, 140], strides = [1, 1]} : vector<12x200xf32> to vector<12x140xf32>
    %56 = vector.extract_strided_slice %37 {offsets = [0, 44], sizes = [12, 140], strides = [1, 1]} : vector<12x200xf32> to vector<12x140xf32>
    %57 = vector.extract_strided_slice %37 {offsets = [0, 45], sizes = [12, 140], strides = [1, 1]} : vector<12x200xf32> to vector<12x140xf32>
    %58 = vector.extract_strided_slice %37 {offsets = [0, 46], sizes = [12, 140], strides = [1, 1]} : vector<12x200xf32> to vector<12x140xf32>
    %59 = vector.extract_strided_slice %37 {offsets = [0, 56], sizes = [12, 140], strides = [1, 1]} : vector<12x200xf32> to vector<12x140xf32>
    %60 = vector.extract_strided_slice %37 {offsets = [0, 57], sizes = [12, 140], strides = [1, 1]} : vector<12x200xf32> to vector<12x140xf32>
    %61 = vector.extract_strided_slice %37 {offsets = [0, 58], sizes = [12, 140], strides = [1, 1]} : vector<12x200xf32> to vector<12x140xf32>
    %62 = vector.extract_strided_slice %37 {offsets = [0, 59], sizes = [12, 140], strides = [1, 1]} : vector<12x200xf32> to vector<12x140xf32>
    %63 = vector.extract_strided_slice %37 {offsets = [0, 60], sizes = [12, 140], strides = [1, 1]} : vector<12x200xf32> to vector<12x140xf32>
    %64 = tpu.concatenate %39, %40, %41, %42, %43, %44, %45, %46, %47, %48, %49, %50, %51, %52, %53, %54 in 0 : vector<12x140xf32>, vector<12x140xf32>, vector<12x140xf32>, vector<12x140xf32>, vector<12x140xf32>, vector<12x140xf32>, vector<12x140xf32>, vector<12x140xf32>, vector<12x140xf32>, vector<12x140xf32>, vector<12x140xf32>, vector<12x140xf32>, vector<12x140xf32>, vector<12x140xf32>, vector<12x140xf32>, vector<12x140xf32> -> vector<192x140xf32>
    %65 = tpu.concatenate %55, %56, %57, %58, %59, %60, %61, %62, %63 in 0 : vector<12x140xf32>, vector<12x140xf32>, vector<12x140xf32>, vector<12x140xf32>, vector<12x140xf32>, vector<12x140xf32>, vector<12x140xf32>, vector<12x140xf32>, vector<12x140xf32> -> vector<108x140xf32>
    %66 = tpu.concatenate %64, %65 in 0 : vector<192x140xf32>, vector<108x140xf32> -> vector<300x140xf32>
    %cst_11 = arith.constant dense<0.000000e+00> : vector<32x140xf32>
    %67 = tpu.matmul %38, %66, %cst_11 {dimension_numbers = #tpu.dot_dimension_numbers<[1], [0], [0], [1], [0, 0, 1, 1], [], []>} : vector<32x300xf32>, vector<300x140xf32>, vector<32x140xf32> -> vector<32x140xf32>
    %c0_12 = arith.constant 0 : index
    %c0_13 = arith.constant 0 : index
    %68 = vector.load %arg6[%c0_12, %c0_13] : memref<32x1xf32, #tpu.memory_space<vmem>>, vector<32x1xf32>
    %69 = vector.broadcast %68 : vector<32x1xf32> to vector<32x140xf32>
    %70 = arith.addf %67, %69 : vector<32x140xf32>
    %cst_14 = arith.constant 0.000000e+00 : f32
    %71 = vector.broadcast %cst_14 : f32 to vector<32x140xf32>
    %72 = arith.maximumf %70, %71 : vector<32x140xf32>
    %c0_15 = arith.constant 0 : index
    %c0_16 = arith.constant 0 : index
    %73 = vector.load %arg7[%c0_15, %c0_16] : memref<140x25xf32, #tpu.memory_space<vmem>>, vector<140x25xf32>
    %cst_17 = arith.constant dense<0.000000e+00> : vector<32x25xf32>
    %74 = tpu.matmul %72, %73, %cst_17 {dimension_numbers = #tpu.dot_dimension_numbers<[1], [0], [0], [1], [0, 0, 1, 1], [], []>} : vector<32x140xf32>, vector<140x25xf32>, vector<32x25xf32> -> vector<32x25xf32>
    %75 = vector.extract_strided_slice %74 {offsets = [0, 0], sizes = [2, 25], strides = [1, 1]} : vector<32x25xf32> to vector<2x25xf32>
    %76 = vector.extract_strided_slice %74 {offsets = [2, 0], sizes = [2, 25], strides = [1, 1]} : vector<32x25xf32> to vector<2x25xf32>
    %77 = vector.extract_strided_slice %74 {offsets = [4, 0], sizes = [2, 25], strides = [1, 1]} : vector<32x25xf32> to vector<2x25xf32>
    %78 = vector.extract_strided_slice %74 {offsets = [6, 0], sizes = [2, 25], strides = [1, 1]} : vector<32x25xf32> to vector<2x25xf32>
    %79 = vector.extract_strided_slice %74 {offsets = [8, 0], sizes = [2, 25], strides = [1, 1]} : vector<32x25xf32> to vector<2x25xf32>
    %80 = vector.extract_strided_slice %74 {offsets = [10, 0], sizes = [2, 25], strides = [1, 1]} : vector<32x25xf32> to vector<2x25xf32>
    %81 = vector.extract_strided_slice %74 {offsets = [12, 0], sizes = [2, 25], strides = [1, 1]} : vector<32x25xf32> to vector<2x25xf32>
    %82 = vector.extract_strided_slice %74 {offsets = [14, 0], sizes = [2, 25], strides = [1, 1]} : vector<32x25xf32> to vector<2x25xf32>
    %83 = vector.extract_strided_slice %74 {offsets = [16, 0], sizes = [2, 25], strides = [1, 1]} : vector<32x25xf32> to vector<2x25xf32>
    %84 = vector.extract_strided_slice %74 {offsets = [18, 0], sizes = [2, 25], strides = [1, 1]} : vector<32x25xf32> to vector<2x25xf32>
    %85 = vector.extract_strided_slice %74 {offsets = [20, 0], sizes = [2, 25], strides = [1, 1]} : vector<32x25xf32> to vector<2x25xf32>
    %86 = vector.extract_strided_slice %74 {offsets = [22, 0], sizes = [2, 25], strides = [1, 1]} : vector<32x25xf32> to vector<2x25xf32>
    %87 = vector.extract_strided_slice %74 {offsets = [24, 0], sizes = [2, 25], strides = [1, 1]} : vector<32x25xf32> to vector<2x25xf32>
    %88 = vector.extract_strided_slice %74 {offsets = [26, 0], sizes = [2, 25], strides = [1, 1]} : vector<32x25xf32> to vector<2x25xf32>
    %89 = vector.extract_strided_slice %74 {offsets = [28, 0], sizes = [2, 25], strides = [1, 1]} : vector<32x25xf32> to vector<2x25xf32>
    %90 = vector.extract_strided_slice %74 {offsets = [30, 0], sizes = [2, 25], strides = [1, 1]} : vector<32x25xf32> to vector<2x25xf32>
    %91 = tpu.concatenate %75, %76, %77, %78, %79, %80, %81, %82, %83, %84, %85, %86, %87, %88, %89, %90 in 1 : vector<2x25xf32>, vector<2x25xf32>, vector<2x25xf32>, vector<2x25xf32>, vector<2x25xf32>, vector<2x25xf32>, vector<2x25xf32>, vector<2x25xf32>, vector<2x25xf32>, vector<2x25xf32>, vector<2x25xf32>, vector<2x25xf32>, vector<2x25xf32>, vector<2x25xf32>, vector<2x25xf32>, vector<2x25xf32> -> vector<2x400xf32>
    %c0_18 = arith.constant 0 : index
    %c0_19 = arith.constant 0 : index
    %92 = vector.load %arg8[%c0_18, %c0_19] : memref<400x120xf32, #tpu.memory_space<vmem>>, vector<400x120xf32>
    %cst_20 = arith.constant dense<0.000000e+00> : vector<2x120xf32>
    %93 = tpu.matmul %91, %92, %cst_20 {dimension_numbers = #tpu.dot_dimension_numbers<[1], [0], [0], [1], [0, 0, 1, 1], [], []>} : vector<2x400xf32>, vector<400x120xf32>, vector<2x120xf32> -> vector<2x120xf32>
    %c0_21 = arith.constant 0 : index
    %c0_22 = arith.constant 0 : index
    %94 = vector.load %arg9[%c0_21, %c0_22] : memref<1x120xf32, #tpu.memory_space<vmem>>, vector<1x120xf32>
    %95 = vector.broadcast %94 : vector<1x120xf32> to vector<2x120xf32>
    %96 = arith.addf %93, %95 : vector<2x120xf32>
    %cst_23 = arith.constant 0.000000e+00 : f32
    %97 = vector.broadcast %cst_23 : f32 to vector<2x120xf32>
    %98 = arith.maximumf %96, %97 : vector<2x120xf32>
    %c0_24 = arith.constant 0 : index
    %c0_25 = arith.constant 0 : index
    %99 = vector.load %arg10[%c0_24, %c0_25] : memref<120x84xf32, #tpu.memory_space<vmem>>, vector<120x84xf32>
    %cst_26 = arith.constant dense<0.000000e+00> : vector<2x84xf32>
    %100 = tpu.matmul %98, %99, %cst_26 {dimension_numbers = #tpu.dot_dimension_numbers<[1], [0], [0], [1], [0, 0, 1, 1], [], []>} : vector<2x120xf32>, vector<120x84xf32>, vector<2x84xf32> -> vector<2x84xf32>
    %c0_27 = arith.constant 0 : index
    %c0_28 = arith.constant 0 : index
    %101 = vector.load %arg11[%c0_27, %c0_28] : memref<1x84xf32, #tpu.memory_space<vmem>>, vector<1x84xf32>
    %102 = vector.broadcast %101 : vector<1x84xf32> to vector<2x84xf32>
    %103 = arith.addf %100, %102 : vector<2x84xf32>
    %c0_29 = arith.constant 0 : index
    %c0_30 = arith.constant 0 : index
    %104 = vector.load %arg12[%c0_29, %c0_30] : memref<84x10xf32, #tpu.memory_space<vmem>>, vector<84x10xf32>
    %cst_31 = arith.constant dense<0.000000e+00> : vector<2x10xf32>
    %105 = tpu.matmul %103, %104, %cst_31 {dimension_numbers = #tpu.dot_dimension_numbers<[1], [0], [0], [1], [0, 0, 1, 1], [], []>} : vector<2x84xf32>, vector<84x10xf32>, vector<2x10xf32> -> vector<2x10xf32>
    %c0_32 = arith.constant 0 : index
    %c0_33 = arith.constant 0 : index
    %106 = vector.load %arg13[%c0_32, %c0_33] : memref<1x10xf32, #tpu.memory_space<vmem>>, vector<1x10xf32>
    %107 = vector.broadcast %106 : vector<1x10xf32> to vector<2x10xf32>
    %108 = arith.addf %105, %107 : vector<2x10xf32>
    %c0_34 = arith.constant 0 : index
    %c0_35 = arith.constant 0 : index
    %109 = vector.load %arg14[%c0_34, %c0_35] : memref<2x10xf32, #tpu.memory_space<vmem>>, vector<2x10xf32>
    tpu.vector_store %arg14[%c0_34, %c0_35], %108 {strides = array<i32>} : memref<2x10xf32, #tpu.memory_space<vmem>>, vector<2x10xf32>,
    return
  }
  func.func @transform_0(%arg0: i32) -> (i32, i32) {
    %c0_i32 = arith.constant 0 : i32
    %c0_i32_0 = arith.constant 0 : i32
    return %arg0, %c0_i32 : i32, i32
  }
  func.func @transform_1(%arg0: i32) -> (i32, i32) {
    %c0_i32 = arith.constant 0 : i32
    %c0_i32_0 = arith.constant 0 : i32
    %c0_i32_1 = arith.constant 0 : i32
    return %c0_i32, %c0_i32_0 : i32, i32
  }
  func.func @transform_2(%arg0: i32) -> (i32, i32) {
    %c0_i32 = arith.constant 0 : i32
    %c0_i32_0 = arith.constant 0 : i32
    %c0_i32_1 = arith.constant 0 : i32
    return %c0_i32, %c0_i32_0 : i32, i32
  }
  func.func @transform_3(%arg0: i32) -> (i32, i32) {
    %c0_i32 = arith.constant 0 : i32
    %c0_i32_0 = arith.constant 0 : i32
    %c0_i32_1 = arith.constant 0 : i32
    return %c0_i32, %c0_i32_0 : i32, i32
  }
  func.func @transform_4(%arg0: i32) -> (i32, i32) {
    %c0_i32 = arith.constant 0 : i32
    %c0_i32_0 = arith.constant 0 : i32
    %c0_i32_1 = arith.constant 0 : i32
    return %c0_i32, %c0_i32_0 : i32, i32
  }
  func.func @transform_5(%arg0: i32) -> (i32, i32) {
    %c0_i32 = arith.constant 0 : i32
    %c0_i32_0 = arith.constant 0 : i32
    %c0_i32_1 = arith.constant 0 : i32
    return %c0_i32, %c0_i32_0 : i32, i32
  }
  func.func @transform_6(%arg0: i32) -> (i32, i32) {
    %c0_i32 = arith.constant 0 : i32
    %c0_i32_0 = arith.constant 0 : i32
    %c0_i32_1 = arith.constant 0 : i32
    return %c0_i32, %c0_i32_0 : i32, i32
  }
  func.func @transform_7(%arg0: i32) -> (i32, i32) {
    %c0_i32 = arith.constant 0 : i32
    %c0_i32_0 = arith.constant 0 : i32
    %c0_i32_1 = arith.constant 0 : i32
    return %c0_i32, %c0_i32_0 : i32, i32
  }
  func.func @transform_8(%arg0: i32) -> (i32, i32) {
    %c0_i32 = arith.constant 0 : i32
    %c0_i32_0 = arith.constant 0 : i32
    %c0_i32_1 = arith.constant 0 : i32
    return %c0_i32, %c0_i32_0 : i32, i32
  }
  func.func @transform_9(%arg0: i32) -> (i32, i32) {
    %c0_i32 = arith.constant 0 : i32
    %c0_i32_0 = arith.constant 0 : i32
    %c0_i32_1 = arith.constant 0 : i32
    return %c0_i32, %c0_i32_0 : i32, i32
  }
  func.func @transform_10(%arg0: i32) -> (i32, i32) {
    %c0_i32 = arith.constant 0 : i32
    %c0_i32_0 = arith.constant 0 : i32
    %c0_i32_1 = arith.constant 0 : i32
    return %c0_i32, %c0_i32_0 : i32, i32
  }
  func.func @transform_11(%arg0: i32) -> (i32, i32) {
    %c0_i32 = arith.constant 0 : i32
    %c0_i32_0 = arith.constant 0 : i32
    %c0_i32_1 = arith.constant 0 : i32
    return %c0_i32, %c0_i32_0 : i32, i32
  }
  func.func @transform_12(%arg0: i32) -> (i32, i32) {
    %c0_i32 = arith.constant 0 : i32
    %c0_i32_0 = arith.constant 0 : i32
    %c0_i32_1 = arith.constant 0 : i32
    return %c0_i32, %c0_i32_0 : i32, i32
  }
  func.func @transform_13(%arg0: i32) -> (i32, i32) {
    %c0_i32 = arith.constant 0 : i32
    %c0_i32_0 = arith.constant 0 : i32
    return %arg0, %c0_i32 : i32, i32
  }
}

</mosaic_0001>

<bundles_post_ra>
// kernel: lenet5_forward.1
= control target key start
LH: loop header
LB: loop body
LE: loop exit
PB: predicated region body
PF: predicated region fallthrough
CT: control target
= control target key end

     0   :  { %v56_v0 = vlaneseq  ;;  %v3219_v1 = vmov 1983009808   ;;  %s5938_s0 = inlined_call_operand.vmem [shape: f32[2,1152], index: 0, kind: input, shape index: {}]   ;;  %s5939_s1 = inlined_call_operand.vmem [shape: f32[12,50], index: 1, kind: input, shape index: {}]   ;;  %s5940_s2 = inlined_call_operand.vmem [shape: f32[12,1], index: 2, kind: input, shape index: {}]   ;;  %s5941_s3 = inlined_call_operand.vmem [shape: f32[896,200], index: 3, kind: input, shape index: {}]   ;;  %s5942_s4 = inlined_call_operand.vmem [shape: f32[32,300], index: 4, kind: input, shape index: {}]   ;;  %s5943_s5 = inlined_call_operand.vmem [shape: f32[32,1], index: 5, kind: input, shape index: {}]   ;;  %s5944_s6 = inlined_call_operand.vmem [shape: f32[140,25], index: 6, kind: input, shape index: {}]   ;;  %s5945_s7 = inlined_call_operand.vmem [shape: f32[400,120], index: 7, kind: input, shape index: {}]   ;;  %s5946_s8 = inlined_call_operand.vmem [shape: f32[1,120], index: 8, kind: input, shape index: {}]   ;;  %s5947_s9 = inlined_call_operand.vmem [shape: f32[120,84], index: 9, kind: input, shape index: {}]   ;;  %s5948_s10 = inlined_call_operand.vmem [shape: f32[1,84], index: 10, kind: input, shape index: {}]   ;;  %s5949_s11 = inlined_call_operand.vmem [shape: f32[84,10], index: 11, kind: input, shape index: {}]   ;;  %s5950_s12 = inlined_call_operand.vmem [shape: f32[1,10], index: 12, kind: input, shape index: {}]   ;;  %s5951_s13 = inlined_call_operand.hbm [shape: f32[2,10], index: 13, kind: output, shape index: {}]  }
   0x1   :  { %v54_v2 = vunpack.c.l.s4 %v3219_v1 }
   0x2   :  { %18 = vsyncpa [#allocation3], 0  ;;  %v57_v3 = vshrl.u32 %v56_v0, 7  ;;  %v45_v5 = vld [vmem:[%s5938_s0] sm:$0xff]  ;;  %s3220_s27 = smov 96   ;;  %s3221_s28 = smov 97  }
   0x3   :  { %v55_v4 = vunpack.c.0.s8 %v54_v2  ;;  %v52_v7 = vcombine.high %v45_v5, %v45_v5  ;;  %v92_v8 = vcombine.low %v45_v5, %v45_v5  ;;  %s3222_s29 = smov 95   ;;  %s3223_s30 = smov 93   ;;  %v46_v17 = vld [vmem:[%s5938_s0 + $0x8] sm:$0xff]  ;;  %vm350_vm0 = vcmask 760832  }
   0x4   :  { %s3224_s14 = smov 127   ;;  %s3225_s15 = smov 94   ;;  %v101_v18 = vcombine.low %v46_v17, %v46_v17  ;;  %v69_v26 = vcombine.high %v46_v17, %v46_v17  ;;  %vm582_vm1 = vcmask 1041408   ;;  %vm288_vm2 = vcmask 777216  }
   0x5   :  { %v3336_v6 = vsub.s32 %v55_v4, %v57_v3  ;;  %s3226_s16 = smov 126   ;;  %s3227_s19 = smov 125   ;;  %vm590_vm3 = vcmask 1043456   ;;  %vm5977_vm4 = vcmask 785408   ;;  %vm5972_vm5 = vcmask 793600  }
   0x6   :  { %s3228_s20 = smov 62   ;;  %s3229_s21 = smov 61   ;;  %vm598_vm6 = vcmask 1045504   ;;  %vm5976_vm7 = vcmask 769024   ;;  %vm5979_vm8 = vcmask 1039360   ;;  %vm161_vm9 = vcmask 1031168  }
   0x7   :  { %v3339_v9 = vrot.slane %v45_v5, %v3336_v6  ;;  %v3348_v11 = vrot.slane %v52_v7, %v3336_v6  ;;  %v3351_v12 = vrot.slane %v92_v8, %v3336_v6  ;;  %v3427_v20 = vrot.slane %v101_v18, %v3336_v6  ;;  %s3230_s22 = smov 60   ;;  %s3231_s23 = smov 31  }
   0x8   :  { %v3436_v22 = vrot.slane %v46_v17, %v3336_v6  ;;  %v3487_v27 = vrot.slane %v69_v26, %v3336_v6  ;;  %vm5978_vm10 = vcmask 1022976   ;;  %s3232_s24 = smov 92   ;;  %s3233_s25 = smov 32   ;;  %vm829_vm11 = vcmask 252928  }
   0x9   :  { %245 = vrot.lane.b32.xlu0 %v3339_v9, %s3220_s27  ;;  %v3345_v10 = vcombine.high %v3339_v9, %v3339_v9  ;;  %v3359_v13 = vcombine.high %v3351_v12, %v3351_v12  ;;  %v3365_v14 = vcombine.high %v3348_v11, %v3348_v11  ;;  %v3373_v15 = vcombine.low %v3348_v11, %v3348_v11  ;;  %s3234_s18 = smov 64   ;;  %s3236_s26 = smov 63  }
   0xa   :  { %v3395_v16 = vcombine.low %v3339_v9, %v3339_v9  ;;  %v3422_v19 = vcombine.low %v3351_v12, %v3351_v12  ;;  %v3433_v21 = vcombine.high %v3427_v20, %v3427_v20  ;;  %v3444_v23 = vcombine.high %v3436_v22, %v3436_v22  ;;  %s3242_s17 = smov 100  }
   0xb   :  { %247 = vrot.lane.b32.xlu1 %v3345_v10, %s3220_s27  ;;  %v3450_v24 = vcombine.low %v3436_v22, %v3436_v22  ;;  %v3466_v25 = vcombine.low %v3427_v20, %v3427_v20  ;;  %v3497_v28 = vcombine.high %v3487_v27, %v3487_v27  ;;  %v3505_v29 = vcombine.low %v3487_v27, %v3487_v27 }
   0xc   :  { %vm474_vm12 = vcmask 506880   ;;  %vm5975_vm13 = vcmask 498688   ;;  %vm5974_vm14 = vcmask 490496   ;;  %vm5973_vm15 = vcmask 261120  }
   0xd   :  { %675 = vrot.lane.b32.xlu0 %v3348_v11, %s3221_s28  ;;  %5980 = vst [vmem:[#allocation5_spill] sm:$0xff] %v3497_v28 }
   0xf   :  { %673 = vrot.lane.b32.xlu1 %v3345_v10, %s3221_s28 }
  0x11   :  { %243 = vrot.lane.b32.xlu0 %v3359_v13, %s3220_s27 }
  0x13   :  { %677 = vrot.lane.b32.xlu1 %v3365_v14, %s3221_s28 }
  0x15   :  { %274 = vrot.lane.b32.xlu0 %v3339_v9, %s3222_s29 }
  0x17   :  { %276 = vrot.lane.b32.xlu1 %v3373_v15, %s3222_s29 }
  0x19   :  { %278 = vrot.lane.b32.xlu0 %v3348_v11, %s3222_s29 }
  0x1b   :  { %336 = vrot.lane.b32.xlu1 %v3345_v10, %s3223_s30 }
  0x1d   :  { %338 = vrot.lane.b32.xlu0 %v3348_v11, %s3223_s30 }
  0x1f   :  { %340 = vrot.lane.b32.xlu1 %v3365_v14, %s3223_s30 }
  0x21   :  { %112 = vrot.lane.b32.xlu0 %v3359_v13, %s3224_s14 }
  0x23   :  { %114 = vrot.lane.b32.xlu1 %v3339_v9, %s3224_s14 }
  0x25   :  { %116 = vrot.lane.b32.xlu0 %v3345_v10, %s3224_s14 }
  0x27   :  { %305 = vrot.lane.b32.xlu1 %v3351_v12, %s3225_s15 }
  0x29   :  { %307 = vrot.lane.b32.xlu0 %v3395_v16, %s3225_s15 }
  0x2b   :  { %309 = vrot.lane.b32.xlu1 %v3339_v9, %s3225_s15 }
  0x2d   :  { %110 = vrot.lane.b32.xlu0 %v3351_v12, %s3224_s14 }
  0x2f   :  { %147 = vrot.lane.b32.xlu1 %v3339_v9, %s3226_s16 }
  0x31   :  { %149 = vrot.lane.b32.xlu0 %v3373_v15, %s3226_s16 }
  0x33   :  { %151 = vrot.lane.b32.xlu1 %v3348_v11, %s3226_s16 }
  0x35   :  { %145 = vrot.lane.b32.xlu0 %v3395_v16, %s3226_s16 }
  0x37   :  { %180 = vrot.lane.b32.xlu1 %v3351_v12, %s3227_s19 }
  0x39   :  { %182 = vrot.lane.b32.xlu0 %v3395_v16, %s3227_s19 }
  0x3b   :  { %184 = vrot.lane.b32.xlu1 %v3339_v9, %s3227_s19 }
  0x3d   :  { %178 = vrot.lane.b32.xlu0 %v3422_v19, %s3227_s19 }
  0x3f   :  { %249 = vrot.lane.b32.xlu1 %v3427_v20, %s3220_s27 }
  0x41   :  { %251 = vrot.lane.b32.xlu0 %v3433_v21, %s3220_s27 }
  0x43   :  { %679 = vrot.lane.b32.xlu1 %v3436_v22, %s3221_s28 }
  0x45   :  { %681 = vrot.lane.b32.xlu0 %v3444_v23, %s3221_s28 }
  0x47   :  { %280 = vrot.lane.b32.xlu1 %v3450_v24, %s3222_s29 }
  0x49   :  { %282 = vrot.lane.b32.xlu0 %v3436_v22, %s3222_s29 }
  0x4b   :  { %342 = vrot.lane.b32.xlu1 %v3436_v22, %s3223_s30 }
  0x4d   :  { %344 = vrot.lane.b32.xlu0 %v3444_v23, %s3223_s30 }
  0x4f   :  { %118 = vrot.lane.b32.xlu1 %v3427_v20, %s3224_s14 }
  0x51   :  { %120 = vrot.lane.b32.xlu0 %v3433_v21, %s3224_s14 }
  0x53   :  { %311 = vrot.lane.b32.xlu1 %v3466_v25, %s3225_s15 }
  0x55   :  { %313 = vrot.lane.b32.xlu0 %v3427_v20, %s3225_s15 }
  0x57   :  { %153 = vrot.lane.b32.xlu1 %v3450_v24, %s3226_s16 }
  0x59   :  { %155 = vrot.lane.b32.xlu0 %v3436_v22, %s3226_s16 }
  0x5b   :  { %186 = vrot.lane.b32.xlu1 %v3466_v25, %s3227_s19 }
  0x5d   :  { %188 = vrot.lane.b32.xlu0 %v3427_v20, %s3227_s19 }
  0x5f   :  { %255 = vrot.lane.b32.xlu1 %v3444_v23, %s3220_s27 }
  0x61   :  { %253 = vrot.lane.b32.xlu0 %v3436_v22, %s3220_s27 }
  0x63   :  { %462 = vrot.lane.b32.xlu1 %v3348_v11, %s3228_s20 }
  0x65   :  { %460 = vrot.lane.b32.xlu0 %v3345_v10, %s3228_s20 }
  0x67   :  { %493 = vrot.lane.b32.xlu1 %v3339_v9, %s3229_s21 }
  0x69   :  { %491 = vrot.lane.b32.xlu0 %v3359_v13, %s3229_s21 }
  0x6b   :  { %685 = vrot.lane.b32.xlu1 %v3497_v28, %s3221_s28 }
  0x6d   :  { %683 = vrot.lane.b32.xlu0 %v3487_v27, %s3221_s28 }
  0x6f   :  { %284 = vrot.lane.b32.xlu1 %v3505_v29, %s3222_s29 }
  0x71   :  { %286 = vrot.lane.b32.xlu0 %v3487_v27, %s3222_s29 }
  0x73   :  { %346 = vrot.lane.b32.xlu1 %v3487_v27, %s3223_s30 }
  0x75   :  { %348 = vrot.lane.b32.xlu0 %v3497_v28, %s3223_s30 }
  0x77   :  { %458 = vrot.lane.b32.xlu1 %v3339_v9, %s3228_s20 }
  0x79   :  { %489 = vrot.lane.b32.xlu0 %v3351_v12, %s3229_s21 }
  0x7b   :  { %v246_v30 = vpop.permute.xlu0 %245  ;;  %522 = vrot.lane.b32.xlu1 %v3339_v9, %s3230_s22 }
  0x7d   :  { %v3523_v31 = vpop.permute.xlu1 %247  ;;  %524 = vrot.lane.b32.xlu0 %v3373_v15, %s3230_s22 }
  0x7e   :  { %v3585_v58 = vsel %vm5977_vm4, %v246_v30, %v3523_v31 }
  0x7f   :  { %v676_v32 = vpop.permute.xlu0 %675  ;;  %5983 = vst [vmem:[#allocation8_spill] sm:$0xff] %v3585_v58 }
  0x81   :  { %v674_v33 = vpop.permute.xlu1 %673 }
  0x82   :  { %v688_v52 = vsel %vm5972_vm5, %v674_v33, %v676_v32 }
  0x83   :  { %v3527_v34 = vpop.permute.xlu0 %243 }
  0x84   :  { %v3559_v47 = vsel %vm5977_vm4, %v3527_v34, %v246_v30  ;;  %v741_v48 = vsel %vm582_vm1, %v674_v33, %v3527_v34 }
  0x85   :  { %v3529_v35 = vpop.permute.xlu1 %677  ;;  %v742_v57 = vsel %vm582_vm1, %v688_v52, %v3559_v47 }
  0x86   :  { %v689_v53 = vsel %vm5972_vm5, %v676_v32, %v3529_v35 }
  0x87   :  { %v3531_v36 = vpop.permute.xlu0 %274  ;;  %v743_v61 = vsel %vm582_vm1, %v689_v53, %v3585_v58 }
  0x88   :  { %v749_v51 = vsel %vm590_vm3, %v741_v48, %v3531_v36 }
  0x89   :  { %v277_v37 = vpop.permute.xlu1 %276 }
  0x8a   :  { %v3565_v49 = vsel %vm288_vm2, %v3531_v36, %v277_v37 }
  0x8b   :  { %v3533_v38 = vpop.permute.xlu0 %278  ;;  %v750_v60 = vsel %vm590_vm3, %v742_v57, %v3565_v49 }
  0x8c   :  { %v3578_v55 = vsel %vm288_vm2, %v277_v37, %v3533_v38 }
  0x8d   :  { %v3535_v39 = vpop.permute.xlu1 %336  ;;  %5982 = vst [vmem:[#allocation7_spill] sm:$0xff] %v3578_v55  ;;  %v751_v1 = vsel %vm590_vm3, %v743_v61, %v3578_v55 }
  0x8e   :  { %813 = vrot.lane.b32.xlu1 %v3535_v39, %s3231_s23 }
  0x8f   :  { %v339_v40 = vpop.permute.xlu0 %338 }
  0x90   :  { %v3541_v41 = vsel %vm350_vm0, %v3535_v39, %v339_v40 }
  0x91   :  { %v3543_v42 = vpop.permute.xlu1 %340 }
  0x92   :  { %815 = vrot.lane.b32.xlu1 %v3541_v41, %s3231_s23  ;;  %v3549_v43 = vsel %vm350_vm0, %v339_v40, %v3543_v42 }
  0x93   :  { %5981 = vst [vmem:[#allocation6_spill] sm:$0xff] %v3549_v43  ;;  %v3551_v44 = vpop.permute.xlu0 %112  ;;  %817 = vrot.lane.b32.xlu0 %v3549_v43, %s3231_s23 }
  0x95   :  { %v115_v45 = vpop.permute.xlu1 %114 }
  0x96   :  { %v128_v17 = vsel %vm5979_vm8, %v3551_v44, %v115_v45 }
  0x97   :  { %v3555_v46 = vpop.permute.xlu0 %116  ;;  %v584_v32 = vsel %vm582_vm1, %v3345_v10, %v128_v17 }
  0x98   :  { %v129_v30 = vsel %vm5979_vm8, %v115_v45, %v3555_v46 }
  0x99   :  { %v3567_v50 = vpop.permute.xlu1 %305 }
  0x9a   :  { %v757_v54 = vsel %vm598_vm6, %v749_v51, %v3567_v50  ;;  %v585_v51 = vsel %vm582_vm1, %v3348_v11, %v129_v30 }
  0x9b   :  { %v308_v56 = vpop.permute.xlu0 %307  ;;  %797 = vrot.lane.b32.xlu0 %v757_v54, %s3231_s23 }
  0x9c   :  { %v3589_v59 = vsel %vm5976_vm7, %v3567_v50, %v308_v56 }
  0x9d   :  { %v3595_v62 = vpop.permute.xlu1 %309  ;;  %v758_v63 = vsel %vm598_vm6, %v750_v60, %v3589_v59 }
  0x9e   :  { %v3601_v0 = vsel %vm5976_vm7, %v308_v56, %v3595_v62 }
  0x9f   :  { %5984 = vst [vmem:[#allocation9_spill] sm:$0xff] %v3601_v0  ;;  %v111_v2 = vpop.permute.xlu0 %110  ;;  %799 = vrot.lane.b32.xlu0 %v758_v63, %s3231_s23  ;;  %v759_v3 = vsel %vm598_vm6, %v751_v1, %v3601_v0 }
  0xa0   :  { %801 = vrot.lane.b32.xlu1 %v759_v3, %s3231_s23 }
  0xa1   :  { %v148_v4 = vpop.permute.xlu1 %147 }
  0xa3   :  { %v150_v5 = vpop.permute.xlu0 %149 }
  0xa4   :  { %v163_v18 = vsel %vm161_vm9, %v148_v4, %v150_v5 }
  0xa5   :  { %v3609_v7 = vpop.permute.xlu1 %151  ;;  %v592_v48 = vsel %vm590_vm3, %v584_v32, %v163_v18  ;;  %v127_v18 = vsel %vm5979_vm8, %v111_v2, %v3551_v44 }
  0xa6   :  { %v164_v33 = vsel %vm161_vm9, %v150_v5, %v3609_v7 }
  0xa7   :  { %v146_v8 = vpop.permute.xlu0 %145  ;;  %v593_v54 = vsel %vm590_vm3, %v585_v51, %v164_v33 }
  0xa8   :  { %v162_v30 = vsel %vm161_vm9, %v146_v8, %v148_v4 }
  0xa9   :  { %v181_v26 = vpop.permute.xlu1 %180 }
  0xab   :  { %v183_v37 = vpop.permute.xlu0 %182 }
  0xac   :  { %v196_v40 = vsel %vm5978_vm10, %v181_v26, %v183_v37 }
  0xad   :  { %v3624_v52 = vpop.permute.xlu1 %184  ;;  %v3627_v53 = vsel %vm598_vm6, %v592_v48, %v196_v40  ;;  %v47_v40 = vld [vmem:[%s5938_s0 + $0x10] sm:$0x3]  ;;  %s3235_s0 = smov 124  }
  0xae   :  { %v197_v45 = vsel %vm5978_vm10, %v183_v37, %v3624_v52  ;;  %783 = vrot.lane.b32.xlu1 %v3627_v53, %s3231_s23 }
  0xaf   :  { %v179_v56 = vpop.permute.xlu0 %178  ;;  %v3635_v57 = vsel %vm598_vm6, %v593_v54, %v197_v45  ;;  %v703_v45 = vcombine.low %v47_v40, %v47_v40 }
  0xb0   :  { %5985 = vst [vmem:[#allocation10_spill] sm:$0xff] %v3635_v57  ;;  %785 = vrot.lane.b32.xlu0 %v3635_v57, %s3231_s23  ;;  %v195_v33 = vsel %vm5978_vm10, %v179_v56, %v181_v26 }
  0xb1   :  { %v3639_v60 = vpop.permute.xlu1 %249  ;;  %v710_v56 = vrot.slane %v703_v45, %v3336_v6 }
  0xb2   :  { %122 = vrot.lane.b32.xlu1 %v3436_v22, %s3224_s14 }
  0xb3   :  { %v3643_v61 = vpop.permute.xlu0 %251  ;;  %v729_v55 = vcombine.low %v710_v56, %v710_v56 }
  0xb4   :  { %124 = vrot.lane.b32.xlu0 %v3444_v23, %s3224_s14 }
  0xb5   :  { %v3647_v63 = vpop.permute.xlu1 %679 }
  0xb6   :  { %315 = vrot.lane.b32.xlu1 %v3450_v24, %s3225_s15 }
  0xb7   :  { %v3651_v1 = vpop.permute.xlu0 %681 }
  0xb8   :  { %317 = vrot.lane.b32.xlu0 %v3436_v22, %s3225_s15  ;;  %v691_v58 = vsel %vm5972_vm5, %v3647_v63, %v3651_v1 }
  0xb9   :  { %v3655_v3 = vpop.permute.xlu1 %280 }
  0xba   :  { %367 = vrot.lane.b32.xlu1 %v3359_v13, %s3232_s24  ;;  %v583_v13 = vsel %vm582_vm1, %v3339_v9, %v127_v18 }
  0xbb   :  { %v3659_v5 = vpop.permute.xlu0 %282  ;;  %v591_v44 = vsel %vm590_vm3, %v583_v13, %v162_v30  ;;  %v717_v13 = vrot.slane %v47_v40, %v3336_v6 }
  0xbc   :  { %369 = vrot.lane.b32.xlu0 %v3339_v9, %s3232_s24  ;;  %v3683_v2 = vsel %vm598_vm6, %v591_v44, %v195_v33 }
  0xbd   :  { %v3663_v17 = vpop.permute.xlu1 %342  ;;  %v723_v57 = vcombine.low %v717_v13, %v717_v13 }
  0xbe   :  { %520 = vrot.lane.b32.xlu1 %v3395_v16, %s3230_s22 }
  0xbf   :  { %v3670_v32 = vpop.permute.xlu0 %344 }
  0xc0   :  { %553 = vrot.lane.b32.xlu0 %v3351_v12, %s3233_s25 }
  0xc1   :  { %v3677_v37 = vpop.permute.xlu1 %118 }
  0xc2   :  { %555 = vrot.lane.b32.xlu1 %v3395_v16, %s3233_s25 }
  0xc3   :  { %v3685_v4 = vpop.permute.xlu0 %120 }
  0xc4   :  { %781 = vrot.lane.b32.xlu0 %v3683_v2, %s3231_s23 }
  0xc5   :  { %v3689_v8 = vpop.permute.xlu1 %311 }
  0xc6   :  { %157 = vrot.lane.b32.xlu1 %v3505_v29, %s3226_s16 }
  0xc7   :  { %v3693_v26 = vpop.permute.xlu0 %313 }
  0xc8   :  { %159 = vrot.lane.b32.xlu0 %v3487_v27, %s3226_s16 }
  0xc9   :  { %v3700_v48 = vpop.permute.xlu1 %153 }
  0xca   :  { %334 = vrot.lane.b32.xlu1 %v3339_v9, %s3223_s30 }
  0xcb   :  { %v3704_v51 = vpop.permute.xlu0 %155 }
  0xcc   :  { %365 = vrot.lane.b32.xlu0 %v3351_v12, %s3232_s24 }
  0xcd   :  { %v3710_v54 = vpop.permute.xlu1 %186 }
  0xce   :  { %398 = vrot.lane.b32.xlu1 %v3339_v9, %s3234_s18 }
  0xcf   :  { %v3715_v18 = vpop.permute.xlu0 %188 }
  0xd0   :  { %400 = vrot.lane.b32.xlu0 %v3373_v15, %s3234_s18 }
  0xd1   :  { %v3720_v30 = vpop.permute.xlu1 %255 }
  0xd2   :  { %551 = vrot.lane.b32.xlu1 %v3422_v19, %s3233_s25 }
  0xd3   :  { %v3724_v33 = vpop.permute.xlu0 %253 }
  0xd4   :  { %718 = vrot.lane.b32.xlu0 %v710_v56, %s3220_s27  ;;  %v3784_v56 = vsel %vm288_vm2, %v3533_v38, %v3655_v3  ;;  %v3806_v38 = vsel %vm5976_vm7, %v3595_v62, %v3689_v8 }
  0xd5   :  { %v3730_v15 = vpop.permute.xlu1 %462  ;;  %5988 = vst [vmem:[#allocation13_spill] sm:$0xff] %v3806_v38 }
  0xd6   :  { %190 = vrot.lane.b32.xlu1 %v3450_v24, %s3227_s19 }
  0xd7   :  { %v3735_v44 = vpop.permute.xlu0 %460 }
  0xd8   :  { %192 = vrot.lane.b32.xlu0 %v3436_v22, %s3227_s19 }
  0xd9   :  { %v3741_v45 = vpop.permute.xlu1 %493 }
  0xda   :  { %212 = vrot.lane.b32.xlu1 %v3345_v10, %s3235_s0 }
  0xdb   :  { %v3745_v0 = vpop.permute.xlu0 %491 }
  0xdc   :  { %214 = vrot.lane.b32.xlu0 %v3348_v11, %s3235_s0 }
  0xdd   :  { %v3749_v6 = vpop.permute.xlu1 %685 }
  0xde   :  { %396 = vrot.lane.b32.xlu1 %v3395_v16, %s3234_s18 }
  0xdf   :  { %v3753_v40 = vpop.permute.xlu0 %683 }
  0xe0   :  { %429 = vrot.lane.b32.xlu0 %v3351_v12, %s3236_s26 }
  0xe1   :  { %v3757_v43 = vpop.permute.xlu1 %284 }
  0xe2   :  { %431 = vrot.lane.b32.xlu1 %v3395_v16, %s3236_s26 }
  0xe4   :  { %724 = vrot.lane.b32.xlu0 %v723_v57, %s3222_s29  ;;  %v3762_v57 = vpop.permute.xlu0 %286 }
  0xe6   :  { %735 = vrot.lane.b32.xlu1 %v717_v13, %s3223_s30  ;;  %v3767_v13 = vsel %vm5977_vm4, %v3639_v60, %v3643_v61  ;;  %s3240_s30 = smov 114  }
  0xe7   :  { %5986 = vst [vmem:[#allocation11_spill] sm:$0xff] %v3767_v13  ;;  %v745_v28 = vsel %vm582_vm1, %v691_v58, %v3767_v13 }
  0xe8   :  { %210 = vrot.lane.b32.xlu0 %v3339_v9, %s3235_s0 }
  0xea   :  { %241 = vrot.lane.b32.xlu1 %v3351_v12, %s3220_s27  ;;  %v3774_v12 = vpop.permute.xlu1 %346 }
  0xec   :  { %427 = vrot.lane.b32.xlu0 %v3422_v19, %s3236_s26 }
  0xee   :  { %730 = vrot.lane.b32.xlu1 %v729_v55, %s3225_s15  ;;  %v690_v55 = vsel %vm5972_vm5, %v3529_v35, %v3647_v63  ;;  %v3796_v35 = vsel %vm350_vm0, %v3543_v42, %v3663_v17  ;;  %v3812_v63 = vpop.permute.xlu0 %348  ;;  %v3817_v42 = vsel %vm350_vm0, %v3663_v17, %v3670_v32  ;;  %v3824_v62 = vpop.permute.xlu1 %458 }
  0xef   :  { %5989 = vst [vmem:[#allocation14_spill] sm:$0xff] %v3817_v42 }
  0xf0   :  { %272 = vrot.lane.b32.xlu0 %v3395_v16, %s3222_s29  ;;  %v3791_v16 = vsel %vm288_vm2, %v3655_v3, %v3659_v5  ;;  %s3253_s29 = smov 75  }
  0xf1   :  { %5987 = vst [vmem:[#allocation12_spill] sm:$0xff] %v3791_v16  ;;  %v753_v3 = vsel %vm590_vm3, %v745_v28, %v3791_v16  ;;  %v131_v28 = vsel %vm5979_vm8, %v3677_v37, %v3685_v4  ;;  %v198_v16 = vsel %vm5978_vm10, %v3624_v52, %v3710_v54 }
  0xf2   :  { %303 = vrot.lane.b32.xlu1 %v3422_v19, %s3225_s15  ;;  %v3801_v19 = vsel %vm5977_vm4, %v3523_v31, %v3639_v60  ;;  %v3822_v31 = vsel %vm5976_vm7, %v3689_v8, %v3693_v26  ;;  %v3840_v13 = vpop.permute.xlu1 %522 }
  0xf3   :  { %v744_v58 = vsel %vm582_vm1, %v690_v55, %v3801_v19  ;;  %5990 = vst [vmem:[#allocation15_spill] sm:$0xff] %v3822_v31  ;;  %v761_v8 = vsel %vm598_vm6, %v753_v3, %v3822_v31  ;;  %v3838_v55 = vpop.permute.xlu0 %489  ;;  %v130_v3 = vsel %vm5979_vm8, %v3555_v46, %v3677_v37  ;;  %v166_v31 = vsel %vm161_vm9, %v3700_v48, %v3704_v51 }
  0xf4   :  { %819 = vrot.lane.b32.xlu0 %v3796_v35, %s3231_s23  ;;  %v752_v60 = vsel %vm590_vm3, %v744_v58, %v3784_v56  ;;  %v586_v37 = vsel %vm582_vm1, %v3365_v14, %v130_v3 }
  0xf5   :  { %v760_v17 = vsel %vm598_vm6, %v752_v60, %v3806_v38 }
  0xf6   :  { %821 = vrot.lane.b32.xlu1 %v3817_v42, %s3231_s23 }
  0xf7   :  { %v3851_v60 = vpop.permute.xlu0 %524 }
  0xf8   :  { %803 = vrot.lane.b32.xlu0 %v760_v17, %s3231_s23  ;;  %v165_v17 = vsel %vm161_vm9, %v3609_v7, %v3700_v48 }
  0xf9   :  { %v594_v52 = vsel %vm590_vm3, %v586_v37, %v165_v17 }
  0xfa   :  { %805 = vrot.lane.b32.xlu1 %v761_v8, %s3231_s23  ;;  %v587_v8 = vsel %vm582_vm1, %v3436_v22, %v131_v28  ;;  %v199_v28 = vsel %vm5978_vm10, %v3710_v54, %v3715_v18  ;;  %v3886_v3 = vsel %vm598_vm6, %v594_v52, %v198_v16 }
  0xfb   :  { %v595_v42 = vsel %vm590_vm3, %v587_v8, %v166_v31 }
  0xfc   :  { %464 = vrot.lane.b32.xlu0 %v3365_v14, %s3228_s20  ;;  %v3893_v54 = vsel %vm598_vm6, %v595_v42, %v199_v28 }
  0xfd   :  { %5991 = vst [vmem:[#allocation16_spill] sm:$0xff] %v3893_v54 }
  0xfe   :  { %466 = vrot.lane.b32.xlu1 %v3436_v22, %s3228_s20 }
 0x100   :  { %495 = vrot.lane.b32.xlu0 %v3345_v10, %s3229_s21  ;;  %v814_v58 = vpop.permute.xlu1 %813 }
 0x102   :  { %497 = vrot.lane.b32.xlu1 %v3427_v20, %s3229_s21 }
 0x104   :  { %526 = vrot.lane.b32.xlu0 %v3348_v11, %s3230_s22  ;;  %v816_v46 = vpop.permute.xlu1 %815 }
 0x105   :  { %v3873_v7 = vpop.permute.xlu0 %817  ;;  %v844_v38 = vsel %vm829_vm11, %v814_v58, %v816_v46  ;;  %v5964_v58 = vmov 0.0  }
 0x106   :  { %528 = vrot.lane.b32.xlu1 %v3450_v24, %s3230_s22  ;;  %v845_v48 = vsel %vm829_vm11, %v816_v46, %v3873_v7  ;;  %962 = vmatprep.mubr.f32.mxu0 %v5964_v58  ;;  %v3955_v46 = vsel %vm5977_vm4, %v3724_v33, %v3720_v30 }
 0x107   :  { %2966 = vmatprep.subr.msk.mxu0 %vm582_vm1, %v845_v48  ;;  %1039 = vmatprep.mubr.f32.mxu1 %v5964_v58  ;;  %5993 = vst [vmem:[#allocation18_spill] sm:$0xff] %v3955_v46 }
 0x108   :  { %787 = vrot.lane.b32.xlu0 %v3886_v3, %s3231_s23  ;;  %2967 = vmatpush1.msk.msra.mxu0 %vm582_vm1, %v844_v38 }
 0x10a   :  { %789 = vrot.lane.b32.xlu1 %v3893_v54, %s3231_s23 }
 0x10c   :  { %371 = vrot.lane.b32.xlu0 %v3345_v10, %s3232_s24 }
 0x10d   :  { %v798_v31 = vpop.permute.xlu0 %797 }
 0x10e   :  { %373 = vrot.lane.b32.xlu1 %v3427_v20, %s3232_s24 }
 0x110   :  { %557 = vrot.lane.b32.xlu0 %v3339_v9, %s3233_s25 }
 0x111   :  { %v800_v16 = vpop.permute.xlu0 %799 }
 0x112   :  { %559 = vrot.lane.b32.xlu1 %v3466_v25, %s3233_s25  ;;  %v3905_v38 = vpop.permute.xlu1 %801  ;;  %v837_v10 = vsel %vm829_vm11, %v798_v31, %v800_v16 }
 0x113   :  { %v838_v42 = vsel %vm829_vm11, %v800_v16, %v3905_v38 }
 0x114   :  { %402 = vrot.lane.b32.xlu0 %v3348_v11, %s3234_s18  ;;  %918 = vmatprep.subr.mxu0 %v838_v42  ;;  %v3927_v11 = vsel %vm350_vm0, %v3670_v32, %v3774_v12 }
 0x115   :  { %919 = vmatpush1.msra.mxu0 %v837_v10 }
 0x116   :  { %404 = vrot.lane.b32.xlu1 %v3450_v24, %s3234_s18 }
 0x118   :  { %216 = vrot.lane.b32.xlu0 %v3365_v14, %s3235_s0  ;;  %v3934_v14 = vsel %vm350_vm0, %v3774_v12, %v3812_v63 }
 0x119   :  { %5992 = vst [vmem:[#allocation17_spill] sm:$0xff] %v3934_v14 }
 0x11a   :  { %218 = vrot.lane.b32.xlu1 %v3436_v22, %s3235_s0 }
 0x11c   :  { %433 = vrot.lane.b32.xlu0 %v3339_v9, %s3236_s26  ;;  %v3943_v9 = vsel %vm5977_vm4, %v3643_v61, %v3724_v33  ;;  %v693_v61 = vsel %vm5972_vm5, %v3753_v40, %v3749_v6  ;;  %v3974_v33 = vsel %vm288_vm2, %v3757_v43, %v3762_v57 }
 0x11d   :  { %v747_v48 = vsel %vm582_vm1, %v693_v61, %v3955_v46  ;;  %5994 = vst [vmem:[#allocation19_spill] sm:$0xff] %v3974_v33  ;;  %v476_v61 = vsel %vm474_vm12, %v3735_v44, %v3730_v15 }
 0x11e   :  { %435 = vrot.lane.b32.xlu1 %v3466_v25, %s3236_s26  ;;  %v692_v25 = vsel %vm5972_vm5, %v3651_v1, %v3753_v40  ;;  %v3965_v1 = vsel %vm288_vm2, %v3659_v5, %v3757_v43  ;;  %v755_v43 = vsel %vm590_vm3, %v747_v48, %v3974_v33  ;;  %vm381_vm5 = vcmask 752640  }
 0x11f   :  { %v746_v37 = vsel %vm582_vm1, %v692_v25, %v3943_v9 }
 0x120   :  { %823 = vrot.lane.b32.xlu0 %v3927_v11, %s3231_s23  ;;  %v784_v17 = vpop.permute.xlu1 %783  ;;  %v754_v31 = vsel %vm590_vm3, %v746_v37, %v3965_v1  ;;  %v507_v37 = vsel %vm5975_vm13, %v3745_v0, %v3741_v45 }
 0x122   :  { %v3936_v8 = vpop.permute.xlu0 %785  ;;  %825 = vrot.lane.b32.xlu1 %v3934_v14, %s3231_s23 }
 0x123   :  { %v831_v32 = vsel %vm829_vm11, %v784_v17, %v3936_v8 }
 0x124   :  { %920 = vmatprep.subr.mxu0 %v831_v32  ;;  %v3950_v12 = vpop.permute.xlu1 %122 }
 0x126   :  { %v3967_v28 = vpop.permute.xlu0 %124 }
 0x128   :  { %v316_v52 = vpop.permute.xlu1 %315 }
 0x129   :  { %v3978_v40 = vsel %vm5976_vm7, %v3693_v26, %v316_v52 }
 0x12a   :  { %5995 = vst [vmem:[#allocation20_spill] sm:$0xff] %v3978_v40  ;;  %v3982_v5 = vpop.permute.xlu0 %317  ;;  %v762_v16 = vsel %vm598_vm6, %v754_v31, %v3978_v40  ;;  %v538_v31 = vsel %vm5974_vm14, %v3840_v13, %v3851_v60  ;;  %v506_v40 = vsel %vm5975_vm13, %v3838_v55, %v3745_v0  ;;  %vm226_vm13 = vcmask 1014784  }
 0x12b   :  { %v3988_v42 = vsel %vm5976_vm7, %v316_v52, %v3982_v5  ;;  %807 = vrot.lane.b32.xlu0 %v762_v16, %s3231_s23  ;;  %v649_v52 = vsel %vm582_vm1, %v476_v61, %v507_v37 }
 0x12c   :  { %5996 = vst [vmem:[#allocation21_spill] sm:$0xff] %v3988_v42  ;;  %v3993_v10 = vpop.permute.xlu1 %367  ;;  %v763_v26 = vsel %vm598_vm6, %v755_v43, %v3988_v42  ;;  %v656_v42 = vsel %vm590_vm3, %v649_v52, %v538_v31 }
 0x12d   :  { %809 = vrot.lane.b32.xlu1 %v763_v26, %s3231_s23 }
 0x12e   :  { %v3998_v25 = vpop.permute.xlu0 %369 }
 0x12f   :  { %468 = vrot.lane.b32.xlu0 %v3444_v23, %s3228_s20 }
 0x130   :  { %v521_v32 = vpop.permute.xlu1 %520 }
 0x131   :  { %470 = vrot.lane.b32.xlu1 %v3487_v27, %s3228_s20 }
 0x132   :  { %v554_v48 = vpop.permute.xlu0 %553 }
 0x133   :  { %499 = vrot.lane.b32.xlu0 %v3433_v21, %s3229_s21 }
 0x134   :  { %v4016_v16 = vpop.permute.xlu1 %555 }
 0x135   :  { %v569_v43 = vsel %vm5973_vm15, %v554_v48, %v4016_v16  ;;  %501 = vrot.lane.b32.xlu1 %v3436_v22, %s3229_s21 }
 0x136   :  { %v782_v26 = vpop.permute.xlu0 %781  ;;  %v663_v61 = vsel %vm598_vm6, %v656_v42, %v569_v43  ;;  %v132_v43 = vsel %vm5979_vm8, %v3685_v4, %v3950_v12 }
 0x137   :  { %v830_v58 = vsel %vm829_vm11, %v782_v26, %v784_v17  ;;  %v537_v17 = vsel %vm5974_vm14, %v521_v32, %v3840_v13  ;;  %v588_v13 = vsel %vm582_vm1, %v3444_v23, %v132_v43  ;;  %vm443_vm14 = vcmask 515072  }
 0x138   :  { %921 = vmatpush1.msra.mxu0 %v830_v58  ;;  %v158_v33 = vpop.permute.xlu1 %157  ;;  %v475_v58 = vsel %vm474_vm12, %v3824_v62, %v3735_v44 }
 0x139   :  { %530 = vrot.lane.b32.xlu1 %v3436_v22, %s3230_s22  ;;  %922 = vmatprep.subr.mxu0 %v663_v61  ;;  %v648_v52 = vsel %vm582_vm1, %v475_v58, %v506_v40  ;;  %v167_v55 = vsel %vm161_vm9, %v3704_v51, %v158_v33 }
 0x13a   :  { %v4027_v37 = vpop.permute.xlu0 %159  ;;  %v655_v0 = vsel %vm590_vm3, %v648_v52, %v537_v17  ;;  %v596_v4 = vsel %vm590_vm3, %v588_v13, %v167_v55 }
 0x13c   :  { %v335_v14 = vpop.permute.xlu1 %334 }
 0x13e   :  { %v366_v46 = vpop.permute.xlu0 %365 }
 0x140   :  { %v399_v54 = vpop.permute.xlu1 %398 }
 0x142   :  { %v4037_v42 = vpop.permute.xlu0 %400 }
 0x144   :  { %v552_v31 = vpop.permute.xlu1 %551 }
 0x145   :  { %v568_v26 = vsel %vm5973_vm15, %v552_v31, %v554_v48  ;;  %vm412_vm15 = vcmask 523264  }
 0x146   :  { %v719_v44 = vpop.permute.xlu0 %718  ;;  %v662_v62 = vsel %vm598_vm6, %v655_v0, %v568_v26  ;;  %v414_v52 = vsel %vm412_vm15, %v399_v54, %v4037_v42 }
 0x147   :  { %923 = vmatpush1.msra.mxu0 %v662_v62 }
 0x148   :  { %v191_v40 = vpop.permute.xlu1 %190 }
 0x149   :  { %v200_v32 = vsel %vm5978_vm10, %v3715_v18, %v191_v40  ;;  %v383_v18 = vsel %vm381_vm5, %v3993_v10, %v3998_v25 }
 0x14a   :  { %v4053_v61 = vpop.permute.xlu0 %192  ;;  %v4056_v48 = vsel %vm598_vm6, %v596_v4, %v200_v32  ;;  %v628_v43 = vsel %vm582_vm1, %v3541_v41, %v383_v18  ;;  %v382_v18 = vsel %vm381_vm5, %v366_v46, %v3993_v10 }
 0x14b   :  { %791 = vrot.lane.b32.xlu1 %v4056_v48, %s3231_s23  ;;  %v635_v0 = vsel %vm590_vm3, %v628_v43, %v414_v52  ;;  %v133_v43 = vsel %vm5979_vm8, %v3950_v12, %v3967_v28  ;;  %vm6014_vm8 = vcmask 261120  }
 0x14c   :  { %v213_v51 = vpop.permute.xlu1 %212 }
 0x14e   :  { %v4060_v58 = vpop.permute.xlu0 %214 }
 0x14f   :  { %375 = vrot.lane.b32.xlu1 %v3433_v21, %s3232_s24  ;;  %v228_v13 = vsel %vm226_vm13, %v213_v51, %v4060_v58 }
 0x150   :  { %v397_v17 = vpop.permute.xlu1 %396  ;;  %v607_v52 = vsel %vm582_vm1, %v228_v13, %v3559_v47  ;;  %v201_v47 = vsel %vm5978_vm10, %v191_v40, %v4053_v61 }
 0x152   :  { %v430_v31 = vpop.permute.xlu0 %429 }
 0x153   :  { %561 = vrot.lane.b32.xlu1 %v3427_v20, %s3233_s25 }
 0x154   :  { %v4073_v26 = vpop.permute.xlu1 %431 }
 0x155   :  { %v445_v21 = vsel %vm443_vm14, %v430_v31, %v4073_v26 }
 0x156   :  { %v725_v55 = vpop.permute.xlu0 %724  ;;  %v642_v62 = vsel %vm598_vm6, %v635_v0, %v445_v21  ;;  %v413_v21 = vsel %vm412_vm15, %v397_v17, %v399_v54  ;;  %v614_v54 = vsel %vm590_vm3, %v607_v52, %v3565_v49 }
 0x157   :  { %924 = vmatprep.subr.mxu0 %v642_v62  ;;  %v168_v62 = vsel %vm161_vm9, %v158_v33, %v4027_v37  ;;  %v726_v12 = vsel %vm288_vm2, %v3762_v57, %v725_v55 }
 0x158   :  { %v736_v32 = vpop.permute.xlu1 %735 }
 0x159   :  { %v737_v4 = vsel %vm350_vm0, %v3812_v63, %v736_v32  ;;  %v351_v63 = vsel %vm350_vm0, %v335_v14, %v3535_v39  ;;  %v720_v32 = vsel %vm5977_vm4, %v3720_v30, %v719_v44  ;;  %v589_v39 = vsel %vm582_vm1, %v3487_v27, %v133_v43 }
 0x15a   :  { %v211_v41 = vpop.permute.xlu0 %210  ;;  %827 = vrot.lane.b32.xlu0 %v737_v4, %s3231_s23  ;;  %v627_v46 = vsel %vm582_vm1, %v351_v63, %v382_v18  ;;  %v748_v33 = vsel %vm582_vm1, %v3749_v6, %v720_v32  ;;  %v597_v17 = vsel %vm590_vm3, %v589_v39, %v168_v62  ;;  %vm877_vm0 = vcmask 408576  }
 0x15b   :  { %v634_v14 = vsel %vm590_vm3, %v627_v46, %v413_v21  ;;  %v756_v49 = vsel %vm590_vm3, %v748_v33, %v726_v12  ;;  %v4123_v13 = vsel %vm598_vm6, %v597_v17, %v201_v47  ;;  %v227_v6 = vsel %vm226_vm13, %v211_v41, %v213_v51  ;;  %v4178_v46 = vld [vmem:[%s5939_s1 + $0x8] sm:$0xf] }
 0x15c   :  { %v242_v0 = vpop.permute.xlu1 %241  ;;  %v5997_v62 = vmov 0.0   ;;  %v5998_v47 = vld [vmem:[#allocation5_spill] sm:$0xff] }
 0x15d   :  { %v258_v57 = vsel %vm5977_vm4, %v242_v0, %v3527_v34  ;;  %v738_v12 = vsel %vm582_vm1, %v5998_v47, %v3967_v28 }
 0x15e   :  { %v428_v10 = vpop.permute.xlu0 %427  ;;  %532 = vrot.lane.b32.xlu0 %v3505_v29, %s3230_s22  ;;  %v606_v18 = vsel %vm582_vm1, %v227_v6, %v258_v57 }
 0x15f   :  { %v444_v30 = vsel %vm443_vm14, %v428_v10, %v430_v31  ;;  %v621_v31 = vsel %vm598_vm6, %v614_v54, %v3589_v59  ;;  %v739_v54 = vsel %vm590_vm3, %v738_v12, %v4027_v37 }
 0x160   :  { %v731_v44 = vpop.permute.xlu1 %730  ;;  %v641_v40 = vsel %vm598_vm6, %v634_v14, %v444_v30  ;;  %v740_v28 = vsel %vm598_vm6, %v739_v54, %v4053_v61  ;;  %v6005_v54 = vld [vmem:[#allocation6_spill] sm:$0xff] }
 0x161   :  { %v732_v55 = vsel %vm5976_vm7, %v3982_v5, %v731_v44  ;;  %925 = vmatpush1.msra.mxu0 %v641_v40 }
 0x162   :  { %v273_v34 = vpop.permute.xlu0 %272  ;;  %926 = vmatprep.subr.mxu0 %v621_v31  ;;  %793 = vrot.lane.b32.xlu0 %v4123_v13, %s3231_s23  ;;  %v764_v4 = vsel %vm598_vm6, %v756_v49, %v732_v55  ;;  %v865_v55 = vld [vmem:[%s5940_s2] sm:$0xff] }
 0x163   :  { %v289_v5 = vsel %vm288_vm2, %v273_v34, %v3531_v36  ;;  %811 = vrot.lane.b32.xlu1 %v764_v4, %s3231_s23  ;;  %vm5999_vm2 = vcmask 498688  }
 0x164   :  { %v304_v59 = vpop.permute.xlu1 %303  ;;  %v613_v52 = vsel %vm590_vm3, %v606_v18, %v289_v5 }
 0x165   :  { %v320_v51 = vsel %vm5976_vm7, %v304_v59, %v3567_v50  ;;  %v4150_v50 = vld [vmem:[%s5939_s1] sm:$0xff]  ;;  %vm6000_vm7 = vcmask 490496   ;;  %s3243_s1 = smov 113  }
 0x166   :  { %v820_v41 = vpop.permute.xlu0 %819  ;;  %377 = vrot.lane.b32.xlu0 %v3436_v22, %s3232_s24  ;;  %v620_v43 = vsel %vm598_vm6, %v613_v52, %v320_v51  ;;  %vm6001_vm4 = vmmov %vm6000_vm7 }
 0x167   :  { %408 = vrot.lane.b32.xlu1 %v3505_v29, %s3234_s18  ;;  %927 = vmatpush1.msra.mxu0 %v620_v43  ;;  %v846_v29 = vsel %vm829_vm11, %v3873_v7, %v820_v41 }
 0x168   :  { %928 = vmatprep.subr.mxu0 %v3627_v53  ;;  %v4142_v36 = vpop.permute.xlu1 %821 }
 0x169   :  { %929 = vmatpush1.msra.mxu0 %v3683_v2  ;;  %v847_v21 = vsel %vm829_vm11, %v820_v41, %v4142_v36  ;;  %v866_v41 = vld [vmem:[%s5940_s2 + $0x8] sm:$0xf]  ;;  %s3247_s2 = smov 110  }
 0x16a   :  { %v804_v0 = vpop.permute.xlu0 %803  ;;  %563 = vrot.lane.b32.xlu0 %v3450_v24, %s3233_s25  ;;  %2970 = vmatprep.subr.msk.mxu1 %vm582_vm1, %v847_v21 }
 0x16b   :  { %503 = vrot.lane.b32.xlu1 %v3444_v23, %s3229_s21  ;;  %2971 = vmatpush1.msk.msra.mxu1 %vm582_vm1, %v846_v29  ;;  %v839_v7 = vsel %vm829_vm11, %v3905_v38, %v804_v0  ;;  %s3241_s21 = smov 111  }
 0x16c   :  { %v4160_v53 = vpop.permute.xlu1 %805  ;;  %2968 = vmatmul.mubr.msk.f32.vlgmr.msra.gmra.mxu0 %vm877_vm0, %v4150_v50 }
 0x16d   :  { %v840_v2 = vsel %vm829_vm11, %v804_v0, %v4160_v53  ;;  %968 = vmatprep.mubr.f32.mxu0 %v5997_v62 }
 0x16e   :  { %v465_v63 = vpop.permute.xlu0 %464  ;;  %406 = vrot.lane.b32.xlu0 %v3436_v22, %s3234_s18  ;;  %995 = vmatprep.subr.mxu1 %v840_v2 }
 0x16f   :  { %222 = vrot.lane.b32.xlu1 %v3487_v27, %s3235_s0  ;;  %996 = vmatpush1.msra.mxu1 %v839_v7  ;;  %v477_v4 = vsel %vm474_vm12, %v3730_v15, %v465_v63  ;;  %v6004_v7 = vld [vmem:[#allocation8_spill] sm:$0xff] }
 0x170   :  { %v4173_v32 = vpop.permute.xlu1 %466  ;;  %2969 = vmatmul.mubr.msk.f32.gmra.mxu0 %vm877_vm0, %v4178_v46 }
 0x171   :  { %1116 = vmatprep.mubr.f32.mxu0 %v5997_v62  ;;  %v478_v33 = vsel %vm474_vm12, %v465_v63, %v4173_v32 }
 0x172   :  { %v496_v10 = vpop.permute.xlu0 %495  ;;  %472 = vrot.lane.b32.xlu0 %v5998_v47, %s3228_s20  ;;  %s3244_s20 = smov 85  }
 0x173   :  { %439 = vrot.lane.b32.xlu1 %v3450_v24, %s3236_s26  ;;  %v3238_v24 = vmov 0   ;;  %v508_v31 = vsel %vm5999_vm2, %v3741_v45, %v496_v10 }
 0x174   :  { %v4190_v38 = vpop.permute.xlu1 %497  ;;  %3190 = vset.pattern.permute.xlu1 %v3238_v24  ;;  %3191 = vset.pattern.permute.xlu0 %v3238_v24  ;;  %v650_v45 = vsel %vm582_vm1, %v477_v4, %v508_v31  ;;  %v6006_v24 = vld [vmem:[#allocation7_spill] sm:$0xff]  ;;  %v6009_v31 = vld [vmem:[#allocation10_spill] sm:$0xff] }
 0x175   :  { %v509_v61 = vsel %vm5999_vm2, %v496_v10, %v4190_v38 }
 0x176   :  { %v527_v39 = vpop.permute.xlu0 %526  ;;  %220 = vrot.lane.b32.xlu0 %v3444_v23, %s3235_s0  ;;  %v651_v40 = vsel %vm582_vm1, %v478_v33, %v509_v61 }
 0x177   :  { %795 = vrot.lane.b32.xlu1 %v740_v28, %s3231_s23  ;;  %s3246_s23 = smov 112  }
 0x178   :  { %v4199_v30 = vpop.permute.xlu1 %528 }
 0x179   :  { %v540_v17 = vsel %vm6000_vm7, %v527_v39, %v4199_v30  ;;  %vm6002_vm7 = vcmask 261120  }
 0x17a   :  { %v788_v14 = vpop.permute.xlu0 %787  ;;  %437 = vrot.lane.b32.xlu0 %v3427_v20, %s3236_s26  ;;  %v658_v34 = vsel %vm590_vm3, %v651_v40, %v540_v17  ;;  %vm6003_vm2 = vmmov %vm6002_vm7  ;;  %v6008_v40 = vld [vmem:[#allocation9_spill] sm:$0xff] }
 0x17b   :  { %565 = vrot.lane.b32.xlu1 %v3436_v22, %s3233_s25  ;;  %v832_v20 = vsel %vm829_vm11, %v3936_v8, %v788_v14  ;;  %v539_v8 = vsel %vm6001_vm4, %v3851_v60, %v527_v39  ;;  %vm6010_vm4 = vcmask 498688   ;;  %s3250_s25 = smov 25  }
 0x17c   :  { %v4205_v37 = vpop.permute.xlu1 %789  ;;  %v657_v52 = vsel %vm590_vm3, %v650_v45, %v539_v8 }
 0x17d   :  { %v833_v57 = vsel %vm829_vm11, %v788_v14, %v4205_v37 }
 0x17e   :  { %v372_v44 = vpop.permute.xlu0 %371  ;;  %534 = vrot.lane.b32.xlu0 %v3487_v27, %s3230_s22  ;;  %997 = vmatprep.subr.mxu1 %v833_v57  ;;  %s3245_s22 = smov 98  }
 0x17f   :  { %224 = vrot.lane.b32.xlu1 %v5998_v47, %s3235_s0  ;;  %998 = vmatpush1.msra.mxu1 %v832_v20  ;;  %v384_v29 = vsel %vm381_vm5, %v3998_v25, %v372_v44 }
 0x180   :  { %v4222_v49 = vpop.permute.xlu1 %373  ;;  %v629_v39 = vsel %vm582_vm1, %v6005_v54, %v384_v29 }
 0x181   :  { %v385_v21 = vsel %vm381_vm5, %v372_v44, %v4222_v49  ;;  %v6007_v44 = vld [vmem:[#allocation13_spill] sm:$0xff] }
 0x182   :  { %v558_v6 = vpop.permute.xlu0 %557  ;;  %379 = vrot.lane.b32.xlu0 %v3444_v23, %s3232_s24  ;;  %v630_v12 = vsel %vm582_vm1, %v3796_v35, %v385_v21  ;;  %s3248_s24 = smov 86  }
 0x183   :  { %869 = vperm.xlu1 %3190, %v865_v55   ;;  %v570_v18 = vsel %vm6002_vm7, %v4016_v16, %v558_v6  ;;  %vm6011_vm7 = vmmov %vm6010_vm4 }
 0x184   :  { %v4238_v5 = vpop.permute.xlu1 %559  ;;  %v664_v15 = vsel %vm598_vm6, %v657_v52, %v570_v18 }
 0x185   :  { %v571_v59 = vsel %vm6003_vm2, %v558_v6, %v4238_v5  ;;  %vm6012_vm2 = vcmask 490496  }
 0x186   :  { %v403_v23 = vpop.permute.xlu0 %402  ;;  %410 = vrot.lane.b32.xlu0 %v3487_v27, %s3234_s18  ;;  %v665_v60 = vsel %vm598_vm6, %v658_v34, %v571_v59  ;;  %vm6013_vm10 = vmmov %vm6012_vm2 }
 0x187   :  { %999 = vmatprep.subr.mxu1 %v665_v60 }
 0x188   :  { %1000 = vmatpush1.msra.mxu1 %v664_v15  ;;  %v4248_v16 = vpop.permute.xlu1 %404 }
 0x18a   :  { %v217_v51 = vpop.permute.xlu0 %216  ;;  %441 = vrot.lane.b32.xlu0 %v3436_v22, %s3236_s26  ;;  %v416_v22 = vsel %vm412_vm15, %v403_v23, %v4248_v16  ;;  %s3262_s26 = smov [#allocation2]  }
 0x18b   :  { %v229_v27 = vsel %vm226_vm13, %v4060_v58, %v217_v51  ;;  %v415_v58 = vsel %vm412_vm15, %v4037_v42, %v403_v23  ;;  %v637_v28 = vsel %vm590_vm3, %v630_v12, %v416_v22 }
 0x18c   :  { %v4257_v43 = vpop.permute.xlu1 %218  ;;  %v608_v47 = vsel %vm582_vm1, %v229_v27, %v6004_v7  ;;  %v636_v35 = vsel %vm590_vm3, %v629_v39, %v415_v58 }
 0x18d   :  { %v230_v0 = vsel %vm226_vm13, %v217_v51, %v4257_v43 }
 0x18e   :  { %v609_v2 = vsel %vm582_vm1, %v230_v0, %v3801_v19  ;;  %v434_v63 = vpop.permute.xlu0 %433  ;;  %874 = vperm.xlu0 %3191, %v866_v41  }
 0x18f   :  { %v446_v25 = vsel %vm443_vm14, %v4073_v26, %v434_v63  ;;  %v616_v42 = vsel %vm590_vm3, %v609_v2, %v3784_v56  ;;  %v615_v26 = vsel %vm590_vm3, %v608_v47, %v6006_v24 }
 0x190   :  { %v4277_v10 = vpop.permute.xlu1 %435  ;;  %v643_v61 = vsel %vm598_vm6, %v636_v35, %v446_v25  ;;  %v623_v20 = vsel %vm598_vm6, %v616_v42, %v6007_v44  ;;  %v622_v56 = vsel %vm598_vm6, %v615_v26, %v6008_v40 }
 0x191   :  { %v447_v19 = vsel %vm443_vm14, %v434_v63, %v4277_v10 }
 0x192   :  { %v644_v14 = vsel %vm598_vm6, %v637_v28, %v447_v19  ;;  %v824_v33 = vpop.permute.xlu0 %823 }
 0x193   :  { %1001 = vmatprep.subr.mxu1 %v644_v14  ;;  %v848_v55 = vsel %vm829_vm11, %v4142_v36, %v824_v33 }
 0x194   :  { %1002 = vmatpush1.msra.mxu1 %v643_v61  ;;  %v826_v57 = vpop.permute.xlu1 %825 }
 0x195   :  { %1003 = vmatprep.subr.mxu1 %v623_v20  ;;  %v849_v17 = vsel %vm829_vm11, %v824_v33, %v826_v57 }
 0x196   :  { %1004 = vmatpush1.msra.mxu1 %v622_v56  ;;  %2974 = vmatprep.subr.msk.mxu0 %vm582_vm1, %v849_v17 }
 0x197   :  { %1005 = vmatprep.subr.mxu1 %v3886_v3  ;;  %2975 = vmatpush1.msk.msra.mxu0 %vm582_vm1, %v848_v55 }
 0x198   :  { %1006 = vmatpush1.msra.mxu1 %v6009_v31 }
 0x199   :  { %2972 = vmatmul.mubr.msk.f32.vlgmr.msra.gmra.mxu1 %vm877_vm0, %v4150_v50 }
 0x19a   :  { %1045 = vmatprep.mubr.f32.mxu1 %v5997_v62 }
 0x19d   :  { %2973 = vmatmul.mubr.msk.f32.gmra.mxu1 %vm877_vm0, %v4178_v46  ;;  %v808_v6 = vpop.permute.xlu0 %807 }
 0x19e   :  { %3085 = vmatprep.mubr.msk.f32.mxu1 %vm877_vm0, %v4150_v50  ;;  %v841_v3 = vsel %vm829_vm11, %v4160_v53, %v808_v6 }
 0x19f   :  { %v810_v36 = vpop.permute.xlu1 %809 }
 0x1a0   :  { %v842_v8 = vsel %vm829_vm11, %v808_v6, %v810_v36  ;;  %v6016_v6 = vld [vmem:[#allocation11_spill] sm:$0xff] }
 0x1a1   :  { %1072 = vmatprep.subr.mxu0 %v842_v8  ;;  %v469_v45 = vpop.permute.xlu0 %468  ;;  %v6017_v8 = vld [vmem:[#allocation14_spill] sm:$0xff] }
 0x1a2   :  { %1073 = vmatpush1.msra.mxu0 %v841_v3  ;;  %v479_v12 = vsel %vm474_vm12, %v4173_v32, %v469_v45 }
 0x1a3   :  { %v4312_v34 = vpop.permute.xlu1 %470 }
 0x1a4   :  { %v480_v2 = vsel %vm474_vm12, %v469_v45, %v4312_v34 }
 0x1a5   :  { %v500_v23 = vpop.permute.xlu0 %499 }
 0x1a6   :  { %v510_v7 = vsel %vm6011_vm7, %v4190_v38, %v500_v23 }
 0x1a7   :  { %v4314_v4 = vpop.permute.xlu1 %501  ;;  %v652_v19 = vsel %vm582_vm1, %v479_v12, %v510_v7  ;;  %v1249_v7 = vld [vmem:[%s5941_s3 + $0xf8] sm:$0xff]  ;;  %v1248_v12 = vld [vmem:[%s5941_s3 + $0xf0] sm:$0xff] }
 0x1a8   :  { %v511_v63 = vsel %vm6010_vm4, %v500_v23, %v4314_v4  ;;  %vm6015_vm4 = vmmov %vm6014_vm8 }
 0x1a9   :  { %v653_v25 = vsel %vm582_vm1, %v480_v2, %v511_v63 }
 0x1ab   :  { %v531_v18 = vpop.permute.xlu1 %530 }
 0x1ac   :  { %v541_v47 = vsel %vm6013_vm10, %v4199_v30, %v531_v18  ;;  %vm6021_vm10 = vmmov %vm6012_vm2 }
 0x1ad   :  { %v659_v30 = vsel %vm590_vm3, %v652_v19, %v541_v47 }
 0x1bd   :  { %v792_v59 = vpop.permute.xlu1 %791 }
 0x1be   :  { %v834_v0 = vsel %vm829_vm11, %v4205_v37, %v792_v59 }
 0x1c1   :  { %v376_v60 = vpop.permute.xlu1 %375 }
 0x1c5   :  { %v562_v53 = vpop.permute.xlu1 %561 }
 0x1c6   :  { %v572_v54 = vsel %vm6014_vm8, %v4238_v5, %v562_v53  ;;  %vm6019_vm8 = vmmov %vm6011_vm7  ;;  %vm1836_vm7 = vcmask 932864  }
 0x1c7   :  { %v666_v32 = vsel %vm598_vm6, %v659_v30, %v572_v54  ;;  %v1246_v54 = vld [vmem:[%s5941_s3 + $0xe0] sm:$0xff]  ;;  %v1243_v30 = vld [vmem:[%s5941_s3 + $0xc8] sm:$0xff] }
 0x1cc   :  { %v828_v52 = vpop.permute.xlu0 %827 }
 0x1cd   :  { %v850_v15 = vsel %vm829_vm11, %v826_v57, %v828_v52  ;;  %v386_v57 = vsel %vm381_vm5, %v4222_v49, %v376_v60 }
 0x1ce   :  { %3071 = vmatprep.subr.msk.mxu1 %vm582_vm1, %v850_v15 }
 0x1cf   :  { %3072 = vmatpush3.msk.msra.mxu1 %vm582_vm1, %v850_v15  ;;  %v6018_v15 = vld [vmem:[#allocation12_spill] sm:$0xff] }
 0x1d0   :  { %v4319_v51 = vpop.permute.xlu0 %532 }
 0x1d1   :  { %v542_v37 = vsel %vm6012_vm2, %v531_v18, %v4319_v51  ;;  %vm6031_vm2 = vcmask 1022976  }
 0x1d2   :  { %v660_v42 = vsel %vm590_vm3, %v653_v25, %v542_v37 }
 0x1d4   :  { %v794_v41 = vpop.permute.xlu0 %793 }
 0x1d5   :  { %v812_v27 = vpop.permute.xlu1 %811  ;;  %v835_v21 = vsel %vm829_vm11, %v792_v59, %v794_v41 }
 0x1d6   :  { %1074 = vmatprep.subr.mxu0 %v835_v21  ;;  %v843_v29 = vsel %vm829_vm11, %v810_v36, %v812_v27  ;;  %v6020_v27 = vld [vmem:[#allocation20_spill] sm:$0xff] }
 0x1d7   :  { %1075 = vmatpush1.msra.mxu0 %v834_v0  ;;  %3073 = vmatprep.subr.mxu1 %v843_v29  ;;  %v6022_v0 = vld [vmem:[#allocation15_spill] sm:$0xff] }
 0x1d8   :  { %v4325_v22 = vpop.permute.xlu0 %377  ;;  %3074 = vmatpush3.msra.mxu1 %v843_v29 }
 0x1d9   :  { %v4331_v58 = vpop.permute.xlu1 %408  ;;  %v387_v33 = vsel %vm381_vm5, %v376_v60, %v4325_v22 }
 0x1da   :  { %v632_v49 = vsel %vm582_vm1, %v3927_v11, %v387_v33 }
 0x1dc   :  { %v564_v39 = vpop.permute.xlu0 %563 }
 0x1dd   :  { %v573_v28 = vsel %vm6015_vm4, %v562_v53, %v564_v39  ;;  %v504_v38 = vpop.permute.xlu1 %503 }
 0x1de   :  { %v667_v14 = vsel %vm598_vm6, %v660_v42, %v573_v28  ;;  %v1244_v28 = vld [vmem:[%s5941_s3 + $0xd0] sm:$0xff] }
 0x1df   :  { %1076 = vmatprep.subr.mxu0 %v667_v14 }
 0x1e0   :  { %v407_v35 = vpop.permute.xlu0 %406  ;;  %1077 = vmatpush1.msra.mxu0 %v666_v32  ;;  %v6026_v32 = vld [vmem:[#allocation17_spill] sm:$0xff] }
 0x1e1   :  { %v223_v24 = vpop.permute.xlu1 %222  ;;  %v418_v44 = vsel %vm412_vm15, %v407_v35, %v4331_v58  ;;  %v417_v17 = vsel %vm412_vm15, %v4248_v16, %v407_v35 }
 0x1e2   :  { %v639_v18 = vsel %vm590_vm3, %v632_v49, %v418_v44  ;;  %v1240_v44 = vld [vmem:[%s5941_s3 + $0xb0] sm:$0xff]  ;;  %v1313_v49 = vld [vmem:[%s5941_s3 + $0x2f8] sm:$0xff] }
 0x1e4   :  { %v473_v26 = vpop.permute.xlu0 %472 }
 0x1e5   :  { %v4350_v5 = vpop.permute.xlu1 %439  ;;  %v481_v59 = vsel %vm474_vm12, %v4312_v34, %v473_v26  ;;  %v1241_v26 = vld [vmem:[%s5941_s3 + $0xb8] sm:$0xff]  ;;  %vm6029_vm12 = vcmask 1039360  }
 0x1e8   :  { %v221_v61 = vpop.permute.xlu0 %220 }
 0x1e9   :  { %v231_v20 = vsel %vm226_vm13, %v4257_v43, %v221_v61  ;;  %v232_v40 = vsel %vm226_vm13, %v221_v61, %v223_v24  ;;  %v796_v56 = vpop.permute.xlu1 %795  ;;  %v631_v43 = vsel %vm582_vm1, %v6017_v8, %v386_v57  ;;  %v6027_v61 = vld [vmem:[#allocation19_spill] sm:$0xff]  ;;  %v1311_v8 = vld [vmem:[%s5941_s3 + $0x2e8] sm:$0xff] }
 0x1ea   :  { %v611_v55 = vsel %vm582_vm1, %v232_v40, %v3943_v9  ;;  %v836_v31 = vsel %vm829_vm11, %v794_v41, %v796_v56  ;;  %v610_v36 = vsel %vm582_vm1, %v231_v20, %v6016_v6  ;;  %v638_v45 = vsel %vm590_vm3, %v631_v43, %v417_v17  ;;  %vm6023_vm11 = vmmov %vm6015_vm4  ;;  %v1239_v40 = vld [vmem:[%s5941_s3 + $0xa8] sm:$0xff]  ;;  %v1312_v6 = vld [vmem:[%s5941_s3 + $0x2f0] sm:$0xff] }
 0x1eb   :  { %3075 = vmatprep.subr.mxu1 %v836_v31  ;;  %v618_v11 = vsel %vm590_vm3, %v611_v55, %v3965_v1  ;;  %v617_v53 = vsel %vm590_vm3, %v610_v36, %v6018_v15  ;;  %v6028_v56 = vld [vmem:[#allocation21_spill] sm:$0xff]  ;;  %v1237_v55 = vld [vmem:[%s5941_s3 + $0x98] sm:$0xff]  ;;  %v1304_v15 = vld [vmem:[%s5941_s3 + $0x2b0] sm:$0xff]  ;;  %vm1941_vm4 = vcmask 801792  }
 0x1ec   :  { %v438_v3 = vpop.permute.xlu0 %437  ;;  %3076 = vmatpush3.msra.mxu1 %v836_v31  ;;  %v625_v1 = vsel %vm598_vm6, %v618_v11, %v6020_v27  ;;  %v624_v29 = vsel %vm598_vm6, %v617_v53, %v6022_v0  ;;  %v1236_v31 = vld [vmem:[%s5941_s3 + $0x90] sm:$0xff]  ;;  %v1235_v36 = vld [vmem:[%s5941_s3 + $0x88] sm:$0xff]  ;;  %v1234_v43 = vld [vmem:[%s5941_s3 + $0x80] sm:$0xff] }
 0x1ed   :  { %v448_v16 = vsel %vm443_vm14, %v4277_v10, %v438_v3  ;;  %v449_v9 = vsel %vm443_vm14, %v438_v3, %v4350_v5  ;;  %v566_v23 = vpop.permute.xlu1 %565  ;;  %v512_v10 = vsel %vm6019_vm8, %v4314_v4, %v504_v38  ;;  %v6025_v38 = vld [vmem:[#allocation18_spill] sm:$0xff]  ;;  %v1310_v3 = vld [vmem:[%s5941_s3 + $0x2e0] sm:$0xff]  ;;  %vm6033_vm8 = vmmov %vm6031_vm2 }
 0x1ee   :  { %v646_v60 = vsel %vm598_vm6, %v639_v18, %v449_v9  ;;  %v645_v52 = vsel %vm598_vm6, %v638_v45, %v448_v16  ;;  %v654_v21 = vsel %vm582_vm1, %v481_v59, %v512_v10  ;;  %v574_v2 = vsel %vm6023_vm11, %v564_v39, %v566_v23  ;;  %v1309_v18 = vld [vmem:[%s5941_s3 + $0x2d8] sm:$0xff]  ;;  %v1232_v16 = vld [vmem:[%s5941_s3 + $0x70] sm:$0xff]  ;;  %v1231_v9 = vld [vmem:[%s5941_s3 + $0x68] sm:$0xff] }
 0x1ef   :  { %1078 = vmatprep.subr.mxu0 %v646_v60  ;;  %v1307_v45 = vld [vmem:[%s5941_s3 + $0x2c8] sm:$0xff]  ;;  %v1230_v11 = vld [vmem:[%s5941_s3 + $0x60] sm:$0xff]  ;;  %v1229_v23 = vld [vmem:[%s5941_s3 + $0x58] sm:$0xff]  ;;  %vm1851_vm11 = vcmask 924672  }
 0x1f0   :  { %v535_v41 = vpop.permute.xlu0 %534  ;;  %1079 = vmatpush1.msra.mxu0 %v645_v52  ;;  %v1306_v59 = vld [vmem:[%s5941_s3 + $0x2c0] sm:$0xff]  ;;  %v1305_v60 = vld [vmem:[%s5941_s3 + $0x2b8] sm:$0xff]  ;;  %v1228_v52 = vld [vmem:[%s5941_s3 + $0x50] sm:$0xff] }
 0x1f1   :  { %v543_v34 = vsel %vm6021_vm10, %v4319_v51, %v535_v41  ;;  %1080 = vmatprep.subr.mxu0 %v625_v1  ;;  %v225_v37 = vpop.permute.xlu1 %224  ;;  %v6024_v51 = vld [vmem:[#allocation16_spill] sm:$0xff]  ;;  %v1227_v53 = vld [vmem:[%s5941_s3 + $0x48] sm:$0xff]  ;;  %v1300_v0 = vld [vmem:[%s5941_s3 + $0x290] sm:$0xff]  ;;  %vm1866_vm10 = vcmask 916480  }
 0x1f2   :  { %1081 = vmatpush1.msra.mxu0 %v624_v29  ;;  %v661_v63 = vsel %vm590_vm3, %v654_v21, %v543_v34  ;;  %v233_v25 = vsel %vm226_vm13, %v223_v24, %v225_v37  ;;  %v1303_v10 = vld [vmem:[%s5941_s3 + $0x2a8] sm:$0xff]  ;;  %v1226_v41 = vld [vmem:[%s5941_s3 + $0x40] sm:$0xff]  ;;  %v1225_v1 = vld [vmem:[%s5941_s3 + $0x38] sm:$0xff] }
 0x1f3   :  { %1082 = vmatprep.subr.mxu0 %v4056_v48  ;;  %v668_v4 = vsel %vm598_vm6, %v661_v63, %v574_v2  ;;  %v1247_v48 = vld [vmem:[%s5941_s3 + $0xe8] sm:$0xff]  ;;  %v612_v42 = vsel %vm582_vm1, %v233_v25, %v6025_v38  ;;  %v1302_v27 = vld [vmem:[%s5941_s3 + $0x2a0] sm:$0xff]  ;;  %v1301_v21 = vld [vmem:[%s5941_s3 + $0x298] sm:$0xff] }
 0x1f4   :  { %v380_v47 = vpop.permute.xlu0 %379  ;;  %1083 = vmatpush1.msra.mxu0 %v6024_v51  ;;  %3077 = vmatprep.subr.mxu1 %v668_v4  ;;  %v619_v57 = vsel %vm590_vm3, %v612_v42, %v6027_v61  ;;  %v1224_v34 = vld [vmem:[%s5941_s3 + $0x30] sm:$0xff]  ;;  %v1223_v29 = vld [vmem:[%s5941_s3 + $0x28] sm:$0xff]  ;;  %v1222_v63 = vld [vmem:[%s5941_s3 + $0x20] sm:$0xff] }
 0x1f5   :  { %2976 = vmatmul.mubr.msk.f32.vlgmr.msra.gmra.mxu0 %vm877_vm0, %v4150_v50  ;;  %3078 = vmatpush3.msra.mxu1 %v668_v4  ;;  %v1245_v50 = vld [vmem:[%s5941_s3 + $0xd8] sm:$0xff]  ;;  %v388_v19 = vsel %vm381_vm5, %v4325_v22, %v380_v47  ;;  %v1242_v22 = vld [vmem:[%s5941_s3 + $0xc0] sm:$0xff]  ;;  %v626_v17 = vsel %vm598_vm6, %v619_v57, %v6028_v56  ;;  %v1299_v2 = vld [vmem:[%s5941_s3 + $0x288] sm:$0xff]  ;;  %vm1881_vm5 = vcmask 908288  }
 0x1f6   :  { %1122 = vmatprep.mubr.f32.mxu0 %v5997_v62  ;;  %1442 = vmatprep.subr.mxu0 %v1249_v7  ;;  %v633_v35 = vsel %vm582_vm1, %v6026_v32, %v388_v19  ;;  %v1298_v4 = vld [vmem:[%s5941_s3 + $0x280] sm:$0xff]  ;;  %v1221_v7 = vld [vmem:[%s5941_s3 + $0x18] sm:$0xff]  ;;  %v1220_v47 = vld [vmem:[%s5941_s3 + $0x10] sm:$0xff]  ;;  %vm2015_vm1 = vcmask 941056  }
 0x1f7   :  { %1443 = vmatpush1.msra.mxu0 %v1248_v12  ;;  %v1297_v37 = vld [vmem:[%s5941_s3 + $0x278] sm:$0xff]  ;;  %v1296_v51 = vld [vmem:[%s5941_s3 + $0x270] sm:$0xff]  ;;  %v1219_v12 = vld [vmem:[%s5941_s3 + $0x8] sm:$0xff] }
 0x1f8   :  { %v411_v39 = vpop.permute.xlu0 %410  ;;  %1444 = vmatprep.subr.mxu0 %v1247_v48  ;;  %v1295_v48 = vld [vmem:[%s5941_s3 + $0x268] sm:$0xff]  ;;  %v1218_v25 = vld [vmem:[%s5941_s3] sm:$0xff]  ;;  %v1280_v19 = vld [vmem:[%s5941_s3 + $0x1f0] sm:$0xff] }
 0x1f9   :  { %2977 = vmatmul.mubr.msk.f32.gmra.mxu0 %vm877_vm0, %v4178_v46  ;;  %v419_v14 = vsel %vm412_vm15, %v4331_v58, %v411_v39  ;;  %v1281_v39 = vld [vmem:[%s5941_s3 + $0x1f8] sm:$0xff]  ;;  %v1279_v38 = vld [vmem:[%s5941_s3 + $0x1e8] sm:$0xff]  ;;  %v1286_v61 = vld [vmem:[%s5941_s3 + $0x220] sm:$0xff]  ;;  %vm6030_vm15 = vcmask 793600  }
 0x1fa   :  { %1445 = vmatpush1.msra.mxu0 %v1246_v54  ;;  %v640_v33 = vsel %vm590_vm3, %v633_v35, %v419_v14  ;;  %v1294_v54 = vld [vmem:[%s5941_s3 + $0x260] sm:$0xff]  ;;  %v1291_v42 = vld [vmem:[%s5941_s3 + $0x248] sm:$0xff]  ;;  %v1289_v32 = vld [vmem:[%s5941_s3 + $0x238] sm:$0xff] }
 0x1fb   :  { %1446 = vmatprep.subr.mxu0 %v1245_v50  ;;  %v1293_v50 = vld [vmem:[%s5941_s3 + $0x258] sm:$0xff]  ;;  %v1278_v14 = vld [vmem:[%s5941_s3 + $0x1e0] sm:$0xff]  ;;  %v1276_v35 = vld [vmem:[%s5941_s3 + $0x1d0] sm:$0xff] }
 0x1fc   :  { %v442_v24 = vpop.permute.xlu0 %441  ;;  %1447 = vmatpush1.msra.mxu0 %v1244_v28  ;;  %v1292_v28 = vld [vmem:[%s5941_s3 + $0x250] sm:$0xff]  ;;  %v1273_v57 = vld [vmem:[%s5941_s3 + $0x1b8] sm:$0xff]  ;;  %v1283_v56 = vld [vmem:[%s5941_s3 + $0x208] sm:$0xff] }
 0x1fd   :  { %v450_v58 = vsel %vm443_vm14, %v4350_v5, %v442_v24  ;;  %1448 = vmatprep.subr.mxu0 %v1243_v30  ;;  %v1238_v5 = vld [vmem:[%s5941_s3 + $0xa0] sm:$0xff]  ;;  %v1288_v24 = vld [vmem:[%s5941_s3 + $0x230] sm:$0xff]  ;;  %vm1984_vm14 = vcmask 703488  }
 0x1fe   :  { %v647_v20 = vsel %vm598_vm6, %v640_v33, %v450_v58  ;;  %1449 = vmatpush1.msra.mxu0 %v1242_v22  ;;  %v1290_v30 = vld [vmem:[%s5941_s3 + $0x240] sm:$0xff]  ;;  %v1277_v22 = vld [vmem:[%s5941_s3 + $0x1d8] sm:$0xff]  ;;  %v1287_v58 = vld [vmem:[%s5941_s3 + $0x228] sm:$0xff]  ;;  %vm1911_vm6 = vcmask 818176  }
 0x1ff   :  { %3079 = vmatprep.subr.mxu1 %v647_v20  ;;  %1450 = vmatprep.subr.mxu0 %v1241_v26  ;;  %v1275_v26 = vld [vmem:[%s5941_s3 + $0x1c8] sm:$0xff]  ;;  %v1274_v33 = vld [vmem:[%s5941_s3 + $0x1c0] sm:$0xff] }
 0x200   :  { %3080 = vmatpush3.msra.mxu1 %v647_v20  ;;  %1451 = vmatpush1.msra.mxu0 %v1240_v44  ;;  %v1285_v44 = vld [vmem:[%s5941_s3 + $0x218] sm:$0xff]  ;;  %v1272_v20 = vld [vmem:[%s5941_s3 + $0x1b0] sm:$0xff] }
 0x201   :  { %3081 = vmatprep.subr.mxu1 %v626_v17  ;;  %1452 = vmatprep.subr.mxu0 %v1239_v40  ;;  %v1284_v40 = vld [vmem:[%s5941_s3 + $0x210] sm:$0xff] }
 0x202   :  { %3082 = vmatpush3.msra.mxu1 %v626_v17  ;;  %1453 = vmatpush1.msra.mxu0 %v1238_v5  ;;  %v1271_v5 = vld [vmem:[%s5941_s3 + $0x1a8] sm:$0xff]  ;;  %v1270_v17 = vld [vmem:[%s5941_s3 + $0x1a0] sm:$0xff] }
 0x203   :  { %3083 = vmatprep.subr.mxu1 %v4123_v13  ;;  %1454 = vmatprep.subr.mxu0 %v1237_v55  ;;  %v1282_v55 = vld [vmem:[%s5941_s3 + $0x200] sm:$0xff] }
 0x204   :  { %3084 = vmatpush3.msra.mxu1 %v4123_v13  ;;  %1455 = vmatpush1.msra.mxu0 %v1236_v31  ;;  %v1233_v13 = vld [vmem:[%s5941_s3 + $0x78] sm:$0xff] }
 0x205   :  { %3086 = vmatmul.mubr.msk.f32.vlgmr.msra.gmra.mxu1 %vm877_vm0, %v4178_v46  ;;  %1519 = vmatprep.subr.mxu1 %v1313_v49  ;;  %v1308_v46 = vld [vmem:[%s5941_s3 + $0x2d0] sm:$0xff]  ;;  %v1269_v31 = vld [vmem:[%s5941_s3 + $0x198] sm:$0xff] }
 0x206   :  { %1520 = vmatpush1.msra.mxu1 %v1312_v6  ;;  %1456 = vmatprep.subr.mxu0 %v1235_v36  ;;  %v1345_v49 = vld [vmem:[%s5941_s3 + $0x3f8] sm:$0xff]  ;;  %v1268_v6 = vld [vmem:[%s5941_s3 + $0x190] sm:$0xff] }
 0x207   :  { %1521 = vmatprep.subr.mxu1 %v1311_v8  ;;  %1457 = vmatpush1.msra.mxu0 %v1234_v43  ;;  %v1344_v36 = vld [vmem:[%s5941_s3 + $0x3f0] sm:$0xff]  ;;  %v1267_v8 = vld [vmem:[%s5941_s3 + $0x188] sm:$0xff] }
 0x208   :  { %1522 = vmatpush1.msra.mxu1 %v1310_v3  ;;  %1458 = vmatprep.subr.mxu0 %v1233_v13  ;;  %v1343_v43 = vld [vmem:[%s5941_s3 + $0x3e8] sm:$0xff]  ;;  %v1266_v3 = vld [vmem:[%s5941_s3 + $0x180] sm:$0xff] }
 0x209   :  { %1523 = vmatprep.subr.mxu1 %v1309_v18  ;;  %1459 = vmatpush1.msra.mxu0 %v1232_v16  ;;  %v1342_v13 = vld [vmem:[%s5941_s3 + $0x3e0] sm:$0xff]  ;;  %v1265_v18 = vld [vmem:[%s5941_s3 + $0x178] sm:$0xff] }
 0x20a   :  { %1524 = vmatpush1.msra.mxu1 %v1308_v46  ;;  %1460 = vmatprep.subr.mxu0 %v1231_v9  ;;  %v1341_v16 = vld [vmem:[%s5941_s3 + $0x3d8] sm:$0xff]  ;;  %v1264_v46 = vld [vmem:[%s5941_s3 + $0x170] sm:$0xff] }
 0x20b   :  { %1525 = vmatprep.subr.mxu1 %v1307_v45  ;;  %1461 = vmatpush1.msra.mxu0 %v1230_v11  ;;  %v1340_v9 = vld [vmem:[%s5941_s3 + $0x3d0] sm:$0xff]  ;;  %v1263_v45 = vld [vmem:[%s5941_s3 + $0x168] sm:$0xff] }
 0x20c   :  { %1526 = vmatpush1.msra.mxu1 %v1306_v59  ;;  %1462 = vmatprep.subr.mxu0 %v1229_v23  ;;  %v1339_v11 = vld [vmem:[%s5941_s3 + $0x3c8] sm:$0xff]  ;;  %v1262_v59 = vld [vmem:[%s5941_s3 + $0x160] sm:$0xff] }
 0x20d   :  { %1527 = vmatprep.subr.mxu1 %v1305_v60  ;;  %1463 = vmatpush1.msra.mxu0 %v1228_v52  ;;  %v1338_v23 = vld [vmem:[%s5941_s3 + $0x3c0] sm:$0xff]  ;;  %v1261_v60 = vld [vmem:[%s5941_s3 + $0x158] sm:$0xff] }
 0x20e   :  { %1528 = vmatpush1.msra.mxu1 %v1304_v15  ;;  %1464 = vmatprep.subr.mxu0 %v1227_v53  ;;  %v1337_v52 = vld [vmem:[%s5941_s3 + $0x3b8] sm:$0xff]  ;;  %v1260_v15 = vld [vmem:[%s5941_s3 + $0x150] sm:$0xff] }
 0x20f   :  { %1529 = vmatprep.subr.mxu1 %v1303_v10  ;;  %1465 = vmatpush1.msra.mxu0 %v1226_v41  ;;  %v1336_v53 = vld [vmem:[%s5941_s3 + $0x3b0] sm:$0xff]  ;;  %v1259_v10 = vld [vmem:[%s5941_s3 + $0x148] sm:$0xff] }
 0x210   :  { %1530 = vmatpush1.msra.mxu1 %v1302_v27  ;;  %1466 = vmatprep.subr.mxu0 %v1225_v1  ;;  %v1335_v41 = vld [vmem:[%s5941_s3 + $0x3a8] sm:$0xff]  ;;  %v1258_v27 = vld [vmem:[%s5941_s3 + $0x140] sm:$0xff] }
 0x211   :  { %1531 = vmatprep.subr.mxu1 %v1301_v21  ;;  %1467 = vmatpush1.msra.mxu0 %v1224_v34  ;;  %v1334_v21 = vld [vmem:[%s5941_s3 + $0x3a0] sm:$0xff]  ;;  %v1257_v34 = vld [vmem:[%s5941_s3 + $0x138] sm:$0xff] }
 0x212   :  { %1532 = vmatpush1.msra.mxu1 %v1300_v0  ;;  %1468 = vmatprep.subr.mxu0 %v1223_v29  ;;  %v4729_v0 = vpop.permute.xlu1 %869  ;;  %v1333_v29 = vld [vmem:[%s5941_s3 + $0x398] sm:$0xff] }
 0x213   :  { %1533 = vmatprep.subr.mxu1 %v1299_v2  ;;  %1469 = vmatpush1.msra.mxu0 %v1222_v63  ;;  %v1256_v2 = vld [vmem:[%s5941_s3 + $0x130] sm:$0xff] }
 0x214   :  { %1534 = vmatpush1.msra.mxu1 %v1298_v4  ;;  %1470 = vmatprep.subr.mxu0 %v1221_v7  ;;  %v1332_v4 = vld [vmem:[%s5941_s3 + $0x390] sm:$0xff]  ;;  %v1255_v7 = vld [vmem:[%s5941_s3 + $0x128] sm:$0xff] }
 0x215   :  { %1535 = vmatprep.subr.mxu1 %v1297_v37  ;;  %1471 = vmatpush1.msra.mxu0 %v1220_v47  ;;  %v1331_v37 = vld [vmem:[%s5941_s3 + $0x388] sm:$0xff]  ;;  %v1254_v47 = vld [vmem:[%s5941_s3 + $0x120] sm:$0xff] }
 0x216   :  { %1536 = vmatpush1.msra.mxu1 %v1296_v51  ;;  %1472 = vmatprep.subr.mxu0 %v1219_v12  ;;  %v1330_v12 = vld [vmem:[%s5941_s3 + $0x380] sm:$0xff] }
 0x217   :  { %1537 = vmatprep.subr.mxu1 %v1295_v48  ;;  %1473 = vmatpush1.msra.mxu0 %v1218_v25  ;;  %v1253_v48 = vld [vmem:[%s5941_s3 + $0x118] sm:$0xff] }
 0x218   :  { %1538 = vmatpush1.msra.mxu1 %v1294_v54  ;;  %1474 = vmatprep.subr.mxu0 %v1281_v39  ;;  %v1329_v25 = vld [vmem:[%s5941_s3 + $0x378] sm:$0xff]  ;;  %v1252_v54 = vld [vmem:[%s5941_s3 + $0x110] sm:$0xff] }
 0x219   :  { %1539 = vmatprep.subr.mxu1 %v1293_v50  ;;  %1475 = vmatpush2.msra.mxu0 %v1280_v19  ;;  %v1328_v50 = vld [vmem:[%s5941_s3 + $0x370] sm:$0xff]  ;;  %v1251_v19 = vld [vmem:[%s5941_s3 + $0x108] sm:$0xff] }
 0x21a   :  { %1540 = vmatpush1.msra.mxu1 %v1292_v28  ;;  %1476 = vmatprep.subr.mxu0 %v1279_v38  ;;  %v1327_v28 = vld [vmem:[%s5941_s3 + $0x368] sm:$0xff]  ;;  %v1250_v38 = vld [vmem:[%s5941_s3 + $0x100] sm:$0xff] }
 0x21b   :  { %1541 = vmatprep.subr.mxu1 %v1291_v42  ;;  %1477 = vmatpush2.msra.mxu0 %v1278_v14  ;;  %v1326_v14 = vld [vmem:[%s5941_s3 + $0x360] sm:$0xff] }
 0x21c   :  { %1542 = vmatpush1.msra.mxu1 %v1290_v30  ;;  %1478 = vmatprep.subr.mxu0 %v1277_v22  ;;  %v1325_v30 = vld [vmem:[%s5941_s3 + $0x358] sm:$0xff] }
 0x21d   :  { %1543 = vmatprep.subr.mxu1 %v1289_v32  ;;  %1479 = vmatpush2.msra.mxu0 %v1276_v35  ;;  %v1377_v22 = vld [vmem:[%s5941_s3 + $0x4f8] sm:$0xff]  ;;  %v1324_v35 = vld [vmem:[%s5941_s3 + $0x350] sm:$0xff] }
 0x21e   :  { %1544 = vmatpush1.msra.mxu1 %v1288_v24  ;;  %1480 = vmatprep.subr.mxu0 %v1275_v26  ;;  %v1323_v26 = vld [vmem:[%s5941_s3 + $0x348] sm:$0xff] }
 0x21f   :  { %1545 = vmatprep.subr.mxu1 %v1287_v58  ;;  %1481 = vmatpush2.msra.mxu0 %v1274_v33  ;;  %v1376_v58 = vld [vmem:[%s5941_s3 + $0x4f0] sm:$0xff]  ;;  %v1322_v33 = vld [vmem:[%s5941_s3 + $0x340] sm:$0xff] }
 0x220   :  { %1546 = vmatpush1.msra.mxu1 %v1286_v61  ;;  %1482 = vmatprep.subr.mxu0 %v1273_v57  ;;  %v1375_v61 = vld [vmem:[%s5941_s3 + $0x4e8] sm:$0xff]  ;;  %v1321_v57 = vld [vmem:[%s5941_s3 + $0x338] sm:$0xff] }
 0x221   :  { %1547 = vmatprep.subr.mxu1 %v1285_v44  ;;  %1483 = vmatpush2.msra.mxu0 %v1272_v20  ;;  %v1374_v44 = vld [vmem:[%s5941_s3 + $0x4e0] sm:$0xff]  ;;  %v1320_v20 = vld [vmem:[%s5941_s3 + $0x330] sm:$0xff] }
 0x222   :  { %1548 = vmatpush1.msra.mxu1 %v1284_v40  ;;  %1484 = vmatprep.subr.mxu0 %v1271_v5  ;;  %v1373_v40 = vld [vmem:[%s5941_s3 + $0x4d8] sm:$0xff]  ;;  %v4811_v5 = vpop.permute.xlu0 %874 }
 0x223   :  { %1549 = vmatprep.subr.mxu1 %v1283_v56  ;;  %1485 = vmatpush2.msra.mxu0 %v1270_v17  ;;  %v1319_v17 = vld [vmem:[%s5941_s3 + $0x328] sm:$0xff] }
 0x224   :  { %1550 = vmatpush1.msra.mxu1 %v1282_v55  ;;  %1486 = vmatprep.subr.mxu0 %v1269_v31  ;;  %v1372_v55 = vld [vmem:[%s5941_s3 + $0x4d0] sm:$0xff]  ;;  %v1318_v31 = vld [vmem:[%s5941_s3 + $0x320] sm:$0xff] }
 0x225   :  { %1551 = vmatprep.subr.mxu1 %v1345_v49  ;;  %1487 = vmatpush2.msra.mxu0 %v1268_v6  ;;  %v1371_v49 = vld [vmem:[%s5941_s3 + $0x4c8] sm:$0xff]  ;;  %v1317_v6 = vld [vmem:[%s5941_s3 + $0x318] sm:$0xff] }
 0x226   :  { %1552 = vmatpush2.msra.mxu1 %v1344_v36  ;;  %1488 = vmatprep.subr.mxu0 %v1267_v8  ;;  %v1370_v36 = vld [vmem:[%s5941_s3 + $0x4c0] sm:$0xff] }
 0x227   :  { %1553 = vmatprep.subr.mxu1 %v1343_v43  ;;  %1489 = vmatpush2.msra.mxu0 %v1266_v3  ;;  %v1316_v43 = vld [vmem:[%s5941_s3 + $0x310] sm:$0xff]  ;;  %v1369_v3 = vld [vmem:[%s5941_s3 + $0x4b8] sm:$0xff] }
 0x228   :  { %1554 = vmatpush2.msra.mxu1 %v1342_v13  ;;  %1490 = vmatprep.subr.mxu0 %v1265_v18  ;;  %v1315_v13 = vld [vmem:[%s5941_s3 + $0x308] sm:$0xff]  ;;  %v1368_v18 = vld [vmem:[%s5941_s3 + $0x4b0] sm:$0xff] }
 0x229   :  { %1555 = vmatprep.subr.mxu1 %v1341_v16  ;;  %1491 = vmatpush2.msra.mxu0 %v1264_v46  ;;  %v1314_v46 = vld [vmem:[%s5941_s3 + $0x300] sm:$0xff] }
 0x22a   :  { %1556 = vmatpush2.msra.mxu1 %v1340_v9  ;;  %1492 = vmatprep.subr.mxu0 %v1263_v45  ;;  %v1367_v9 = vld [vmem:[%s5941_s3 + $0x4a8] sm:$0xff]  ;;  %v1366_v45 = vld [vmem:[%s5941_s3 + $0x4a0] sm:$0xff] }
 0x22b   :  { %1557 = vmatprep.subr.mxu1 %v1339_v11  ;;  %1493 = vmatpush2.msra.mxu0 %v1262_v59  ;;  %v1441_v11 = vld [vmem:[%s5941_s3 + $0x6f8] sm:$0xff] }
 0x22c   :  { %1558 = vmatpush2.msra.mxu1 %v1338_v23  ;;  %1494 = vmatprep.subr.mxu0 %v1261_v60  ;;  %v964_v1 = vpop.f32.mrf.mxu0  ;;  %v1365_v23 = vld [vmem:[%s5941_s3 + $0x498] sm:$0xff]  ;;  %v1364_v60 = vld [vmem:[%s5941_s3 + $0x490] sm:$0xff] }
 0x22d   :  { %1559 = vmatprep.subr.mxu1 %v1337_v52  ;;  %1495 = vmatpush2.msra.mxu0 %v1260_v15  ;;  %v965_v39 = vadd.f32 %v964_v1, %v4729_v0  ;;  %v1363_v15 = vld [vmem:[%s5941_s3 + $0x488] sm:$0xff]  ;;  %v1358_v1 = vld [vmem:[%s5941_s3 + $0x460] sm:$0xff] }
 0x22e   :  { %1560 = vmatpush2.msra.mxu1 %v1336_v53  ;;  %1496 = vmatprep.subr.mxu0 %v1259_v10  ;;  %v966_v63 = vpop.f32.mrf.mxu0  ;;  %v1362_v53 = vld [vmem:[%s5941_s3 + $0x480] sm:$0xff]  ;;  %v1361_v10 = vld [vmem:[%s5941_s3 + $0x478] sm:$0xff] }
 0x22f   :  { %1561 = vmatprep.subr.mxu1 %v1335_v41  ;;  %1497 = vmatpush2.msra.mxu0 %v1258_v27  ;;  %v967_v51 = vadd.f32 %v966_v63, %v4729_v0  ;;  %v1204_v32 = vmax.f32 %v965_v39, 0.0  ;;  %v1360_v41 = vld [vmem:[%s5941_s3 + $0x470] sm:$0xff]  ;;  %v1359_v27 = vld [vmem:[%s5941_s3 + $0x468] sm:$0xff]  ;;  %v1353_v63 = vld [vmem:[%s5941_s3 + $0x438] sm:$0xff] }
 0x230   :  { %1562 = vmatpush2.msra.mxu1 %v1334_v21  ;;  %1498 = vmatprep.subr.mxu0 %v1257_v34  ;;  %v970_v24 = vpop.f32.mrf.mxu0  ;;  %v1357_v21 = vld [vmem:[%s5941_s3 + $0x458] sm:$0xff]  ;;  %v1356_v34 = vld [vmem:[%s5941_s3 + $0x450] sm:$0xff] }
 0x231   :  { %1563 = vmatprep.subr.mxu1 %v1333_v29  ;;  %1499 = vmatpush2.msra.mxu0 %v1256_v2  ;;  %v1205_v42 = vmax.f32 %v967_v51, 0.0  ;;  %v971_v16 = vadd.f32 %v970_v24, %v4811_v5  ;;  %v1355_v29 = vld [vmem:[%s5941_s3 + $0x448] sm:$0xff]  ;;  %v1354_v2 = vld [vmem:[%s5941_s3 + $0x440] sm:$0xff]  ;;  %v1348_v51 = vld [vmem:[%s5941_s3 + $0x410] sm:$0xff] }
 0x232   :  { %1564 = vmatpush2.msra.mxu1 %v1332_v4  ;;  %1500 = vmatprep.subr.mxu0 %v1255_v7  ;;  %v972_v56 = vpop.f32.mrf.mxu0  ;;  %v1352_v4 = vld [vmem:[%s5941_s3 + $0x430] sm:$0xff]  ;;  %v1351_v7 = vld [vmem:[%s5941_s3 + $0x428] sm:$0xff]  ;;  %v1402_v24 = vld [vmem:[%s5941_s3 + $0x5c0] sm:$0xff] }
 0x233   :  { %1565 = vmatprep.subr.mxu1 %v1331_v37  ;;  %1501 = vmatpush2.msra.mxu0 %v1254_v47  ;;  %v973_v8 = vadd.f32 %v972_v56, %v4811_v5  ;;  %v1211_v52 = vmax.f32 %v971_v16, 0.0  ;;  %v1350_v37 = vld [vmem:[%s5941_s3 + $0x420] sm:$0xff]  ;;  %v1349_v47 = vld [vmem:[%s5941_s3 + $0x418] sm:$0xff]  ;;  %v1431_v16 = vld [vmem:[%s5941_s3 + $0x6a8] sm:$0xff] }
 0x234   :  { %1566 = vmatpush2.msra.mxu1 %v1330_v12  ;;  %1502 = vmatprep.subr.mxu0 %v1253_v48  ;;  %v1347_v12 = vld [vmem:[%s5941_s3 + $0x408] sm:$0xff]  ;;  %v1346_v48 = vld [vmem:[%s5941_s3 + $0x400] sm:$0xff]  ;;  %v1397_v56 = vld [vmem:[%s5941_s3 + $0x598] sm:$0xff] }
 0x235   :  { %1567 = vmatprep.subr.mxu1 %v1329_v25  ;;  %1503 = vmatpush2.msra.mxu0 %v1252_v54  ;;  %v1212_v59 = vmax.f32 %v973_v8, 0.0  ;;  %v1409_v25 = vld [vmem:[%s5941_s3 + $0x5f8] sm:$0xff]  ;;  %v1408_v54 = vld [vmem:[%s5941_s3 + $0x5f0] sm:$0xff] }
 0x236   :  { %1568 = vmatpush2.msra.mxu1 %v1328_v50  ;;  %1504 = vmatprep.subr.mxu0 %v1251_v19  ;;  %v1407_v50 = vld [vmem:[%s5941_s3 + $0x5e8] sm:$0xff]  ;;  %v1433_v8 = vld [vmem:[%s5941_s3 + $0x6b8] sm:$0xff] }
 0x237   :  { %1569 = vmatprep.subr.mxu1 %v1327_v28  ;;  %1505 = vmatpush2.msra.mxu0 %v1250_v38  ;;  %v1406_v28 = vld [vmem:[%s5941_s3 + $0x5e0] sm:$0xff] }
 0x238   :  { %1570 = vmatpush2.msra.mxu1 %v1326_v14  ;;  %1506 = vmatprep.mubr.f32.mxu0 %v1205_v42  ;;  %v1405_v42 = vld [vmem:[%s5941_s3 + $0x5d8] sm:$0xff] }
 0x239   :  { %1571 = vmatprep.subr.mxu1 %v1325_v30  ;;  %1596 = vmatprep.subr.mxu0 %v1377_v22  ;;  %v1404_v30 = vld [vmem:[%s5941_s3 + $0x5d0] sm:$0xff] }
 0x23a   :  { %1572 = vmatpush2.msra.mxu1 %v1324_v35  ;;  %1507 = vmatmul.mubr.f32.vlgmr.msra.gmra.mxu0 %v1204_v32  ;;  %v1403_v32 = vld [vmem:[%s5941_s3 + $0x5c8] sm:$0xff] }
 0x23b   :  { %1573 = vmatprep.subr.mxu1 %v1323_v26  ;;  %1597 = vmatpush1.msra.mxu0 %v1376_v58  ;;  %v1401_v26 = vld [vmem:[%s5941_s3 + $0x5b8] sm:$0xff]  ;;  %v1440_v58 = vld [vmem:[%s5941_s3 + $0x6f0] sm:$0xff] }
 0x23c   :  { %1574 = vmatpush2.msra.mxu1 %v1322_v33  ;;  %1598 = vmatprep.subr.mxu0 %v1375_v61  ;;  %v1400_v33 = vld [vmem:[%s5941_s3 + $0x5b0] sm:$0xff]  ;;  %v1439_v61 = vld [vmem:[%s5941_s3 + $0x6e8] sm:$0xff] }
 0x23d   :  { %1575 = vmatprep.subr.mxu1 %v1321_v57  ;;  %1599 = vmatpush1.msra.mxu0 %v1374_v44  ;;  %v1399_v57 = vld [vmem:[%s5941_s3 + $0x5a8] sm:$0xff]  ;;  %v1438_v44 = vld [vmem:[%s5941_s3 + $0x6e0] sm:$0xff] }
 0x23e   :  { %1576 = vmatpush2.msra.mxu1 %v1320_v20  ;;  %1600 = vmatprep.subr.mxu0 %v1373_v40  ;;  %v1398_v20 = vld [vmem:[%s5941_s3 + $0x5a0] sm:$0xff]  ;;  %v1437_v40 = vld [vmem:[%s5941_s3 + $0x6d8] sm:$0xff] }
 0x23f   :  { %1577 = vmatprep.subr.mxu1 %v1319_v17  ;;  %1601 = vmatpush1.msra.mxu0 %v1372_v55  ;;  %v1436_v17 = vld [vmem:[%s5941_s3 + $0x6d0] sm:$0xff] }
 0x240   :  { %1578 = vmatpush2.msra.mxu1 %v1318_v31  ;;  %1602 = vmatprep.subr.mxu0 %v1371_v49  ;;  %v1396_v55 = vld [vmem:[%s5941_s3 + $0x590] sm:$0xff]  ;;  %v1435_v31 = vld [vmem:[%s5941_s3 + $0x6c8] sm:$0xff] }
 0x241   :  { %1579 = vmatprep.subr.mxu1 %v1317_v6  ;;  %1603 = vmatpush1.msra.mxu0 %v1370_v36  ;;  %v1395_v49 = vld [vmem:[%s5941_s3 + $0x588] sm:$0xff]  ;;  %v1434_v6 = vld [vmem:[%s5941_s3 + $0x6c0] sm:$0xff] }
 0x242   :  { %1580 = vmatpush2.msra.mxu1 %v1316_v43  ;;  %1604 = vmatprep.subr.mxu0 %v1369_v3  ;;  %v1394_v36 = vld [vmem:[%s5941_s3 + $0x580] sm:$0xff]  ;;  %v1393_v3 = vld [vmem:[%s5941_s3 + $0x578] sm:$0xff] }
 0x243   :  { %1581 = vmatprep.subr.mxu1 %v1315_v13  ;;  %1605 = vmatpush1.msra.mxu0 %v1368_v18  ;;  %v1432_v13 = vld [vmem:[%s5941_s3 + $0x6b0] sm:$0xff] }
 0x244   :  { %1582 = vmatpush2.msra.mxu1 %v1314_v46  ;;  %1606 = vmatprep.subr.mxu0 %v1367_v9  ;;  %v1392_v18 = vld [vmem:[%s5941_s3 + $0x570] sm:$0xff]  ;;  %v1391_v46 = vld [vmem:[%s5941_s3 + $0x568] sm:$0xff]  ;;  %v1430_v9 = vld [vmem:[%s5941_s3 + $0x6a0] sm:$0xff] }
 0x245   :  { %1607 = vmatpush1.msra.mxu0 %v1366_v45  ;;  %1673 = vmatprep.subr.mxu1 %v1441_v11  ;;  %v1390_v45 = vld [vmem:[%s5941_s3 + $0x560] sm:$0xff]  ;;  %v1429_v11 = vld [vmem:[%s5941_s3 + $0x698] sm:$0xff] }
 0x246   :  { %1608 = vmatprep.subr.mxu0 %v1365_v23  ;;  %1512 = vmatprep.mubr.f32.mxu0 %v1212_v59  ;;  %v1389_v23 = vld [vmem:[%s5941_s3 + $0x558] sm:$0xff] }
 0x247   :  { %1609 = vmatpush1.msra.mxu0 %v1364_v60  ;;  %v1428_v60 = vld [vmem:[%s5941_s3 + $0x690] sm:$0xff] }
 0x248   :  { %1610 = vmatprep.subr.mxu0 %v1363_v15  ;;  %1513 = vmatmul.mubr.f32.gmra.mxu0 %v1211_v52  ;;  %v1388_v52 = vld [vmem:[%s5941_s3 + $0x550] sm:$0xff]  ;;  %v1427_v15 = vld [vmem:[%s5941_s3 + $0x688] sm:$0xff] }
 0x249   :  { %1611 = vmatpush1.msra.mxu0 %v1362_v53  ;;  %v1387_v53 = vld [vmem:[%s5941_s3 + $0x548] sm:$0xff] }
 0x24a   :  { %1612 = vmatprep.subr.mxu0 %v1361_v10 }
 0x24b   :  { %1613 = vmatpush1.msra.mxu0 %v1360_v41  ;;  %v1426_v41 = vld [vmem:[%s5941_s3 + $0x680] sm:$0xff] }
 0x24c   :  { %1614 = vmatprep.subr.mxu0 %v1359_v27  ;;  %v1386_v27 = vld [vmem:[%s5941_s3 + $0x540] sm:$0xff] }
 0x24d   :  { %1615 = vmatpush1.msra.mxu0 %v1358_v1  ;;  %v1425_v1 = vld [vmem:[%s5941_s3 + $0x678] sm:$0xff] }
 0x24e   :  { %1616 = vmatprep.subr.mxu0 %v1357_v21  ;;  %v1385_v21 = vld [vmem:[%s5941_s3 + $0x538] sm:$0xff] }
 0x24f   :  { %1617 = vmatpush1.msra.mxu0 %v1356_v34 }
 0x250   :  { %1618 = vmatprep.subr.mxu0 %v1355_v29  ;;  %v1424_v29 = vld [vmem:[%s5941_s3 + $0x670] sm:$0xff] }
 0x251   :  { %1619 = vmatpush1.msra.mxu0 %v1354_v2  ;;  %v1384_v2 = vld [vmem:[%s5941_s3 + $0x530] sm:$0xff] }
 0x252   :  { %1620 = vmatprep.subr.mxu0 %v1353_v63  ;;  %v1423_v63 = vld [vmem:[%s5941_s3 + $0x668] sm:$0xff] }
 0x253   :  { %1621 = vmatpush1.msra.mxu0 %v1352_v4  ;;  %v1383_v4 = vld [vmem:[%s5941_s3 + $0x528] sm:$0xff] }
 0x254   :  { %1622 = vmatprep.subr.mxu0 %v1351_v7 }
 0x255   :  { %1623 = vmatpush1.msra.mxu0 %v1350_v37  ;;  %v1422_v37 = vld [vmem:[%s5941_s3 + $0x660] sm:$0xff] }
 0x256   :  { %1624 = vmatprep.subr.mxu0 %v1349_v47  ;;  %v1382_v47 = vld [vmem:[%s5941_s3 + $0x520] sm:$0xff] }
 0x257   :  { %1625 = vmatpush1.msra.mxu0 %v1348_v51 }
 0x258   :  { %1626 = vmatprep.subr.mxu0 %v1347_v12  ;;  %v1381_v12 = vld [vmem:[%s5941_s3 + $0x518] sm:$0xff] }
 0x259   :  { %v1041_v39 = vpop.f32.mrf.mxu1  ;;  %1627 = vmatpush1.msra.mxu0 %v1346_v48  ;;  %v1421_v48 = vld [vmem:[%s5941_s3 + $0x658] sm:$0xff] }
 0x25a   :  { %v1042_v19 = vadd.f32 %v1041_v39, %v4729_v0  ;;  %1628 = vmatprep.subr.mxu0 %v1409_v25  ;;  %v1380_v25 = vld [vmem:[%s5941_s3 + $0x510] sm:$0xff] }
 0x25b   :  { %v1043_v38 = vpop.f32.mrf.mxu1  ;;  %1629 = vmatpush2.msra.mxu0 %v1408_v54  ;;  %v1379_v54 = vld [vmem:[%s5941_s3 + $0x508] sm:$0xff]  ;;  %v1420_v39 = vld [vmem:[%s5941_s3 + $0x650] sm:$0xff] }
 0x25c   :  { %v1044_v14 = vadd.f32 %v1043_v38, %v4729_v0  ;;  %1630 = vmatprep.subr.mxu0 %v1407_v50  ;;  %v1206_v22 = vmax.f32 %v1042_v19, 0.0  ;;  %v1378_v50 = vld [vmem:[%s5941_s3 + $0x500] sm:$0xff]  ;;  %v1419_v19 = vld [vmem:[%s5941_s3 + $0x648] sm:$0xff]  ;;  %v1417_v38 = vld [vmem:[%s5941_s3 + $0x638] sm:$0xff] }
 0x25d   :  { %1631 = vmatpush2.msra.mxu0 %v1406_v28  ;;  %v1047_v43 = vpop.f32.mrf.mxu1  ;;  %v1418_v28 = vld [vmem:[%s5941_s3 + $0x640] sm:$0xff] }
 0x25e   :  { %v1207_v35 = vmax.f32 %v1044_v14, 0.0  ;;  %1632 = vmatprep.subr.mxu0 %v1405_v42  ;;  %v1048_v34 = vadd.f32 %v1047_v43, %v4811_v5  ;;  %v1416_v42 = vld [vmem:[%s5941_s3 + $0x630] sm:$0xff]  ;;  %v1415_v14 = vld [vmem:[%s5941_s3 + $0x628] sm:$0xff] }
 0x25f   :  { %1633 = vmatpush2.msra.mxu0 %v1404_v30  ;;  %v1049_v59 = vpop.f32.mrf.mxu1  ;;  %v1414_v30 = vld [vmem:[%s5941_s3 + $0x620] sm:$0xff] }
 0x260   :  { %1583 = vmatprep.mubr.f32.mxu1 %v1207_v35  ;;  %1634 = vmatprep.subr.mxu0 %v1403_v32  ;;  %v1050_v10 = vadd.f32 %v1049_v59, %v4811_v5  ;;  %v1213_v51 = vmax.f32 %v1048_v34, 0.0  ;;  %v1412_v32 = vld [vmem:[%s5941_s3 + $0x610] sm:$0xff]  ;;  %v1411_v35 = vld [vmem:[%s5941_s3 + $0x608] sm:$0xff] }
 0x261   :  { %1584 = vmatmul.mubr.f32.vlgmr.msra.gmra.mxu1 %v1206_v22  ;;  %1635 = vmatpush2.msra.mxu0 %v1402_v24  ;;  %v1413_v22 = vld [vmem:[%s5941_s3 + $0x618] sm:$0xff]  ;;  %v1410_v24 = vld [vmem:[%s5941_s3 + $0x600] sm:$0xff]  ;;  %s3239_s3 = smov 115  }
 0x262   :  { %1636 = vmatprep.subr.mxu0 %v1401_v26  ;;  %1674 = vmatpush1.msra.mxu1 %v1440_v58  ;;  %v1214_v7 = vmax.f32 %v1050_v10, 0.0 }
 0x263   :  { %1637 = vmatpush2.msra.mxu0 %v1400_v33  ;;  %1675 = vmatprep.subr.mxu1 %v1439_v61 }
 0x264   :  { %1638 = vmatprep.subr.mxu0 %v1399_v57  ;;  %1676 = vmatpush1.msra.mxu1 %v1438_v44 }
 0x265   :  { %1639 = vmatpush2.msra.mxu0 %v1398_v20  ;;  %1677 = vmatprep.subr.mxu1 %v1437_v40 }
 0x266   :  { %1640 = vmatprep.subr.mxu0 %v1397_v56  ;;  %1678 = vmatpush1.msra.mxu1 %v1436_v17 }
 0x267   :  { %1641 = vmatpush2.msra.mxu0 %v1396_v55  ;;  %1679 = vmatprep.subr.mxu1 %v1435_v31 }
 0x268   :  { %1642 = vmatprep.subr.mxu0 %v1395_v49  ;;  %1680 = vmatpush1.msra.mxu1 %v1434_v6 }
 0x269   :  { %1643 = vmatpush2.msra.mxu0 %v1394_v36  ;;  %1681 = vmatprep.subr.mxu1 %v1433_v8 }
 0x26a   :  { %1644 = vmatprep.subr.mxu0 %v1393_v3  ;;  %1682 = vmatpush1.msra.mxu1 %v1432_v13 }
 0x26b   :  { %1645 = vmatpush2.msra.mxu0 %v1392_v18  ;;  %1683 = vmatprep.subr.mxu1 %v1431_v16 }
 0x26c   :  { %1646 = vmatprep.subr.mxu0 %v1391_v46  ;;  %1684 = vmatpush1.msra.mxu1 %v1430_v9 }
 0x26d   :  { %1647 = vmatpush2.msra.mxu0 %v1390_v45  ;;  %1685 = vmatprep.subr.mxu1 %v1429_v11 }
 0x26e   :  { %1648 = vmatprep.subr.mxu0 %v1389_v23  ;;  %1686 = vmatpush1.msra.mxu1 %v1428_v60 }
 0x26f   :  { %1649 = vmatpush2.msra.mxu0 %v1388_v52  ;;  %1687 = vmatprep.subr.mxu1 %v1427_v15 }
 0x270   :  { %1650 = vmatprep.subr.mxu0 %v1387_v53  ;;  %1688 = vmatpush1.msra.mxu1 %v1426_v41 }
 0x271   :  { %1651 = vmatpush2.msra.mxu0 %v1386_v27  ;;  %1689 = vmatprep.subr.mxu1 %v1425_v1 }
 0x272   :  { %1652 = vmatprep.subr.mxu0 %v1385_v21  ;;  %1690 = vmatpush1.msra.mxu1 %v1424_v29 }
 0x273   :  { %1653 = vmatpush2.msra.mxu0 %v1384_v2  ;;  %1691 = vmatprep.subr.mxu1 %v1423_v63 }
 0x274   :  { %1654 = vmatprep.subr.mxu0 %v1383_v4  ;;  %1692 = vmatpush1.msra.mxu1 %v1422_v37 }
 0x275   :  { %1655 = vmatpush2.msra.mxu0 %v1382_v47  ;;  %1589 = vmatprep.mubr.f32.mxu1 %v1214_v7 }
 0x276   :  { %1656 = vmatprep.subr.mxu0 %v1381_v12  ;;  %1693 = vmatprep.subr.mxu1 %v1421_v48 }
 0x277   :  { %1657 = vmatpush2.msra.mxu0 %v1380_v25  ;;  %1590 = vmatmul.mubr.f32.gmra.mxu1 %v1213_v51 }
 0x278   :  { %1658 = vmatprep.subr.mxu0 %v1379_v54  ;;  %1694 = vmatpush1.msra.mxu1 %v1420_v39 }
 0x279   :  { %1659 = vmatpush2.msra.mxu0 %v1378_v50  ;;  %1695 = vmatprep.subr.mxu1 %v1419_v19 }
 0x27a   :  { %1696 = vmatpush1.msra.mxu1 %v1418_v28  ;;  %1737 = vmatprep.mubr.f32.mxu1 %v5997_v62 }
 0x27b   :  { %1697 = vmatprep.subr.mxu1 %v1417_v38 }
 0x27c   :  { %1698 = vmatpush1.msra.mxu1 %v1416_v42 }
 0x27d   :  { %1699 = vmatprep.subr.mxu1 %v1415_v14 }
 0x27e   :  { %1700 = vmatpush1.msra.mxu1 %v1414_v30 }
 0x27f   :  { %1701 = vmatprep.subr.mxu1 %v1413_v22 }
 0x280   :  { %1702 = vmatpush1.msra.mxu1 %v1412_v32 }
 0x281   :  { %1703 = vmatprep.subr.mxu1 %v1411_v35 }
 0x282   :  { %1704 = vmatpush1.msra.mxu1 %v1410_v24 }
 0x2b5   :  { %v1118_v26 = vpop.f32.mrf.mxu0 }
 0x2b6   :  { %v1119_v58 = vadd.f32 %v1118_v26, %v4729_v0 }
 0x2b7   :  { %v1120_v33 = vpop.f32.mrf.mxu0 }
 0x2b8   :  { %v1121_v61 = vadd.f32 %v1120_v33, %v4729_v0  ;;  %v1208_v40 = vmax.f32 %v1119_v58, 0.0 }
 0x2b9   :  { %v1124_v57 = vpop.f32.mrf.mxu0 }
 0x2ba   :  { %v1209_v44 = vmax.f32 %v1121_v61, 0.0  ;;  %v1125_v20 = vadd.f32 %v1124_v57, %v4811_v5 }
 0x2bb   :  { %v1126_v56 = vpop.f32.mrf.mxu0 }
 0x2bc   :  { %1660 = vmatprep.mubr.f32.mxu0 %v1209_v44  ;;  %v1127_v17 = vadd.f32 %v1126_v56, %v4811_v5  ;;  %v1215_v55 = vmax.f32 %v1125_v20, 0.0 }
 0x2bd   :  { %1661 = vmatmul.mubr.f32.vlgmr.msra.gmra.mxu0 %v1208_v40 }
 0x2be   :  { %v1216_v31 = vmax.f32 %v1127_v17, 0.0 }
 0x2c0   :  { %1666 = vmatprep.mubr.f32.mxu0 %v1216_v31 }
 0x2c1   :  { %1667 = vmatmul.mubr.f32.gmra.mxu0 %v1215_v55 }
 0x2c2   :  { %2321 = vmatprep.mubr.f32.mxu0 %v5997_v62 }
 0x2c5   :  { %v3087_v49 = vpop.f32.mrf.mxu1 }
 0x2c6   :  { %v1201_v8 = vadd.f32 %v3087_v49, %v4811_v5 }
 0x2c7   :  { %v1195_v6 = vpop.f32.mrf.mxu1 }
 0x2c8   :  { %v1196_v36 = vadd.f32 %v1195_v6, %v4729_v0  ;;  %v1217_v3 = vmax.f32 %v1201_v8, 0.0 }
 0x2ca   :  { %v1210_v43 = vmax.f32 %v1196_v36, 0.0 }
 0x2cc   :  { %1738 = vmatmul.mubr.f32.vlgmr.msra.gmra.mxu1 %v1210_v43 }
 0x2cd   :  { %1743 = vmatprep.mubr.f32.mxu1 %v5997_v62 }
 0x2d0   :  { %1744 = vmatmul.mubr.f32.gmra.mxu1 %v1217_v3 }
 0x2fa   :  { %v1508_v13 = vpop.f32.mrf.mxu0 }
 0x2fc   :  { %v1510_v18 = vpop.f32.mrf.mxu0 }
 0x308   :  { %v1514_v46 = vpop.f32.mrf.mxu0 }
 0x30a   :  { %v1516_v45 = vpop.f32.mrf.mxu0 }
 0x321   :  { %v1585_v16 = vpop.f32.mrf.mxu1 }
 0x322   :  { %v1586_v23 = vadd.f32 %v1585_v16, %v1508_v13 }
 0x323   :  { %v1587_v9 = vpop.f32.mrf.mxu1 }
 0x324   :  { %v1588_v53 = vadd.f32 %v1587_v9, %v1510_v18 }
 0x337   :  { %v1591_v11 = vpop.f32.mrf.mxu1 }
 0x338   :  { %v1592_v34 = vadd.f32 %v1591_v11, %v1514_v46 }
 0x339   :  { %v1593_v60 = vpop.f32.mrf.mxu1 }
 0x33a   :  { %v1594_v7 = vadd.f32 %v1593_v60, %v1516_v45 }
 0x37d   :  { %v1662_v59 = vpop.f32.mrf.mxu0 }
 0x37e   :  { %v1663_v52 = vadd.f32 %v1662_v59, %v1586_v23 }
 0x37f   :  { %v1664_v5 = vpop.f32.mrf.mxu0 }
 0x380   :  { %v1665_v27 = vadd.f32 %v1664_v5, %v1588_v53 }
 0x381   :  { %v1668_v29 = vpop.f32.mrf.mxu0 }
 0x382   :  { %v1669_v63 = vadd.f32 %v1668_v29, %v1592_v34 }
 0x383   :  { %v1670_v37 = vpop.f32.mrf.mxu0 }
 0x384   :  { %v1671_v51 = vadd.f32 %v1670_v37, %v1594_v7 }
 0x38c   :  { %v1739_v0 = vpop.f32.mrf.mxu1 }
 0x38d   :  { %v5119_v15 = vadd.f32 %v1739_v0, %v1663_v52 }
 0x38e   :  { %v1741_v41 = vpop.f32.mrf.mxu1 }
 0x38f   :  { %2007 = vrot.lane.b32.xlu0 %v5119_v15, %s3239_s3  ;;  %v5124_v10 = vrot.slane %v5119_v15, 4  ;;  %v5128_v1 = vadd.f32 %v1741_v41, %v1665_v27 }
 0x390   :  { %v1745_v2 = vpop.f32.mrf.mxu1 }
 0x391   :  { %1828 = vrot.lane.b32.xlu1 %v5124_v10, %s3240_s30  ;;  %v5169_v21 = vrot.slane %v5128_v1, 4  ;;  %v5187_v4 = vadd.f32 %v1745_v2, %v1669_v63 }
 0x392   :  { %v1747_v47 = vpop.f32.mrf.mxu1 }
 0x393   :  { %1786 = vrot.lane.b32.xlu0 %v5119_v15, %s3226_s16  ;;  %v5199_v12 = vadd.f32 %v1747_v47, %v1671_v51  ;;  %v1768_v48 = vrot.slane %v5187_v4, 4 }
 0x395   :  { %2009 = vrot.lane.b32.xlu1 %v5128_v1, %s3239_s3  ;;  %v1769_v25 = vsel %vm590_vm3, %v5124_v10, %v1768_v48  ;;  %v1770_v54 = vrot.slane %v5199_v12, 4 }
 0x397   :  { %1873 = vrot.lane.b32.xlu0 %v5119_v15, %s3241_s21  ;;  %v1771_v39 = vsel %vm590_vm3, %v5169_v21, %v1770_v54 }
 0x399   :  { %1788 = vrot.lane.b32.xlu1 %v5128_v1, %s3226_s16 }
 0x39b   :  { %1903 = vrot.lane.b32.xlu0 %v5119_v15, %s3242_s17 }
 0x39d   :  { %1875 = vrot.lane.b32.xlu1 %v5128_v1, %s3241_s21 }
 0x39f   :  { %1843 = vrot.lane.b32.xlu0 %v5119_v15, %s3243_s1 }
 0x3a1   :  { %1905 = vrot.lane.b32.xlu1 %v5128_v1, %s3242_s17 }
 0x3a3   :  { %1814 = vrot.lane.b32.xlu0 %v5119_v15, %s3235_s0 }
 0x3a5   :  { %1845 = vrot.lane.b32.xlu1 %v5128_v1, %s3243_s1 }
 0x3a7   :  { %2030 = vrot.lane.b32.xlu0 %v5119_v15, %s3244_s20 }
 0x3a9   :  { %1816 = vrot.lane.b32.xlu1 %v5128_v1, %s3235_s0 }
 0x3ab   :  { %1962 = vrot.lane.b32.xlu0 %v5119_v15, %s3220_s27 }
 0x3ad   :  { %2032 = vrot.lane.b32.xlu1 %v5128_v1, %s3244_s20 }
 0x3af   :  { %1933 = vrot.lane.b32.xlu0 %v5119_v15, %s3245_s22 }
 0x3b1   :  { %1964 = vrot.lane.b32.xlu1 %v5128_v1, %s3220_s27 }
 0x3b3   :  { %1800 = vrot.lane.b32.xlu0 %v5124_v10, %s3227_s19 }
 0x3b5   :  { %1935 = vrot.lane.b32.xlu1 %v5128_v1, %s3245_s22 }
 0x3b7   :  { %1772 = vrot.lane.b32.xlu0 %v5124_v10, %s3224_s14 }
 0x3b9   :  { %1830 = vrot.lane.b32.xlu1 %v5169_v21, %s3240_s30 }
 0x3bb   :  { %1858 = vrot.lane.b32.xlu0 %v5124_v10, %s3246_s23 }
 0x3bd   :  { %1802 = vrot.lane.b32.xlu1 %v5169_v21, %s3227_s19 }
 0x3bf   :  { %1888 = vrot.lane.b32.xlu0 %v5124_v10, %s3247_s2 }
 0x3c1   :  { %1774 = vrot.lane.b32.xlu1 %v5169_v21, %s3224_s14 }
 0x3c3   :  { %1976 = vrot.lane.b32.xlu0 %v5124_v10, %s3248_s24 }
 0x3c5   :  { %1860 = vrot.lane.b32.xlu1 %v5169_v21, %s3246_s23 }
 0x3c7   :  { %1948 = vrot.lane.b32.xlu0 %v5124_v10, %s3221_s28 }
 0x3c9   :  { %1890 = vrot.lane.b32.xlu1 %v5169_v21, %s3247_s2 }
 0x3cb   :  { %2011 = vrot.lane.b32.xlu0 %v5187_v4, %s3239_s3 }
 0x3cd   :  { %1978 = vrot.lane.b32.xlu1 %v5169_v21, %s3248_s24 }
 0x3cf   :  { %1790 = vrot.lane.b32.xlu0 %v5187_v4, %s3226_s16 }
 0x3d1   :  { %1950 = vrot.lane.b32.xlu1 %v5169_v21, %s3221_s28 }
 0x3d3   :  { %1877 = vrot.lane.b32.xlu0 %v5187_v4, %s3241_s21 }
 0x3d5   :  { %2013 = vrot.lane.b32.xlu1 %v5199_v12, %s3239_s3  ;;  %s3254_s3 = smov 47  }
 0x3d7   :  { %1847 = vrot.lane.b32.xlu0 %v5187_v4, %s3243_s1 }
 0x3d9   :  { %1792 = vrot.lane.b32.xlu1 %v5199_v12, %s3226_s16 }
 0x3db   :  { %1818 = vrot.lane.b32.xlu0 %v5187_v4, %s3235_s0 }
 0x3dd   :  { %1879 = vrot.lane.b32.xlu1 %v5199_v12, %s3241_s21 }
 0x3df   :  { %1966 = vrot.lane.b32.xlu0 %v5187_v4, %s3220_s27 }
 0x3e1   :  { %1849 = vrot.lane.b32.xlu1 %v5199_v12, %s3243_s1 }
 0x3e3   :  { %1937 = vrot.lane.b32.xlu0 %v5187_v4, %s3245_s22 }
 0x3e5   :  { %1820 = vrot.lane.b32.xlu1 %v5199_v12, %s3235_s0 }
 0x3e7   :  { %1804 = vrot.lane.b32.xlu0 %v1769_v25, %s3227_s19 }
 0x3e9   :  { %1968 = vrot.lane.b32.xlu1 %v5199_v12, %s3220_s27  ;;  %s3249_s27 = smov 99  }
 0x3eb   :  { %1776 = vrot.lane.b32.xlu0 %v1769_v25, %s3224_s14 }
 0x3ed   :  { %1939 = vrot.lane.b32.xlu1 %v5199_v12, %s3245_s22  ;;  %s3252_s22 = smov 22  }
 0x3ef   :  { %1862 = vrot.lane.b32.xlu0 %v1769_v25, %s3246_s23 }
 0x3f1   :  { %1806 = vrot.lane.b32.xlu1 %v1771_v39, %s3227_s19 }
 0x3f3   :  { %1892 = vrot.lane.b32.xlu0 %v1769_v25, %s3247_s2 }
 0x3f5   :  { %1778 = vrot.lane.b32.xlu1 %v1771_v39, %s3224_s14  ;;  %s3260_s14 = smov 119  }
 0x3f7   :  { %1832 = vrot.lane.b32.xlu0 %v1769_v25, %s3240_s30 }
 0x3f9   :  { %1864 = vrot.lane.b32.xlu1 %v1771_v39, %s3246_s23 }
 0x3fb   :  { %1980 = vrot.lane.b32.xlu0 %v1769_v25, %s3248_s24 }
 0x3fd   :  { %1894 = vrot.lane.b32.xlu1 %v1771_v39, %s3247_s2 }
 0x3ff   :  { %1952 = vrot.lane.b32.xlu0 %v1769_v25, %s3221_s28 }
 0x401   :  { %v2008_v50 = vpop.permute.xlu0 %2007  ;;  %1834 = vrot.lane.b32.xlu1 %v1771_v39, %s3240_s30 }
 0x403   :  { %v5243_v19 = vpop.permute.xlu1 %1828  ;;  %1922 = vrot.lane.b32.xlu0 %v1769_v25, %s3249_s27 }
 0x405   :  { %v1787_v28 = vpop.permute.xlu0 %1786  ;;  %1982 = vrot.lane.b32.xlu1 %v1771_v39, %s3248_s24  ;;  %s3256_s24 = smov 19  }
 0x407   :  { %v2010_v38 = vpop.permute.xlu1 %2009 }
 0x408   :  { %v2016_v42 = vsel %vm2015_vm1, %v2008_v50, %v2010_v38 }
 0x409   :  { %v1874_v14 = vpop.permute.xlu0 %1873  ;;  %2054 = vrot.lane.b32.xlu0 %v2016_v42, %s3244_s20  ;;  %1954 = vrot.lane.b32.xlu1 %v1771_v39, %s3221_s28 }
 0x40b   :  { %v5250_v30 = vpop.permute.xlu1 %1788 }
 0x40c   :  { %v5254_v22 = vsel %vm161_vm9, %v1787_v28, %v5250_v30 }
 0x40d   :  { %v1904_v32 = vpop.permute.xlu0 %1903  ;;  %2042 = vrot.lane.b32.xlu0 %v5254_v22, %s3244_s20  ;;  %1924 = vrot.lane.b32.xlu1 %v1771_v39, %s3249_s27 }
 0x40f   :  { %v5259_v35 = vpop.permute.xlu1 %1875 }
 0x410   :  { %v5263_v24 = vsel %vm1881_vm5, %v1874_v14, %v5259_v35 }
 0x411   :  { %v5265_v26 = vpop.permute.xlu0 %1843  ;;  %2078 = vrot.lane.b32.xlu0 %v5263_v24, %s3244_s20  ;;  %2056 = vrot.lane.b32.xlu1 %v2010_v38, %s3244_s20 }
 0x413   :  { %v1906_v58 = vpop.permute.xlu1 %1905 }
 0x414   :  { %2168 = vmatprep.subr.mxu1 %v1906_v58  ;;  %v1912_v33 = vsel %vm1911_vm6, %v1904_v32, %v1906_v58 }
 0x415   :  { %v5271_v61 = vpop.permute.xlu0 %1814  ;;  %2169 = vmatpush1.msra.mxu1 %v1912_v33  ;;  %2044 = vrot.lane.b32.xlu1 %v5250_v30, %s3244_s20 }
 0x417   :  { %v5275_v57 = vpop.permute.xlu1 %1845 }
 0x419   :  { %v5277_v44 = vpop.permute.xlu0 %2030  ;;  %2080 = vrot.lane.b32.xlu1 %v5259_v35, %s3244_s20 }
 0x41b   :  { %v5281_v20 = vpop.permute.xlu1 %1816 }
 0x41d   :  { %v5283_v40 = vpop.permute.xlu0 %1962 }
 0x41f   :  { %v5285_v56 = vpop.permute.xlu1 %2032 }
 0x421   :  { %v5287_v17 = vpop.permute.xlu0 %1933 }
 0x423   :  { %v5289_v55 = vpop.permute.xlu1 %1964 }
 0x425   :  { %v1801_v31 = vpop.permute.xlu0 %1800 }
 0x427   :  { %v5291_v49 = vpop.permute.xlu1 %1935 }
 0x429   :  { %v1773_v6 = vpop.permute.xlu0 %1772 }
 0x42b   :  { %v5293_v36 = vpop.permute.xlu1 %1830 }
 0x42c   :  { %v5327_v51 = vsel %vm1836_vm7, %v5243_v19, %v5293_v36 }
 0x42d   :  { %v5295_v8 = vpop.permute.xlu0 %1858 }
 0x42f   :  { %v1803_v43 = vpop.permute.xlu1 %1802 }
 0x430   :  { %v1808_v28 = vsel %vm6031_vm2, %v1801_v31, %v1803_v43  ;;  %vm2372_vm2 = vcmask 97280  }
 0x431   :  { %v5297_v3 = vpop.permute.xlu0 %1888 }
 0x433   :  { %v1775_v13 = vpop.permute.xlu1 %1774 }
 0x434   :  { %v1780_v18 = vsel %vm6029_vm12, %v1773_v6, %v1775_v13  ;;  %v5302_v16 = vsel %vm590_vm3, %v5199_v12, %v1775_v13 }
 0x435   :  { %v1977_v46 = vpop.permute.xlu0 %1976  ;;  %2036 = vrot.lane.b32.xlu1 %v5302_v16, %s3244_s20  ;;  %v5308_v9 = vsel %vm590_vm3, %v5187_v4, %v1780_v18 }
 0x436   :  { %2034 = vrot.lane.b32.xlu0 %v5308_v9, %s3244_s20 }
 0x437   :  { %v5312_v45 = vpop.permute.xlu1 %1860 }
 0x439   :  { %v1949_v11 = vpop.permute.xlu0 %1948 }
 0x43b   :  { %v5314_v59 = vpop.permute.xlu1 %1890 }
 0x43d   :  { %v2012_v23 = vpop.permute.xlu0 %2011 }
 0x43f   :  { %v1979_v60 = vpop.permute.xlu1 %1978 }
 0x440   :  { %v1985_v52 = vsel %vm1984_vm14, %v1977_v46, %v1979_v60 }
 0x441   :  { %v1791_v0 = vpop.permute.xlu0 %1790 }
 0x443   :  { %v1951_v5 = vpop.permute.xlu1 %1950 }
 0x444   :  { %v1956_v53 = vsel %vm6030_vm15, %v1949_v11, %v1951_v5 }
 0x445   :  { %v1878_v41 = vpop.permute.xlu0 %1877 }
 0x447   :  { %v2014_v27 = vpop.permute.xlu1 %2013 }
 0x448   :  { %v2017_v37 = vsel %vm2015_vm1, %v2012_v23, %v2014_v27  ;;  %v2021_v48 = vsel %vm590_vm3, %v2014_v27, %v5293_v36  ;;  %vm6034_vm1 = vmmov %vm6029_vm12  ;;  %vm1926_vm12 = vcmask 809984  }
 0x449   :  { %v1848_v34 = vpop.permute.xlu0 %1847  ;;  %v2020_v54 = vsel %vm590_vm3, %v2017_v37, %v5327_v51 }
 0x44b   :  { %v1793_v29 = vpop.permute.xlu1 %1792 }
 0x44c   :  { %v1795_v39 = vsel %vm161_vm9, %v1791_v0, %v1793_v29  ;;  %v5338_v38 = vsel %vm590_vm3, %v1793_v29, %v1803_v43  ;;  %vm6032_vm9 = vcmask 785408  }
 0x44d   :  { %v5318_v2 = vpop.permute.xlu0 %1818  ;;  %v5345_v42 = vsel %vm590_vm3, %v1795_v39, %v1808_v28  ;;  %vm6035_vm15 = vmmov %vm6032_vm9 }
 0x44f   :  { %v1880_v63 = vpop.permute.xlu1 %1879 }
 0x450   :  { %2084 = vrot.lane.b32.xlu1 %v1880_v63, %s3244_s20  ;;  %v1883_v7 = vsel %vm1881_vm5, %v1878_v41, %v1880_v63  ;;  %v1867_v41 = vsel %vm1866_vm10, %v5295_v8, %v5312_v45  ;;  %vm1896_vm5 = vcmask 900096  }
 0x451   :  { %v1967_v47 = vpop.permute.xlu0 %1966  ;;  %2082 = vrot.lane.b32.xlu0 %v1883_v7, %s3244_s20  ;;  %v1897_v8 = vsel %vm1896_vm5, %v5297_v3, %v5314_v59 }
 0x452   :  { %v1999_v39 = vsel %vm590_vm3, %v1883_v7, %v1897_v8  ;;  %v2128_v7 = vld [vmem:[%s5943_s5 + $0x8] sm:$0xff] }
 0x453   :  { %v1850_v25 = vpop.permute.xlu1 %1849 }
 0x454   :  { %2060 = vrot.lane.b32.xlu1 %v2021_v48, %s3244_s20 }
 0x455   :  { %v1938_v50 = vpop.permute.xlu0 %1937  ;;  %2058 = vrot.lane.b32.xlu0 %v2020_v54, %s3244_s20  ;;  %v2000_v54 = vsel %vm590_vm3, %v1880_v63, %v5314_v59 }
 0x457   :  { %v5340_v19 = vpop.permute.xlu1 %1820 }
 0x458   :  { %2048 = vrot.lane.b32.xlu1 %v5338_v38, %s3244_s20 }
 0x459   :  { %v1805_v14 = vpop.permute.xlu0 %1804  ;;  %2046 = vrot.lane.b32.xlu0 %v5345_v42, %s3244_s20 }
 0x45b   :  { %v1969_v32 = vpop.permute.xlu1 %1968 }
 0x45c   :  { %v1971_v58 = vsel %vm6032_vm9, %v1967_v47, %v1969_v32  ;;  %v5351_v33 = vsel %vm590_vm3, %v1969_v32, %v1979_v60  ;;  %v1998_v47 = vsel %vm590_vm3, %v1850_v25, %v5312_v45  ;;  %v1751_v45 = vld [vmem:[%s5942_s4 + $0x8] sm:$0xff]  ;;  %vm2541_vm9 = vcmask 179200  }
 0x45d   :  { %v1777_v31 = vpop.permute.xlu0 %1776  ;;  %v5354_v6 = vsel %vm590_vm3, %v1971_v58, %v1985_v52  ;;  %2232 = vmatprep.mubr.f32.mxu1 %v1751_v45 }
 0x45f   :  { %v1940_v43 = vpop.permute.xlu1 %1939 }
 0x460   :  { %v1943_v13 = vsel %vm1941_vm4, %v1938_v50, %v1940_v43  ;;  %v5358_v18 = vsel %vm590_vm3, %v1940_v43, %v1951_v5 }
 0x461   :  { %v1863_v46 = vpop.permute.xlu0 %1862  ;;  %v5361_v11 = vsel %vm590_vm3, %v1943_v13, %v1956_v53  ;;  %v1853_v53 = vsel %vm1851_vm11, %v1848_v34, %v1850_v25 }
 0x462   :  { %v1997_v29 = vsel %vm590_vm3, %v1853_v53, %v1867_v41 }
 0x463   :  { %v5363_v23 = vpop.permute.xlu1 %1806 }
 0x464   :  { %2052 = vrot.lane.b32.xlu1 %v5363_v23, %s3244_s20  ;;  %v5369_v60 = vsel %vm6033_vm8, %v1805_v14, %v5363_v23  ;;  %vm2543_vm8 = vcmask 384000  }
 0x465   :  { %2050 = vrot.lane.b32.xlu0 %v5369_v60, %s3244_s20  ;;  %v1893_v52 = vpop.permute.xlu0 %1892 }
 0x467   :  { %v5373_v0 = vpop.permute.xlu1 %1778 }
 0x468   :  { %2040 = vrot.lane.b32.xlu1 %v5373_v0, %s3244_s20  ;;  %v5379_v5 = vsel %vm6034_vm1, %v1777_v31, %v5373_v0  ;;  %vm2548_vm1 = vcmask 998400  }
 0x469   :  { %2038 = vrot.lane.b32.xlu0 %v5379_v5, %s3244_s20  ;;  %v1833_v37 = vpop.permute.xlu0 %1832 }
 0x46b   :  { %v1865_v27 = vpop.permute.xlu1 %1864 }
 0x46c   :  { %2076 = vrot.lane.b32.xlu1 %v1865_v27, %s3244_s20 }
 0x46d   :  { %2070 = vrot.lane.b32.xlu0 %v1997_v29, %s3244_s20  ;;  %v5403_v25 = vpop.permute.xlu0 %1980 }
 0x46f   :  { %v1895_v34 = vpop.permute.xlu1 %1894 }
 0x470   :  { %v1898_v48 = vsel %vm1896_vm5, %v1893_v52, %v1895_v34  ;;  %2072 = vrot.lane.b32.xlu1 %v1998_v47, %s3244_s20  ;;  %2170 = vmatprep.subr.mxu1 %v1895_v34 }
 0x471   :  { %1907 = vrot.lane.b32.xlu0 %v5187_v4, %s3242_s17  ;;  %2171 = vmatpush1.msra.mxu1 %v1898_v48  ;;  %v1868_v4 = vsel %vm1866_vm10, %v1863_v46, %v1865_v27  ;;  %v5416_v59 = vpop.permute.xlu0 %1952  ;;  %vm2545_vm10 = vcmask 588800  }
 0x472   :  { %2172 = vmatprep.subr.mxu1 %v2000_v54 }
 0x473   :  { %2173 = vmatpush1.msra.mxu1 %v1999_v39  ;;  %v1835_v50 = vpop.permute.xlu1 %1834 }
 0x474   :  { %1909 = vrot.lane.b32.xlu1 %v5199_v12, %s3242_s17  ;;  %2174 = vmatprep.subr.mxu1 %v5259_v35  ;;  %v1823_v12 = vsel %vm226_vm13, %v5318_v2, %v5340_v19 }
 0x475   :  { %1918 = vrot.lane.b32.xlu0 %v5124_v10, %s3249_s27  ;;  %2175 = vmatpush1.msra.mxu1 %v5263_v24  ;;  %v1852_v10 = vsel %vm1851_vm11, %v5265_v26, %v5275_v57  ;;  %v1996_v24 = vsel %vm590_vm3, %v5340_v19, %v5293_v36  ;;  %v1995_v26 = vsel %vm590_vm3, %v1823_v12, %v5327_v51  ;;  %v1923_v2 = vpop.permute.xlu0 %1922  ;;  %v2127_v51 = vld [vmem:[%s5943_s5] sm:$0xff]  ;;  %vm2537_vm11 = vcmask 613376  }
 0x476   :  { %2176 = vmatprep.subr.mxu1 %v1865_v27  ;;  %v1822_v36 = vsel %vm226_vm13, %v5271_v61, %v5281_v20  ;;  %v2130_v61 = vld [vmem:[%s5943_s5 + $0x18] sm:$0xff]  ;;  %vm2086_vm13 = vcmask 695296  }
 0x477   :  { %2177 = vmatpush1.msra.mxu1 %v1868_v4  ;;  %v5412_v3 = vpop.permute.xlu1 %1982  ;;  %v2087_v48 = vsel %vm2086_vm13, %v5277_v44, %v5285_v56  ;;  %v1970_v44 = vsel %vm6035_vm15, %v5283_v40, %v5289_v55  ;;  %v1942_v40 = vsel %vm1941_vm4, %v5287_v17, %v5291_v49  ;;  %vm2534_vm4 = vcmask 203776  }
 0x478   :  { %1920 = vrot.lane.b32.xlu1 %v5169_v21, %s3249_s27  ;;  %2178 = vmatprep.subr.mxu1 %v1998_v47  ;;  %v1838_v21 = vsel %vm1836_vm7, %v1833_v37, %v1835_v50  ;;  %v1986_v39 = vsel %vm1984_vm14, %v5403_v25, %v5412_v3  ;;  %vm6036_vm7 = vcmask 793600   ;;  %vm2151_vm14 = vcmask 359424   ;;  %s3257_s27 = smov 122  }
 0x479   :  { %2074 = vrot.lane.b32.xlu0 %v1868_v4, %s3244_s20  ;;  %2179 = vmatpush1.msra.mxu1 %v1997_v29  ;;  %vm6037_vm5 = vmmov %vm6036_vm7  ;;  %vm2556_vm15 = vcmask 973824  }
 0x47a   :  { %2180 = vmatprep.subr.mxu1 %v5275_v57 }
 0x47b   :  { %2181 = vmatpush1.msra.mxu1 %v1852_v10  ;;  %v5426_v35 = vpop.permute.xlu1 %1954  ;;  %v2055_v28 = vpop.permute.xlu0 %2054 }
 0x47c   :  { %2068 = vrot.lane.b32.xlu1 %v5275_v57, %s3244_s20  ;;  %2182 = vmatprep.subr.mxu1 %v1835_v50 }
 0x47d   :  { %2066 = vrot.lane.b32.xlu0 %v1852_v10, %s3244_s20  ;;  %2183 = vmatpush1.msra.mxu1 %v1838_v21 }
 0x47e   :  { %2184 = vmatprep.subr.mxu1 %v1996_v24  ;;  %v1752_v24 = vld [vmem:[%s5942_s4 + $0x10] sm:$0xff] }
 0x47f   :  { %2185 = vmatpush1.msra.mxu1 %v1995_v26  ;;  %v5437_v63 = vpop.permute.xlu1 %1924  ;;  %v2043_v19 = vpop.permute.xlu0 %2042 }
 0x480   :  { %v5441_v57 = vsel %vm1926_vm12, %v1923_v2, %v5437_v63  ;;  %2186 = vmatprep.subr.mxu1 %v5281_v20  ;;  %2064 = vrot.lane.b32.xlu1 %v1835_v50, %s3244_s20  ;;  %v2129_v20 = vld [vmem:[%s5943_s5 + $0x10] sm:$0xff]  ;;  %v2369_v2 = vld [vmem:[%s5944_s6 + $0x78] sm:$0xff] }
 0x481   :  { %2062 = vrot.lane.b32.xlu0 %v1838_v21, %s3244_s20  ;;  %2187 = vmatpush1.msra.mxu1 %v1822_v36  ;;  %v2368_v36 = vld [vmem:[%s5944_s6 + $0x70] sm:$0xff]  ;;  %s3251_s20 = smov 50  }
 0x482   :  { %2188 = vmatprep.subr.mxu1 %v5363_v23 }
 0x483   :  { %2189 = vmatpush1.msra.mxu1 %v5369_v60 }
 0x484   :  { %2190 = vmatprep.subr.mxu1 %v5338_v38  ;;  %2138 = vperm.xlu1 %3190, %v2128_v7   ;;  %v1755_v7 = vld [vmem:[%s5942_s4 + $0x28] sm:$0xff] }
 0x485   :  { %2133 = vperm.xlu0 %3191, %v2127_v51   ;;  %2191 = vmatpush1.msra.mxu1 %v5345_v42  ;;  %v2367_v51 = vld [vmem:[%s5944_s6 + $0x68] sm:$0xff] }
 0x486   :  { %2192 = vmatprep.subr.mxu1 %v5250_v30  ;;  %v2057_v30 = vpop.permute.xlu1 %2056 }
 0x487   :  { %2193 = vmatpush1.msra.mxu1 %v5254_v22  ;;  %v2079_v22 = vpop.permute.xlu0 %2078  ;;  %v2093_v13 = vsel %vm2086_vm13, %v2055_v28, %v2057_v30  ;;  %v1758_v28 = vld [vmem:[%s5942_s4 + $0x40] sm:$0xff] }
 0x488   :  { %2194 = vmatprep.subr.mxu1 %v5373_v0  ;;  %2148 = vperm.xlu1 %3190, %v2130_v61   ;;  %v1756_v61 = vld [vmem:[%s5942_s4 + $0x30] sm:$0xff] }
 0x489   :  { %2143 = vperm.xlu0 %3191, %v2129_v20   ;;  %2195 = vmatpush1.msra.mxu1 %v5379_v5  ;;  %v1760_v20 = vld [vmem:[%s5942_s4 + $0x50] sm:$0xff] }
 0x48a   :  { %2196 = vmatprep.subr.mxu1 %v5302_v16  ;;  %v2045_v38 = vpop.permute.xlu1 %2044 }
 0x48b   :  { %2197 = vmatpush1.msra.mxu1 %v5308_v9  ;;  %v2090_v27 = vsel %vm2086_vm13, %v2043_v19, %v2045_v38  ;;  %v1759_v19 = vld [vmem:[%s5942_s4 + $0x48] sm:$0xff] }
 0x48c   :  { %2198 = vmatprep.subr.mxu1 %v5128_v1 }
 0x48d   :  { %2199 = vmatpush1.msra.mxu1 %v5119_v15 }
 0x48e   :  { %v2081_v42 = vpop.permute.xlu1 %2080 }
 0x48f   :  { %v2099_v1 = vsel %vm2086_vm13, %v2079_v22, %v2081_v42  ;;  %v1761_v22 = vld [vmem:[%s5942_s4 + $0x58] sm:$0xff] }
 0x4a7   :  { %v2037_v14 = vpop.permute.xlu1 %2036 }
 0x4a8   :  { %v2035_v32 = vpop.permute.xlu0 %2034 }
 0x4a9   :  { %v2088_v34 = vsel %vm2086_vm13, %v2035_v32, %v2037_v14  ;;  %v2362_v32 = vld [vmem:[%s5944_s6 + $0x40] sm:$0xff] }
 0x4c2   :  { %v2085_v58 = vpop.permute.xlu1 %2084 }
 0x4c3   :  { %v2083_v31 = vpop.permute.xlu0 %2082  ;;  %2981 = vmatprep.subr.msk.mxu0 %vm590_vm3, %v2085_v58 }
 0x4c4   :  { %v2100_v16 = vsel %vm2086_vm13, %v2083_v31, %v2085_v58  ;;  %v2361_v58 = vld [vmem:[%s5944_s6 + $0x38] sm:$0xff]  ;;  %v2360_v31 = vld [vmem:[%s5944_s6 + $0x30] sm:$0xff] }
 0x4c5   :  { %2982 = vmatpush1.msk.msra.mxu0 %vm590_vm3, %v2100_v16  ;;  %v2359_v16 = vld [vmem:[%s5944_s6 + $0x28] sm:$0xff] }
 0x4c6   :  { %2279 = vmatprep.subr.mxu0 %v2081_v42  ;;  %v2061_v15 = vpop.permute.xlu1 %2060  ;;  %v2364_v42 = vld [vmem:[%s5944_s6 + $0x50] sm:$0xff] }
 0x4c7   :  { %v2059_v9 = vpop.permute.xlu0 %2058  ;;  %2200 = vmatprep.subr.mxu1 %v2061_v15  ;;  %2280 = vmatpush1.msra.mxu0 %v2099_v1  ;;  %v2358_v1 = vld [vmem:[%s5944_s6 + $0x20] sm:$0xff] }
 0x4c8   :  { %v2094_v43 = vsel %vm2086_vm13, %v2059_v9, %v2061_v15  ;;  %v2357_v15 = vld [vmem:[%s5944_s6 + $0x18] sm:$0xff]  ;;  %v2356_v9 = vld [vmem:[%s5944_s6 + $0x10] sm:$0xff] }
 0x4c9   :  { %2201 = vmatpush2.msra.mxu1 %v2094_v43  ;;  %v2355_v43 = vld [vmem:[%s5944_s6 + $0x8] sm:$0xff] }
 0x4ca   :  { %2202 = vmatprep.subr.mxu1 %v2057_v30  ;;  %v2049_v46 = vpop.permute.xlu1 %2048  ;;  %v2366_v30 = vld [vmem:[%s5944_s6 + $0x60] sm:$0xff] }
 0x4cb   :  { %2203 = vmatpush2.msra.mxu1 %v2093_v13  ;;  %v2047_v23 = vpop.permute.xlu0 %2046  ;;  %v2354_v13 = vld [vmem:[%s5944_s6] sm:$0xff] }
 0x4cc   :  { %v2091_v5 = vsel %vm2086_vm13, %v2047_v23, %v2049_v46  ;;  %v2370_v23 = vld [vmem:[%s5944_s6 + $0x80] sm:$0xff] }
 0x4d6   :  { %v2053_v60 = vpop.permute.xlu1 %2052 }
 0x4d7   :  { %v2051_v52 = vpop.permute.xlu0 %2050  ;;  %2204 = vmatprep.subr.mxu1 %v2053_v60 }
 0x4d8   :  { %v2092_v0 = vsel %vm2086_vm13, %v2051_v52, %v2053_v60 }
 0x4d9   :  { %2205 = vmatpush2.msra.mxu1 %v2092_v0 }
 0x4da   :  { %2206 = vmatprep.subr.mxu1 %v2049_v46  ;;  %v2041_v53 = vpop.permute.xlu1 %2040  ;;  %v2371_v46 = vld [vmem:[%s5944_s6 + $0x88] sm:$0xf] }
 0x4db   :  { %v2039_v41 = vpop.permute.xlu0 %2038  ;;  %2207 = vmatpush2.msra.mxu1 %v2091_v5 }
 0x4dc   :  { %2208 = vmatprep.subr.mxu1 %v2045_v38  ;;  %v2089_v29 = vsel %vm2086_vm13, %v2039_v41, %v2041_v53  ;;  %v2365_v38 = vld [vmem:[%s5944_s6 + $0x58] sm:$0xff] }
 0x4dd   :  { %2209 = vmatpush2.msra.mxu1 %v2090_v27 }
 0x4de   :  { %2210 = vmatprep.subr.mxu1 %v2041_v53  ;;  %v2077_v37 = vpop.permute.xlu1 %2076 }
 0x4df   :  { %v2071_v47 = vpop.permute.xlu0 %2070  ;;  %2211 = vmatpush2.msra.mxu1 %v2089_v29  ;;  %2281 = vmatprep.subr.mxu0 %v2077_v37 }
 0x4e0   :  { %2212 = vmatprep.subr.mxu1 %v2037_v14  ;;  %v2363_v14 = vld [vmem:[%s5944_s6 + $0x48] sm:$0xff] }
 0x4e1   :  { %2213 = vmatpush2.msra.mxu1 %v2088_v34 }
 0x4e2   :  { %2214 = vmatprep.subr.mxu1 %v5285_v56  ;;  %v2073_v8 = vpop.permute.xlu1 %2072  ;;  %v1957_v56 = vsel %vm6036_vm7, %v5416_v59, %v5426_v35  ;;  %vm6039_vm7 = vcmask 769024  }
 0x4e3   :  { %v1908_v54 = vpop.permute.xlu0 %1907  ;;  %2215 = vmatpush2.msra.mxu1 %v2087_v48 }
 0x4e4   :  { %2216 = vmatprep.subr.mxu1 %v5412_v3 }
 0x4e5   :  { %2217 = vmatpush2.msra.mxu1 %v1986_v39 }
 0x4e6   :  { %2218 = vmatprep.subr.mxu1 %v5351_v33  ;;  %v1910_v45 = vpop.permute.xlu1 %1909 }
 0x4e7   :  { %v1919_v50 = vpop.permute.xlu0 %1918  ;;  %2219 = vmatpush2.msra.mxu1 %v5354_v6 }
 0x4e8   :  { %2220 = vmatprep.subr.mxu1 %v5289_v55  ;;  %v2097_v55 = vsel %vm2086_vm13, %v2071_v47, %v2073_v8 }
 0x4e9   :  { %2221 = vmatpush2.msra.mxu1 %v1970_v44 }
 0x4ea   :  { %2222 = vmatprep.subr.mxu1 %v5426_v35  ;;  %v1921_v25 = vpop.permute.xlu1 %1920  ;;  %v1754_v35 = vld [vmem:[%s5942_s4 + $0x20] sm:$0xff] }
 0x4eb   :  { %v2075_v4 = vpop.permute.xlu0 %2074  ;;  %2223 = vmatpush2.msra.mxu1 %v1957_v56  ;;  %v1927_v3 = vsel %vm1926_vm12, %v1919_v50, %v1921_v25  ;;  %v2002_v17 = vsel %vm590_vm3, %v1910_v45, %v1921_v25  ;;  %vm2550_vm12 = vcmask 154624  }
 0x4ec   :  { %v2098_v33 = vsel %vm2086_vm13, %v2075_v4, %v2077_v37  ;;  %2224 = vmatprep.subr.mxu1 %v5358_v18 }
 0x4ed   :  { %2225 = vmatpush2.msra.mxu1 %v5361_v11  ;;  %2282 = vmatpush1.msra.mxu0 %v2098_v33  ;;  %v1913_v11 = vsel %vm1911_vm6, %v1908_v54, %v1910_v45 }
 0x4ee   :  { %2226 = vmatprep.subr.mxu1 %v5291_v49  ;;  %2283 = vmatprep.subr.mxu0 %v2073_v8  ;;  %v2069_v6 = vpop.permute.xlu1 %2068  ;;  %v1750_v49 = vld [vmem:[%s5942_s4] sm:$0xff]  ;;  %v2001_v12 = vsel %vm590_vm3, %v1913_v11, %v1927_v3 }
 0x4ef   :  { %v2067_v59 = vpop.permute.xlu0 %2066  ;;  %2227 = vmatpush2.msra.mxu1 %v1942_v40  ;;  %2284 = vmatpush1.msra.mxu0 %v2097_v55 }
 0x4f0   :  { %v2096_v18 = vsel %vm2086_vm13, %v2067_v59, %v2069_v6  ;;  %2228 = vmatprep.subr.mxu1 %v5437_v63  ;;  %2285 = vmatprep.subr.mxu0 %v2069_v6  ;;  %v1753_v63 = vld [vmem:[%s5942_s4 + $0x18] sm:$0xff] }
 0x4f1   :  { %2229 = vmatpush2.msra.mxu1 %v5441_v57  ;;  %2286 = vmatpush1.msra.mxu0 %v2096_v18  ;;  %v1757_v57 = vld [vmem:[%s5942_s4 + $0x38] sm:$0xff]  ;;  %s3255_s4 = smov 72  }
 0x4f2   :  { %2230 = vmatprep.subr.mxu1 %v2002_v17  ;;  %v2065_v10 = vpop.permute.xlu1 %2064 }
 0x4f3   :  { %v2063_v21 = vpop.permute.xlu0 %2062  ;;  %2231 = vmatpush2.msra.mxu1 %v2001_v12  ;;  %2287 = vmatprep.subr.mxu0 %v2065_v10 }
 0x4f4   :  { %v2095_v26 = vsel %vm2086_vm13, %v2063_v21, %v2065_v10  ;;  %2233 = vmatmul.mubr.f32.vlgmr.msra.gmra.mxu1 %v1750_v49  ;;  %vm6038_vm13 = vcmask 1022976  }
 0x4f5   :  { %2288 = vmatpush1.msra.mxu0 %v2095_v26  ;;  %2238 = vmatprep.mubr.f32.mxu1 %v1754_v35 }
 0x4f6   :  { %2983 = vmatmul.mubr.msk.f32.vlgmr.msra.gmra.mxu0 %vm2151_vm14, %v1752_v24  ;;  %2388 = vmatprep.subr.mxu0 %v5997_v62 }
 0x4f7   :  { %2327 = vmatprep.mubr.f32.mxu0 %v5997_v62  ;;  %2389 = vmatpush1.msra.mxu0 %v2369_v2 }
 0x4f8   :  { %2239 = vmatmul.mubr.f32.gmra.mxu1 %v1753_v63  ;;  %2390 = vmatprep.subr.mxu0 %v5997_v62 }
 0x4f9   :  { %2244 = vmatprep.mubr.f32.mxu1 %v1757_v57  ;;  %2391 = vmatpush1.msra.mxu0 %v2368_v36 }
 0x4fa   :  { %2984 = vmatmul.mubr.msk.f32.gmra.mxu0 %vm2151_vm14, %v1755_v7  ;;  %2392 = vmatprep.subr.mxu0 %v5997_v62 }
 0x4fb   :  { %2333 = vmatprep.mubr.f32.mxu0 %v5997_v62  ;;  %2393 = vmatpush1.msra.mxu0 %v2367_v51 }
 0x4fc   :  { %2245 = vmatmul.mubr.f32.gmra.mxu1 %v1756_v61  ;;  %2394 = vmatprep.subr.mxu0 %v5997_v62 }
 0x4fd   :  { %2250 = vmatprep.mubr.f32.mxu1 %v1760_v20  ;;  %2395 = vmatpush1.msra.mxu0 %v2366_v30  ;;  %v2589_v20 = vld [vmem:[%s5945_s7 + $0xf8] sm:$0xff] }
 0x4fe   :  { %2985 = vmatmul.mubr.msk.f32.gmra.mxu0 %vm2151_vm14, %v1758_v28  ;;  %2396 = vmatprep.subr.mxu0 %v5997_v62  ;;  %v2573_v30 = vld [vmem:[%s5945_s7 + $0x78] sm:$0xff]  ;;  %v2588_v28 = vld [vmem:[%s5945_s7 + $0xf0] sm:$0xff] }
 0x4ff   :  { %2339 = vmatprep.mubr.f32.mxu0 %v5997_v62  ;;  %2397 = vmatpush1.msra.mxu0 %v2365_v38  ;;  %v2139_v41 = vpop.permute.xlu1 %2138  ;;  %v2572_v38 = vld [vmem:[%s5945_s7 + $0x70] sm:$0xff] }
 0x500   :  { %2251 = vmatmul.mubr.f32.gmra.mxu1 %v1759_v19  ;;  %2398 = vmatprep.subr.mxu0 %v5997_v62  ;;  %v2134_v60 = vpop.permute.xlu0 %2133  ;;  %v2587_v19 = vld [vmem:[%s5945_s7 + $0xe8] sm:$0xff] }
 0x501   :  { %2399 = vmatpush1.msra.mxu0 %v2364_v42  ;;  %3008 = vmatprep.subr.mxu1 %v2589_v20  ;;  %v2605_v42 = vld [vmem:[%s5945_s7 + $0x178] sm:$0xff]  ;;  %v2607_v20 = vld [vmem:[%s5945_s7 + $0x188] sm:$0xff] }
 0x502   :  { %2986 = vmatmul.mubr.msk.f32.gmra.mxu0 %vm2151_vm14, %v1761_v22  ;;  %2400 = vmatprep.subr.mxu0 %v5997_v62  ;;  %v2571_v22 = vld [vmem:[%s5945_s7 + $0x68] sm:$0xff] }
 0x503   :  { %2401 = vmatpush1.msra.mxu0 %v2363_v14  ;;  %v2149_v3 = vpop.permute.xlu1 %2148  ;;  %3009 = vmatpush3.msra.mxu1 %v2573_v30  ;;  %v2604_v14 = vld [vmem:[%s5945_s7 + $0x170] sm:$0xff] }
 0x504   :  { %2402 = vmatprep.subr.mxu0 %v5997_v62  ;;  %v2144_v39 = vpop.permute.xlu0 %2143  ;;  %3010 = vmatprep.subr.mxu1 %v2588_v28 }
 0x505   :  { %2403 = vmatpush1.msra.mxu0 %v2362_v32  ;;  %3011 = vmatpush3.msra.mxu1 %v2572_v38  ;;  %v2586_v32 = vld [vmem:[%s5945_s7 + $0xe0] sm:$0xff] }
 0x506   :  { %2404 = vmatprep.subr.mxu0 %v5997_v62  ;;  %3012 = vmatprep.subr.mxu1 %v2587_v19  ;;  %v2606_v38 = vld [vmem:[%s5945_s7 + $0x180] sm:$0xff] }
 0x507   :  { %2405 = vmatpush1.msra.mxu0 %v2361_v58  ;;  %v2603_v58 = vld [vmem:[%s5945_s7 + $0x168] sm:$0xff]  ;;  %3013 = vmatpush3.msra.mxu1 %v2571_v22 }
 0x508   :  { %2406 = vmatprep.subr.mxu0 %v5997_v62  ;;  %3014 = vmatprep.subr.mxu1 %v2586_v32 }
 0x509   :  { %2407 = vmatpush1.msra.mxu0 %v2360_v31  ;;  %v2570_v31 = vld [vmem:[%s5945_s7 + $0x60] sm:$0xff] }
 0x50a   :  { %2408 = vmatprep.subr.mxu0 %v5997_v62  ;;  %3015 = vmatpush3.msra.mxu1 %v2570_v31 }
 0x50b   :  { %2409 = vmatpush1.msra.mxu0 %v2359_v16  ;;  %v2585_v16 = vld [vmem:[%s5945_s7 + $0xd8] sm:$0xff] }
 0x50c   :  { %2410 = vmatprep.subr.mxu0 %v5997_v62  ;;  %3016 = vmatprep.subr.mxu1 %v2585_v16 }
 0x50d   :  { %2411 = vmatpush1.msra.mxu0 %v2358_v1  ;;  %v2569_v1 = vld [vmem:[%s5945_s7 + $0x58] sm:$0xff] }
 0x50e   :  { %2412 = vmatprep.subr.mxu0 %v5997_v62  ;;  %3017 = vmatpush3.msra.mxu1 %v2569_v1 }
 0x50f   :  { %2413 = vmatpush1.msra.mxu0 %v2357_v15  ;;  %v2584_v15 = vld [vmem:[%s5945_s7 + $0xd0] sm:$0xff] }
 0x510   :  { %2414 = vmatprep.subr.mxu0 %v5997_v62  ;;  %3018 = vmatprep.subr.mxu1 %v2584_v15 }
 0x511   :  { %2415 = vmatpush1.msra.mxu0 %v2356_v9  ;;  %v2568_v9 = vld [vmem:[%s5945_s7 + $0x50] sm:$0xff] }
 0x512   :  { %2416 = vmatprep.subr.mxu0 %v5997_v62  ;;  %3019 = vmatpush3.msra.mxu1 %v2568_v9 }
 0x513   :  { %2417 = vmatpush1.msra.mxu0 %v2355_v43  ;;  %v2602_v43 = vld [vmem:[%s5945_s7 + $0x160] sm:$0xff] }
 0x514   :  { %2418 = vmatprep.subr.mxu0 %v5997_v62 }
 0x515   :  { %2419 = vmatpush1.msra.mxu0 %v2354_v13  ;;  %v2583_v13 = vld [vmem:[%s5945_s7 + $0xc8] sm:$0xff] }
 0x516   :  { %2448 = vmatprep.subr.mxu0 %v5997_v62  ;;  %3020 = vmatprep.subr.mxu1 %v2583_v13 }
 0x517   :  { %2987 = vmatpush2.msk.msra.mxu0 %vm590_vm3, %v2371_v46  ;;  %v2567_v46 = vld [vmem:[%s5945_s7 + $0x48] sm:$0xff] }
 0x518   :  { %2450 = vmatprep.subr.mxu0 %v5997_v62  ;;  %3021 = vmatpush3.msra.mxu1 %v2567_v46 }
 0x519   :  { %2451 = vmatpush2.msra.mxu0 %v2370_v23  ;;  %v2601_v23 = vld [vmem:[%s5945_s7 + $0x158] sm:$0xff] }
 0x51a   :  { %2688 = vmatprep.subr.mxu0 %v5997_v62 }
 0x5b4   :  { %v2234_v52 = vpop.f32.mrf.mxu1 }
 0x5b5   :  { %v2235_v0 = vadd.f32 %v2234_v52, %v2134_v60  ;;  %v2566_v52 = vld [vmem:[%s5945_s7 + $0x40] sm:$0xff] }
 0x5b6   :  { %v2236_v5 = vpop.f32.mrf.mxu1  ;;  %v2323_v53 = vpop.f32.mrf.mxu0 }
 0x5b7   :  { %v2237_v27 = vadd.f32 %v2236_v5, %v2134_v60  ;;  %v2324_v29 = vadd.f32 %v2323_v53, %v2235_v0  ;;  %v2582_v60 = vld [vmem:[%s5945_s7 + $0xc0] sm:$0xff]  ;;  %v2600_v0 = vld [vmem:[%s5945_s7 + $0x150] sm:$0xff]  ;;  %v2581_v5 = vld [vmem:[%s5945_s7 + $0xb8] sm:$0xff] }
 0x5b8   :  { %v2240_v37 = vpop.f32.mrf.mxu1  ;;  %v2325_v47 = vpop.f32.mrf.mxu0  ;;  %3022 = vmatprep.subr.mxu1 %v2582_v60  ;;  %v2565_v53 = vld [vmem:[%s5945_s7 + $0x38] sm:$0xff] }
 0x5b9   :  { %v2241_v34 = vadd.f32 %v2240_v37, %v2139_v41  ;;  %v2326_v48 = vadd.f32 %v2325_v47, %v2237_v27  ;;  %v2346_v44 = vmax.f32 %v2324_v29, 0.0  ;;  %3023 = vmatpush3.msra.mxu1 %v2566_v52  ;;  %v2580_v27 = vld [vmem:[%s5945_s7 + $0xb0] sm:$0xff]  ;;  %v2598_v37 = vld [vmem:[%s5945_s7 + $0x140] sm:$0xff]  ;;  %v2579_v47 = vld [vmem:[%s5945_s7 + $0xa8] sm:$0xff] }
 0x5ba   :  { %v2242_v8 = vpop.f32.mrf.mxu1  ;;  %v2329_v54 = vpop.f32.mrf.mxu0  ;;  %3024 = vmatprep.subr.mxu1 %v2581_v5  ;;  %v2564_v29 = vld [vmem:[%s5945_s7 + $0x30] sm:$0xff] }
 0x5bb   :  { %v2347_v45 = vmax.f32 %v2326_v48, 0.0  ;;  %v2243_v50 = vadd.f32 %v2242_v8, %v2139_v41  ;;  %v2330_v56 = vadd.f32 %v2329_v54, %v2241_v34  ;;  %v2599_v41 = vld [vmem:[%s5945_s7 + $0x148] sm:$0xff]  ;;  %3025 = vmatpush3.msra.mxu1 %v2565_v53  ;;  %v2597_v48 = vld [vmem:[%s5945_s7 + $0x138] sm:$0xff] }
 0x5bc   :  { %v2246_v25 = vpop.f32.mrf.mxu1  ;;  %v2331_v4 = vpop.f32.mrf.mxu0  ;;  %3026 = vmatprep.subr.mxu1 %v2580_v27  ;;  %v2563_v34 = vld [vmem:[%s5945_s7 + $0x28] sm:$0xff] }
 0x5bd   :  { %v2247_v33 = vadd.f32 %v2246_v25, %v2144_v39  ;;  %v2332_v40 = vadd.f32 %v2331_v4, %v2243_v50  ;;  %2988 = vmatprep.mubr.msk.f32.mxu0 %vm2372_vm2, %v2347_v45  ;;  %v2348_v11 = vmax.f32 %v2330_v56, 0.0  ;;  %3027 = vmatpush3.msra.mxu1 %v2564_v29  ;;  %v2562_v50 = vld [vmem:[%s5945_s7 + $0x20] sm:$0xff]  ;;  %v2577_v56 = vld [vmem:[%s5945_s7 + $0x98] sm:$0xff]  ;;  %v2595_v4 = vld [vmem:[%s5945_s7 + $0x128] sm:$0xff] }
 0x5be   :  { %v2248_v55 = vpop.f32.mrf.mxu1  ;;  %v2335_v6 = vpop.f32.mrf.mxu0  ;;  %2453 = vmatmul.mubr.f32.vlgmr.msra.gmra.mxu0 %v2346_v44  ;;  %3028 = vmatprep.subr.mxu1 %v2579_v47  ;;  %v2596_v44 = vld [vmem:[%s5945_s7 + $0x130] sm:$0xff]  ;;  %v2561_v25 = vld [vmem:[%s5945_s7 + $0x18] sm:$0xff] }
 0x5bf   :  { %v2349_v59 = vmax.f32 %v2332_v40, 0.0  ;;  %v2249_v18 = vadd.f32 %v2248_v55, %v2144_v39  ;;  %v2336_v17 = vadd.f32 %v2335_v6, %v2247_v33  ;;  %2689 = vmatpush1.msra.mxu0 %v2605_v42  ;;  %3029 = vmatpush3.msra.mxu1 %v2563_v34  ;;  %v2578_v39 = vld [vmem:[%s5945_s7 + $0xa0] sm:$0xff]  ;;  %v2576_v6 = vld [vmem:[%s5945_s7 + $0x90] sm:$0xff]  ;;  %v2772_v34 = vld [vmem:[%s5947_s9 + $0x68] sm:$0xff] }
 0x5c0   :  { %v2252_v49 = vpop.f32.mrf.mxu1  ;;  %v2337_v10 = vpop.f32.mrf.mxu0  ;;  %2690 = vmatprep.subr.mxu0 %v5997_v62  ;;  %3030 = vmatprep.subr.mxu1 %v2578_v39 }
 0x5c1   :  { %v2253_v12 = vadd.f32 %v2252_v49, %v2149_v3  ;;  %v2338_v35 = vadd.f32 %v2337_v10, %v2249_v18  ;;  %2989 = vmatprep.mubr.msk.f32.mxu0 %vm2372_vm2, %v2349_v59  ;;  %v2350_v63 = vmax.f32 %v2336_v17, 0.0  ;;  %2691 = vmatpush1.msra.mxu0 %v2604_v14  ;;  %v2560_v59 = vld [vmem:[%s5945_s7 + $0x10] sm:$0xff]  ;;  %v2594_v18 = vld [vmem:[%s5945_s7 + $0x120] sm:$0xff]  ;;  %v2559_v49 = vld [vmem:[%s5945_s7 + $0x8] sm:$0xff] }
 0x5c2   :  { %v2254_v21 = vpop.f32.mrf.mxu1  ;;  %v2341_v24 = vpop.f32.mrf.mxu0  ;;  %2458 = vmatmul.mubr.f32.gmra.mxu0 %v2348_v11  ;;  %2692 = vmatprep.subr.mxu0 %v5997_v62  ;;  %v2575_v11 = vld [vmem:[%s5945_s7 + $0x88] sm:$0xff] }
 0x5c3   :  { %v2351_v26 = vmax.f32 %v2338_v35, 0.0  ;;  %v2255_v2 = vadd.f32 %v2254_v21, %v2149_v3  ;;  %v2342_v57 = vadd.f32 %v2341_v24, %v2253_v12  ;;  %2693 = vmatpush1.msra.mxu0 %v2603_v58  ;;  %3031 = vmatpush3.msra.mxu1 %v2562_v50  ;;  %v2593_v35 = vld [vmem:[%s5945_s7 + $0x118] sm:$0xff]  ;;  %v2574_v21 = vld [vmem:[%s5945_s7 + $0x80] sm:$0xff] }
 0x5c4   :  { %v2343_v36 = vpop.f32.mrf.mxu0  ;;  %2694 = vmatprep.subr.mxu0 %v5997_v62  ;;  %3032 = vmatprep.subr.mxu1 %v2577_v56  ;;  %v2770_v50 = vld [vmem:[%s5947_s9 + $0x58] sm:$0xff] }
 0x5c5   :  { %v2344_v7 = vadd.f32 %v2343_v36, %v2255_v2  ;;  %2990 = vmatprep.mubr.msk.f32.mxu0 %vm2372_vm2, %v2351_v26  ;;  %v2352_v61 = vmax.f32 %v2342_v57, 0.0  ;;  %2695 = vmatpush1.msra.mxu0 %v2602_v43  ;;  %v2558_v26 = vld [vmem:[%s5945_s7] sm:$0xff]  ;;  %v2592_v2 = vld [vmem:[%s5945_s7 + $0x110] sm:$0xff]  ;;  %v2591_v36 = vld [vmem:[%s5945_s7 + $0x108] sm:$0xff] }
 0x5c6   :  { %2463 = vmatmul.mubr.f32.gmra.mxu0 %v2350_v63  ;;  %2696 = vmatprep.subr.mxu0 %v5997_v62 }
 0x5c7   :  { %v2353_v51 = vmax.f32 %v2344_v7, 0.0  ;;  %2697 = vmatpush1.msra.mxu0 %v2601_v23  ;;  %3033 = vmatpush3.msra.mxu1 %v2561_v25 }
 0x5c8   :  { %2698 = vmatprep.subr.mxu0 %v5997_v62  ;;  %3034 = vmatprep.subr.mxu1 %v2576_v6  ;;  %v2767_v6 = vld [vmem:[%s5947_s9 + $0x40] sm:$0xff] }
 0x5c9   :  { %2991 = vmatprep.mubr.msk.f32.mxu0 %vm2372_vm2, %v2353_v51  ;;  %2699 = vmatpush1.msra.mxu0 %v2600_v0  ;;  %vm2873_vm2 = vcmask 687104  }
 0x5ca   :  { %2468 = vmatmul.mubr.f32.gmra.mxu0 %v2352_v61  ;;  %2700 = vmatprep.subr.mxu0 %v5997_v62  ;;  %v2590_v61 = vld [vmem:[%s5945_s7 + $0x100] sm:$0xff] }
 0x5cb   :  { %2701 = vmatpush1.msra.mxu0 %v2599_v41  ;;  %3035 = vmatpush3.msra.mxu1 %v2560_v59  ;;  %v2765_v59 = vld [vmem:[%s5947_s9 + $0x30] sm:$0xff] }
 0x5cc   :  { %2702 = vmatprep.subr.mxu0 %v5997_v62  ;;  %3036 = vmatprep.subr.mxu1 %v2575_v11  ;;  %v2763_v11 = vld [vmem:[%s5947_s9 + $0x20] sm:$0xff] }
 0x5cd   :  { %2703 = vmatpush1.msra.mxu0 %v2598_v37  ;;  %3037 = vmatpush3.msra.mxu1 %v2559_v49  ;;  %v2773_v37 = vld [vmem:[%s5947_s9 + $0x70] sm:$0xff] }
 0x5ce   :  { %2704 = vmatprep.subr.mxu0 %v5997_v62  ;;  %3038 = vmatprep.subr.mxu1 %v2574_v21  ;;  %v2761_v49 = vld [vmem:[%s5947_s9 + $0x10] sm:$0xff]  ;;  %v2864_v21 = vld [vmem:[%s5949_s11 + $0x48] sm:$0xff] }
 0x5cf   :  { %2705 = vmatpush1.msra.mxu0 %v2597_v48  ;;  %3039 = vmatpush3.msra.mxu1 %v2558_v26  ;;  %v2862_v26 = vld [vmem:[%s5949_s11 + $0x38] sm:$0xff] }
 0x5d0   :  { %2706 = vmatprep.subr.mxu0 %v5997_v62  ;;  %3088 = vmatprep.subr.mxu1 %v5997_v62 }
 0x5d1   :  { %2707 = vmatpush1.msra.mxu0 %v2596_v44 }
 0x5d2   :  { %2708 = vmatprep.subr.mxu0 %v5997_v62 }
 0x5d3   :  { %2709 = vmatpush1.msra.mxu0 %v2595_v4 }
 0x5d4   :  { %2710 = vmatprep.subr.mxu0 %v5997_v62 }
 0x5d5   :  { %2711 = vmatpush1.msra.mxu0 %v2594_v18  ;;  %v2764_v18 = vld [vmem:[%s5947_s9 + $0x28] sm:$0xff] }
 0x5d6   :  { %2712 = vmatprep.subr.mxu0 %v5997_v62 }
 0x5d7   :  { %2713 = vmatpush1.msra.mxu0 %v2593_v35  ;;  %v2865_v35 = vld [vmem:[%s5949_s11 + $0x50] sm:$0xf] }
 0x5d8   :  { %2714 = vmatprep.subr.mxu0 %v5997_v62 }
 0x5d9   :  { %2715 = vmatpush1.msra.mxu0 %v2592_v2  ;;  %v2861_v2 = vld [vmem:[%s5949_s11 + $0x30] sm:$0xff] }
 0x5da   :  { %2716 = vmatprep.subr.mxu0 %v5997_v62 }
 0x5db   :  { %2717 = vmatpush1.msra.mxu0 %v2591_v36  ;;  %v2858_v36 = vld [vmem:[%s5949_s11 + $0x18] sm:$0xff] }
 0x5dc   :  { %2718 = vmatprep.subr.mxu0 %v5997_v62 }
 0x5dd   :  { %2719 = vmatpush1.msra.mxu0 %v2590_v61 }
 0x5de   :  { %2748 = vmatprep.subr.mxu0 %v5997_v62 }
 0x5df   :  { %2749 = vmatpush2.msra.mxu0 %v2607_v20 }
 0x5e0   :  { %2750 = vmatprep.subr.mxu0 %v5997_v62 }
 0x5e1   :  { %2751 = vmatpush2.msra.mxu0 %v2606_v38 }
 0x5e2   :  { %3121 = vmatprep.subr.mxu0 %v5997_v62 }
 0x67e   :  { %v5736_v8 = vpop.f32.mrf.mxu0 }
 0x67f   :  { %v2474_v54 = vrot.slane %v5736_v8, 2  ;;  %v2478_v40 = vrot.slane %v5736_v8, 4  ;;  %v2482_v10 = vrot.slane %v5736_v8, 6 }
 0x680   :  { %v2456_v45 = vpop.f32.mrf.mxu0 }
 0x681   :  { %2475 = vrot.lane.b32.xlu0 %v2474_v54, %s3250_s25  ;;  %v2771_v45 = vld [vmem:[%s5947_s9 + $0x60] sm:$0xff] }
 0x682   :  { %v2459_v33 = vpop.f32.mrf.mxu0 }
 0x683   :  { %v2494_v55 = vrot.slane %v2459_v33, 4  ;;  %v2498_v12 = vrot.slane %v2459_v33, 6  ;;  %v2490_v7 = vrot.slane %v2459_v33, 2 }
 0x684   :  { %v2461_v3 = vpop.f32.mrf.mxu0 }
 0x685   :  { %2479 = vrot.lane.b32.xlu0 %v2478_v40, %s3251_s20  ;;  %2495 = vrot.lane.b32.xlu1 %v2494_v55, %s3252_s22  ;;  %v2768_v55 = vld [vmem:[%s5947_s9 + $0x48] sm:$0xff]  ;;  %v2766_v3 = vld [vmem:[%s5947_s9 + $0x38] sm:$0xff] }
 0x686   :  { %v2464_v17 = vpop.f32.mrf.mxu0 }
 0x687   :  { %v2506_v51 = vrot.slane %v2464_v17, 2  ;;  %v2510_v30 = vrot.slane %v2464_v17, 4  ;;  %v2514_v28 = vrot.slane %v2464_v17, 6 }
 0x688   :  { %v2466_v24 = vpop.f32.mrf.mxu0 }
 0x689   :  { %2483 = vrot.lane.b32.xlu0 %v2482_v10, %s3253_s29  ;;  %2499 = vrot.lane.b32.xlu1 %v2498_v12, %s3254_s3  ;;  %v2760_v10 = vld [vmem:[%s5947_s9 + $0x8] sm:$0xff]  ;;  %v2759_v12 = vld [vmem:[%s5947_s9] sm:$0xff]  ;;  %s2958_s29 = sshll.u32 %s3262_s26, 4  ;;  %s2959_s29 = int_to_ptr.vmem [resolvable:$true] %s2958_s29 }
 0x68a   :  { %v2469_v63 = vpop.f32.mrf.mxu0  ;;  %v2863_v24 = vld [vmem:[%s5949_s11 + $0x40] sm:$0xff]  ;;  %p3202_p1 = scmp.lt.s32.totalorder %s2959_s29, %s2959_s29 }
 0x68b   :  { %v2522_v19 = vrot.slane %v2469_v63, 2  ;;  %v2526_v42 = vrot.slane %v2469_v63, 4  ;;  %v2530_v22 = vrot.slane %v2469_v63, 6 }
 0x68c   :  { %v2471_v57 = vpop.f32.mrf.mxu0 }
 0x68d   :  { %2487 = vrot.lane.b32.xlu0 %v2459_v33, %s3242_s17  ;;  %2503 = vrot.lane.b32.xlu1 %v2464_v17, %s3255_s4  ;;  %v2769_v33 = vld [vmem:[%s5947_s9 + $0x50] sm:$0xff]  ;;  %v2762_v17 = vld [vmem:[%s5947_s9 + $0x18] sm:$0xff] }
 0x68e   :  { %v2859_v57 = vld [vmem:[%s5949_s11 + $0x20] sm:$0xff] }
 0x691   :  { %2491 = vrot.lane.b32.xlu0 %v2490_v7, %s3227_s19  ;;  %2507 = vrot.lane.b32.xlu1 %v2506_v51, %s3221_s28  ;;  %s3258_s28 = smov 44   ;;  %s3259_s19 = smov 69   ;;  %v2857_v7 = vld [vmem:[%s5949_s11 + $0x10] sm:$0xff] }
 0x695   :  { %2515 = vrot.lane.b32.xlu0 %v2514_v28, %s3256_s24  ;;  %2511 = vrot.lane.b32.xlu1 %v2510_v30, %s3257_s27  ;;  %v2992_v30 = vld [vmem:[%s5946_s8] ss:$0 sm:$0xff] }
 0x699   :  { %2519 = vrot.lane.b32.xlu1 %v2469_v63, %s3258_s28  ;;  %2523 = vrot.lane.b32.xlu0 %v2522_v19, %s3259_s19  ;;  %v2860_v63 = vld [vmem:[%s5949_s11 + $0x28] sm:$0xff] }
 0x69d   :  { %2527 = vrot.lane.b32.xlu1 %v2526_v42, %s3225_s15  ;;  %2531 = vrot.lane.b32.xlu0 %v2530_v22, %s3260_s14 }
 0x6f3   :  { %v2476_v14 = vpop.permute.xlu0 %2475 }
 0x6f4   :  { %v2535_v46 = vsel %vm2534_vm4, %v5736_v8, %v2476_v14  ;;  %v2856_v14 = vld [vmem:[%s5949_s11 + $0x8] sm:$0xff] }
 0x6f7   :  { %v2480_v32 = vpop.permute.xlu0 %2479  ;;  %v2496_v58 = vpop.permute.xlu1 %2495 }
 0x6f8   :  { %v2536_v60 = vsel %vm877_vm0, %v2535_v46, %v2480_v32  ;;  %vm2553_vm0 = vcmask 564224   ;;  %v2855_v32 = vld [vmem:[%s5949_s11] sm:$0xff]  ;;  %s3197_s11 = scalar_lea.vmem %s2959_s29, 32 }
 0x6f9   :  { %p3198_p0 = scmp.ne.s32.totalorder %s2959_s29, %s3197_s11  ;;  %p3203_p2 = scmp.lt.s32.totalorder %s3197_s11, %s3197_s11 }
 0x6fb   :  { %v2484_v31 = vpop.permute.xlu0 %2483  ;;  %v2500_v16 = vpop.permute.xlu1 %2499  ;;  %p3204_p3 = por %p3203_p2, %p3202_p1 }
 0x6fc   :  { %v2538_v0 = vsel %vm2537_vm11, %v2536_v60, %v2484_v31 }
 0x6fd   :  { %p3205_p4 = pnand %p3204_p3, %p3198_p0 }
 0x6ff   :  { %v2488_v1 = vpop.permute.xlu0 %2487  ;;  %v2504_v15 = vpop.permute.xlu1 %2503 }
 0x700   :  { %v2539_v27 = vsel %vm1911_vm6, %v2538_v0, %v2488_v1  ;;  %vm2615_vm6 = vcmask 130048  }
 0x703   :  { %v2492_v9 = vpop.permute.xlu0 %2491  ;;  %v2508_v43 = vpop.permute.xlu1 %2507 }
 0x704   :  { %v2542_v13 = vsel %vm2541_vm9, %v2492_v9, %v2496_v58  ;;  %v2540_v47 = vsel %vm6038_vm13, %v2539_v27, %v2492_v9  ;;  %v2994_v58 = vld [vmem:[%s5948_s10] ss:$0 sm:$0xff]  ;;  %vm2950_vm9 = vcmask 74752  }
 0x705   :  { %v2544_v23 = vsel %vm2543_vm8, %v2542_v13, %v2500_v16 }
 0x706   :  { %v2546_v52 = vsel %vm2545_vm10, %v2544_v23, %v2504_v15  ;;  %v2996_v15 = vld [vmem:[%s5950_s12] ss:$0 sm:$0xff] }
 0x707   :  { %v2547_v5 = vsel %vm6037_vm5, %v2546_v52, %v2508_v43  ;;  %v2516_v53 = vpop.permute.xlu0 %2515  ;;  %v2512_v41 = vpop.permute.xlu1 %2511 }
 0x708   :  { %v2549_v29 = vsel %vm2548_vm1, %v2547_v5, %v2512_v41  ;;  %v2551_v48 = vsel %vm2550_vm12, %v2512_v41, %v2516_v53 }
 0x709   :  { %2682 = vmatprep.mubr.f32.mxu1 %v2549_v29 }
 0x70a   :  { %2683 = vmatmul.mubr.f32.vlgmr.msra.gmra.mxu1 %v2540_v47 }
 0x70b   :  { %v2524_v8 = vpop.permute.xlu0 %2523  ;;  %v2520_v54 = vpop.permute.xlu1 %2519  ;;  %3089 = vmatpush3.msra.mxu1 %v2773_v37 }
 0x70c   :  { %v2552_v39 = vsel %vm2151_vm14, %v2551_v48, %v2520_v54  ;;  %3090 = vmatprep.subr.mxu1 %v5997_v62  ;;  %vm3261_vm14 = vmmov 0  }
 0x70d   :  { %3091 = vmatpush3.msra.mxu1 %v2772_v34  ;;  %v2554_v56 = vsel %vm2553_vm0, %v2552_v39, %v2524_v8  ;;  %3118 = vmatprep.mubr.msk.f32.mxu1 %vm3261_vm14, %v5997_v62 }
 0x70e   :  { %3092 = vmatprep.subr.mxu1 %v5997_v62 }
 0x70f   :  { %v2532_v44 = vpop.permute.xlu0 %2531  ;;  %v2528_v25 = vpop.permute.xlu1 %2527  ;;  %3093 = vmatpush3.msra.mxu1 %v2771_v45 }
 0x710   :  { %v2555_v4 = vsel %vm6039_vm7, %v2554_v56, %v2528_v25  ;;  %2993 = vmatprep.mubr.msk.f32.mxu0 %vm2615_vm6, %v2532_v44  ;;  %3094 = vmatprep.subr.mxu1 %v5997_v62 }
 0x711   :  { %v2557_v40 = vsel %vm2556_vm15, %v2555_v4, %v2532_v44  ;;  %3095 = vmatpush3.msra.mxu1 %v2770_v50 }
 0x712   :  { %2753 = vmatmul.mubr.f32.vlgmr.msra.gmra.mxu0 %v2557_v40  ;;  %3096 = vmatprep.subr.mxu1 %v5997_v62 }
 0x713   :  { %3097 = vmatpush3.msra.mxu1 %v2769_v33  ;;  %3143 = vmatprep.mubr.msk.f32.mxu0 %vm3261_vm14, %v5997_v62 }
 0x714   :  { %3098 = vmatprep.subr.mxu1 %v5997_v62  ;;  %3122 = vmatpush3.msk.msra.mxu0 %vm590_vm3, %v2865_v35  ;;  %vm2781_vm3 = vcmask 982016  }
 0x715   :  { %3099 = vmatpush3.msra.mxu1 %v2768_v55  ;;  %3123 = vmatprep.subr.mxu0 %v5997_v62 }
 0x716   :  { %3100 = vmatprep.subr.mxu1 %v5997_v62  ;;  %3124 = vmatpush3.msra.mxu0 %v2864_v21 }
 0x717   :  { %3101 = vmatpush3.msra.mxu1 %v2767_v6  ;;  %3125 = vmatprep.subr.mxu0 %v5997_v62 }
 0x718   :  { %3102 = vmatprep.subr.mxu1 %v5997_v62  ;;  %3126 = vmatpush3.msra.mxu0 %v2863_v24 }
 0x719   :  { %3103 = vmatpush3.msra.mxu1 %v2766_v3  ;;  %3127 = vmatprep.subr.mxu0 %v5997_v62 }
 0x71a   :  { %3104 = vmatprep.subr.mxu1 %v5997_v62  ;;  %3128 = vmatpush3.msra.mxu0 %v2862_v26 }
 0x71b   :  { %3105 = vmatpush3.msra.mxu1 %v2765_v59  ;;  %3129 = vmatprep.subr.mxu0 %v5997_v62 }
 0x71c   :  { %3106 = vmatprep.subr.mxu1 %v5997_v62  ;;  %3130 = vmatpush3.msra.mxu0 %v2861_v2 }
 0x71d   :  { %3107 = vmatpush3.msra.mxu1 %v2764_v18  ;;  %3131 = vmatprep.subr.mxu0 %v5997_v62 }
 0x71e   :  { %3108 = vmatprep.subr.mxu1 %v5997_v62  ;;  %3132 = vmatpush3.msra.mxu0 %v2860_v63 }
 0x71f   :  { %3109 = vmatpush3.msra.mxu1 %v2763_v11  ;;  %3133 = vmatprep.subr.mxu0 %v5997_v62 }
 0x720   :  { %3110 = vmatprep.subr.mxu1 %v5997_v62  ;;  %3134 = vmatpush3.msra.mxu0 %v2859_v57 }
 0x721   :  { %3111 = vmatpush3.msra.mxu1 %v2762_v17  ;;  %3135 = vmatprep.subr.mxu0 %v5997_v62 }
 0x722   :  { %3112 = vmatprep.subr.mxu1 %v5997_v62  ;;  %3136 = vmatpush3.msra.mxu0 %v2858_v36 }
 0x723   :  { %3113 = vmatpush3.msra.mxu1 %v2761_v49  ;;  %3137 = vmatprep.subr.mxu0 %v5997_v62 }
 0x724   :  { %3114 = vmatprep.subr.mxu1 %v5997_v62  ;;  %3138 = vmatpush3.msra.mxu0 %v2857_v7 }
 0x725   :  { %3115 = vmatpush3.msra.mxu1 %v2760_v10  ;;  %3139 = vmatprep.subr.mxu0 %v5997_v62 }
 0x726   :  { %3116 = vmatprep.subr.mxu1 %v5997_v62  ;;  %3140 = vmatpush3.msra.mxu0 %v2856_v14 }
 0x727   :  { %3117 = vmatpush3.msra.mxu1 %v2759_v12  ;;  %3141 = vmatprep.subr.mxu0 %v5997_v62 }
 0x728   :  { %3142 = vmatpush3.msra.mxu0 %v2855_v32 }
 0x7ca   :  { %v3040_v51 = vpop.f32.mrf.mxu1 }
 0x7cc   :  { %v3041_v61 = vpop.f32.mrf.mxu1 }
 0x7cd   :  { %v3042_v20 = vadd.f32 %v3041_v61, %v3040_v51 }
 0x7cf   :  { %v2685_v28 = vadd.f32 %v3042_v20, %v2992_v30 }
 0x7d2   :  { %v2754_v38 = vpop.f32.mrf.mxu0 }
 0x7d3   :  { %v2755_v19 = vadd.f32 %v2754_v38, %v2685_v28 }
 0x7d4   :  { %v2756_v42 = vpop.f32.mrf.mxu0 }
 0x7d5   :  { %v2758_v22 = vmax.f32 %v2755_v19, 0.0 }
 0x7d7   :  { %3119 = vmatmul.mubr.msk.f32.vlgmr.msra.gmra.mxu1 %vm2781_vm3, %v2758_v22 }
 0x897   :  { %v2851_v31 = vpop.f32.mrf.mxu1 }
 0x898   :  { %v2852_v16 = vadd.f32 %v2994_v58, %v2851_v31 }
 0x899   :  { %v3120_v1 = vpop.f32.mrf.mxu1 }
 0x89a   :  { %3144 = vmatmul.mubr.msk.f32.vlgmr.msra.gmra.mxu0 %vm2873_vm2, %v2852_v16 }
 0x95a   :  { %v2946_v62 = vpop.f32.mrf.mxu0 }
 0x95b   :  { %v2947_v9 = vadd.f32 %v2996_v15, %v2946_v62 }
 0x95c   :  { %v3145_v43 = vpop.f32.mrf.mxu0 }
 0x95d   :  { %2951 = vst.msk [vmem:[#allocation2] sm:$0x3] %vm2950_vm9, %v2947_v9 }
 0x95e   :  { %3208 = shalt.err (!%p3205_p4)
}
 0x95f   :  { %2961 = dma.vmem_to_hbm [thread:$0]  %s2959_s29, 32, %s5951_s13, [#allocation3]  }
 0x960   :  { %3217 = dma.done.wait [#allocation3], 32  }
 0x961   :  { %3218 = vsyncadd [#allocation3], 4294967264 }
 0x962   :  { %2965 = vsyncpa [#allocation3], 1 }

</bundles_post_ra>
